<compile_context>
chip_gen: v7x
topology: tpu7x:2x2x1
jax: 0.10.0
libtpu: 0.0.40
codegen_flags: <defaults>
</compile_context>

<pallas_src>
import functools
import math

import jax
import jax.numpy as jnp
from jax.experimental import pallas as pl
from jax.experimental.pallas import tpu as pltpu

_LANES = 128


# --------------------------------------------------------------------------
# Weight-slab packing: each weight is padded to (8k, 128) f32 and stacked, so
# the kernel receives 3 weight inputs instead of ~33 tiny DMA streams.  The
# (row, nrows, ncols) offsets are static Python constants closed over by the
# kernel, so all in-kernel slices are static and sublane-aligned.
# --------------------------------------------------------------------------
def _pack_slab(entries):
    offsets, blocks, row = {}, [], 0
    for name, a in entries:
        a = jnp.asarray(a, jnp.float32)
        if a.ndim == 1:
            a = a.reshape(1, -1)
        nr, nc = a.shape
        assert nc <= _LANES, (name, a.shape)
        nr_pad = ((nr + 7) // 8) * 8
        blk = jnp.zeros((nr_pad, _LANES), jnp.float32).at[:nr, :nc].set(a)
        offsets[name] = (row, nr, nc)
        blocks.append(blk)
        row += nr_pad
    return jnp.concatenate(blocks, axis=0), offsets


def _slab_get(ref, offsets, name):
    r, nr, nc = offsets[name]
    return ref[r:r + nr, :nc]


# --------------------------------------------------------------------------
# Mamba block on time-major rows (row = t*tb + b), everything in vregs.
#   in_proj -> depthwise causal conv1d + SiLU -> dt/B/C -> selective scan
#   -> + D*x -> * SiLU(z) -> out_proj
# --------------------------------------------------------------------------
def _mamba_block(x, m_ref, off, *, tb, length, d_conv, d_state, d_inner):
    M = length * tb
    w = functools.partial(_slab_get, m_ref, off)

    # ---- input projection (pre-split -> no lane-offset output slicing) -------
    xin = jnp.dot(x, w('in_x'), preferred_element_type=jnp.float32)   # (M, d_inner)
    z = jnp.dot(x, w('in_z'), preferred_element_type=jnp.float32)     # (M, d_inner)

    # ---- depthwise causal conv1d + SiLU ---------------------------------------
    # conv[t] = sum_j conv_w[d_conv-1-j] * xin[t-j]; the time shift is a sublane
    # roll by j*tb rows (XLU) and the causal boundary is a row mask (VPU).
    conv_w = w('conv_w')                                               # (d_conv, d_inner)
    conv = xin * conv_w[d_conv - 1:d_conv, :]
    row = jax.lax.broadcasted_iota(jnp.int32, (M, 1), 0)
    for j in range(1, d_conv):
        shifted = pltpu.roll(xin, shift=j * tb, axis=0)                # shifted[r] = xin[r - j*tb]
        tap = shifted * conv_w[d_conv - 1 - j:d_conv - j, :]
        conv = conv + jnp.where(row >= j * tb, tap, 0.0)
    conv = conv + w('conv_b')
    xc = conv * jax.nn.sigmoid(conv)                                   # SiLU

    # ---- input-dependent dt / B / C (dt low-rank projection pre-folded) ------
    dt = jnp.dot(xc, w('W_dt'), preferred_element_type=jnp.float32) + w('dt_b')
    # softplus (threshold 20, matching F.softplus)
    dt = jnp.where(dt > 20.0, dt, jnp.log1p(jnp.exp(jnp.minimum(dt, 20.0))))
    Bm = jnp.dot(xc, w('B_w'), preferred_element_type=jnp.float32)     # (M, d_state)
    Cm = jnp.dot(xc, w('C_w'), preferred_element_type=jnp.float32)     # (M, d_state)

    A_T = -jnp.exp(w('A_logT'))                                        # (d_state, d_inner)

    # ---- selective scan: state and per-step outputs stay in vregs -------------
    h = jnp.zeros((tb, d_state, d_inner), jnp.float32)
    ys = []
    for t in range(length):
        dt_t = dt[t * tb:(t + 1) * tb, :]                              # (tb, d_inner)
        x_t = xc[t * tb:(t + 1) * tb, :]
        B_t = Bm[t * tb:(t + 1) * tb, :]                               # (tb, d_state)
        C_t = Cm[t * tb:(t + 1) * tb, :]
        dA = jnp.exp(dt_t[:, None, :] * A_T[None, :, :])               # (tb, ds, di)
        dBu = (dt_t * x_t)[:, None, :] * B_t[:, :, None]               # (tb, ds, di)
        h = dA * h + dBu
        ys.append(jnp.sum(h * C_t[:, :, None], axis=1))                # (tb, d_inner)
    y = jnp.concatenate(ys, axis=0)                                    # (M, d_inner)

    # ---- skip connection, gate, output projection ------------------------------
    y = y + xc * w('D')
    y = y * (z * jax.nn.sigmoid(z))
    return jnp.dot(y, w('out_w'), preferred_element_type=jnp.float32)  # (M, d_model)


# --------------------------------------------------------------------------
# Fused per-grid-step forward: valueEmbedding -> mamba1 -> last-seg/pos mix ->
# mamba2 -> predict head, for `tb` batch rows at a time (time-major layout).
# --------------------------------------------------------------------------
def _fused_kernel(x_ref, misc_ref, m1_ref, m2_ref, o_ref, *,
                  tb, sx, sy, d_conv, d_state, d_inner, misc_off, m_off):
    M = sx * tb
    mw = functools.partial(_slab_get, misc_ref, misc_off)

    # valueEmbedding: Linear(seg_len -> num_layer) + ReLU (torch except-branch)
    xseg = x_ref[0]                                                    # (sx*tb, seg_len)
    x1 = jnp.dot(xseg, mw('ve_w'), preferred_element_type=jnp.float32) + mw('ve_b')
    x1 = jnp.maximum(x1, 0.0)                                          # (M, num_layer)

    # Mamba block 1
    x2 = _mamba_block(x1, m1_ref, m_off, tb=tb, length=sx,
                      d_conv=d_conv, d_state=d_state, d_inner=d_inner)

    # cat([last segment repeated sy times, pos_emb]) followed by the lazily
    # built Linear(2*sy -> sx), folded analytically:
    #   xm = w_last * last + (W_pos @ pos_emb + b)
    # (the constants are pre-expanded to time-major rows in the wrapper).
    d_model = x2.shape[1]
    last = x2[(sx - 1) * tb:sx * tb, :]                                # (tb, d_model)
    last_rep = jnp.broadcast_to(last[None, :, :],
                                (sx, tb, d_model)).reshape(M, d_model)
    xm = mw('mix_last') * last_rep + mw('mix_const')                   # (M, num_layer)

    # Mamba block 2
    x3 = _mamba_block(xm, m2_ref, m_off, tb=tb, length=sx,
                      d_conv=d_conv, d_state=d_state, d_inner=d_inner)

    # predict head: Dropout (eval identity) + Linear(num_layer -> seg_len)
    xt = x3[(sx - sy) * tb:, :]                                        # (sy*tb, d_model)
    y = jnp.dot(xt, mw('pred_w'), preferred_element_type=jnp.float32) + mw('pred_b')
    o_ref[0, :, :] = y                                                 # (sy*tb, seg_len)


def fused_forward(xseg, params, *, seg_len, num_layer, seg_num_x, seg_num_y, tb=None):
    """xseg: (B', seg_num_x, seg_len) -> (B', seg_num_y, seg_len)."""
    Bp = xseg.shape[0]
    sx, sy = seg_num_x, seg_num_y

    # Batch tile per grid step: fill sublanes / MXU-M, but keep >=2 grid steps
    # so both v7x TensorCores stay busy under dimension_semantics=("parallel",).
    if tb is None:
        tb = max(1, min(8, Bp // 2)) if Bp >= 2 else 1
    n_blocks = -(-Bp // tb)
    bp_pad = n_blocks * tb

    dt_rank = params['mamba1']['dt_w'].shape[0]
    d_state = params['mamba1']['A_logT'].shape[0]
    d_conv, d_inner = params['mamba1']['conv_w'].shape

    # ---- misc slab: valueEmbedding, folded mix, predict head -----------------
    mix_w = params['mix_w']                                   # (2*sy, sx), (in, out)
    mix_last = jnp.sum(mix_w[:sy, :], axis=0).reshape(sx, 1)
    mix_const = (mix_w[sy:, :].T @ params['pos_emb']
                 + params['mix_b'].reshape(sx, 1))            # (sx, num_layer)
    misc_slab, misc_off = _pack_slab([
        ('ve_w', params['ve_w']),
        ('ve_b', params['ve_b']),
        ('mix_last', jnp.repeat(mix_last, tb, axis=0)),       # (sx*tb, 1)
        ('mix_const', jnp.repeat(mix_const, tb, axis=0)),     # (sx*tb, num_layer)
        ('pred_w', params['pred_w']),
        ('pred_b', params['pred_b']),
    ])

    def mamba_slab(mp):
        xp_w = mp['xp_w']
        return _pack_slab([
            ('in_x', mp['in_w'][:, :d_inner]),
            ('in_z', mp['in_w'][:, d_inner:]),
            ('conv_w', mp['conv_w']),
            ('conv_b', mp['conv_b']),
            ('W_dt', xp_w[:, :dt_rank] @ mp['dt_w']),         # fold low-rank dt proj
            ('dt_b', mp['dt_b']),
            ('B_w', xp_w[:, dt_rank:dt_rank + d_state]),
            ('C_w', xp_w[:, dt_rank + d_state:]),
            ('A_logT', mp['A_logT']),
            ('D', mp['D']),
            ('out_w', mp['out_w']),
        ])

    m1_slab, m_off = mamba_slab(params['mamba1'])
    m2_slab, m_off2 = mamba_slab(params['mamba2'])
    assert m_off == m_off2

    # ---- time-major packing of the batch: kernel row = t*tb + b --------------
    pad = bp_pad - Bp
    x_p = jnp.pad(xseg, ((0, pad), (0, 0), (0, 0))) if pad else xseg
    x_km = (x_p.reshape(n_blocks, tb, sx, seg_len)
            .transpose(0, 2, 1, 3)
            .reshape(n_blocks, sx * tb, seg_len))

    kernel = functools.partial(
        _fused_kernel, tb=tb, sx=sx, sy=sy, d_conv=d_conv, d_state=d_state,
        d_inner=d_inner, misc_off=misc_off, m_off=m_off)

    grid_spec = pltpu.PrefetchScalarGridSpec(
        num_scalar_prefetch=0,
        grid=(n_blocks,),
        in_specs=[
            pl.BlockSpec((1, sx * tb, seg_len), lambda g: (g, 0, 0)),
            pl.BlockSpec(misc_slab.shape, lambda g: (0, 0)),   # weights resident
            pl.BlockSpec(m1_slab.shape, lambda g: (0, 0)),
            pl.BlockSpec(m2_slab.shape, lambda g: (0, 0)),
        ],
        out_specs=pl.BlockSpec((1, sy * tb, seg_len), lambda g: (g, 0, 0)),
    )

    y_km = pl.pallas_call(
        kernel,
        out_shape=jax.ShapeDtypeStruct((n_blocks, sy * tb, seg_len), jnp.float32),
        grid_spec=grid_spec,
        compiler_params=pltpu.CompilerParams(
            dimension_semantics=("parallel",)),
    )(x_km, misc_slab, m1_slab, m2_slab)

    y = (y_km.reshape(n_blocks, sy, tb, seg_len)
         .transpose(0, 2, 1, 3)
         .reshape(bp_pad, sy, seg_len))
    return y[:Bp]


# --------------------------------------------------------------------------
# Pure-JAX reference of the torch forward (no analytic folds) for self-check.
# --------------------------------------------------------------------------
def _mamba_ref(x, mp):
    d_conv, d_inner = mp['conv_w'].shape
    d_state = mp['A_logT'].shape[0]
    dt_rank = mp['dt_w'].shape[0]
    Bq, Lq, _ = x.shape
    xz = jnp.einsum('bld,de->ble', x, mp['in_w'])
    xin, z = xz[..., :d_inner], xz[..., d_inner:]
    conv = jnp.zeros_like(xin)
    for j in range(d_conv):
        shifted = jnp.pad(xin, ((0, 0), (j, 0), (0, 0)))[:, :Lq, :]
        conv = conv + shifted * mp['conv_w'][d_conv - 1 - j]
    conv = conv + mp['conv_b'][0]
    xc = jax.nn.silu(conv)
    dbc = jnp.einsum('ble,ef->blf', xc, mp['xp_w'])
    dt = jax.nn.softplus(
        jnp.einsum('blr,re->ble', dbc[..., :dt_rank], mp['dt_w']) + mp['dt_b'][0])
    Bm = dbc[..., dt_rank:dt_rank + d_state]
    Cm = dbc[..., dt_rank + d_state:]
    A = -jnp.exp(mp['A_logT'])
    h = jnp.zeros((Bq, d_state, d_inner), jnp.float32)
    ys = []
    for t in range(Lq):
        dA = jnp.exp(dt[:, t, None, :] * A[None])
        dBu = (dt[:, t, :] * xc[:, t, :])[:, None, :] * Bm[:, t, :, None]
        h = dA * h + dBu
        ys.append(jnp.einsum('bsd,bs->bd', h, Cm[:, t, :]))
    y = jnp.stack(ys, axis=1)
    y = y + xc * mp['D'][0]
    y = y * jax.nn.silu(z)
    return jnp.einsum('bld,do->blo', y, mp['out_w'])


def reference_core(xseg, params, *, seg_len, num_layer, seg_num_x, seg_num_y):
    del seg_len
    Bp = xseg.shape[0]
    x1 = jax.nn.relu(jnp.einsum('bls,sd->bld', xseg, params['ve_w']) + params['ve_b'])
    x2 = _mamba_ref(x1, params['mamba1'])
    pos = jnp.broadcast_to(params['pos_emb'][None], (Bp, seg_num_y, num_layer))
    last = jnp.broadcast_to(x2[:, -1:, :], (Bp, seg_num_y, num_layer))
    xcat = jnp.concatenate([last, pos], axis=1)               # (Bp, 2*sy, d)
    xm = jnp.einsum('bkd,ki->bid', xcat, params['mix_w']) + params['mix_b'][:, None]
    x3 = _mamba_ref(xm, params['mamba2'])
    return (jnp.einsum('bld,ds->bls', x3[:, -seg_num_y:, :], params['pred_w'])
            + params['pred_b'])


# --------------------------------------------------------------------------
# Parameter initialization (deterministic, synthetic).
# Weights are stored transposed relative to torch.nn.Linear, i.e. (in, out).
# --------------------------------------------------------------------------
def init_params(key, *, H, L, num_layer, seg_len, d_state, d_conv, e_fact):
    seg_num_x = H // seg_len
    seg_num_y = L // seg_len
    d_model = num_layer
    d_inner = e_fact * d_model
    dt_rank = math.ceil(d_model / 16)

    ks = jax.random.split(key, 10)

    def nrm(k, shape, scale=0.1):
        return scale * jax.random.normal(k, shape, jnp.float32)

    def mamba_params(kk):
        k = jax.random.split(kk, 7)
        A_logT = jnp.log(jnp.broadcast_to(
            jnp.arange(1, d_state + 1, dtype=jnp.float32)[:, None],
            (d_state, d_inner)))
        return {
            'in_w':  nrm(k[0], (d_model, 2 * d_inner)),
            'conv_w': nrm(k[1], (d_conv, d_inner), 0.2),
            'conv_b': nrm(k[2], (1, d_inner)),
            'xp_w':  nrm(k[3], (d_inner, dt_rank + 2 * d_state)),
            'dt_w':  nrm(k[4], (dt_rank, d_inner), 0.2),
            'dt_b':  nrm(k[5], (1, d_inner)),
            'A_logT': A_logT,
            'D': jnp.ones((1, d_inner), jnp.float32),
            'out_w': nrm(k[6], (d_inner, d_model)),
        }

    return {
        've_w':   nrm(ks[0], (seg_len, num_layer)),
        've_b':   nrm(ks[1], (num_layer,)),
        'pos_emb': jax.random.normal(ks[2], (seg_num_y, num_layer), jnp.float32),
        'mix_w':  nrm(ks[3], (2 * seg_num_y, seg_num_x)),     # lazily-built self.linear
        'mix_b':  nrm(ks[4], (seg_num_x,)),
        'pred_w': nrm(ks[5], (num_layer, seg_len)),
        'pred_b': nrm(ks[6], (seg_len,)),
        'mamba1': mamba_params(ks[7]),
        'mamba2': mamba_params(ks[8]),
        # NOTE: the dead `mhn` Linear / unused LayerNorm of the torch module are
        # intentionally omitted (their outputs are never consumed).
    }


# --------------------------------------------------------------------------
# Full model forward (revin=True, channel_id=False, dropout in eval mode).
# --------------------------------------------------------------------------
def model_forward(x, params, *, H, L, enc_in, num_layer, seg_len, core_fn):
    B = x.shape[0]
    sx = H // seg_len
    sy = L // seg_len

    # --- RevIN 'norm' (affine=False, subtract_last=False): plain-JAX glue ---
    mean = jnp.mean(x, axis=1, keepdims=True)                 # (B, 1, enc_in)
    var = jnp.mean((x - mean) ** 2, axis=1, keepdims=True)
    stdev = jnp.sqrt(var + 1e-5)
    xn = (x - mean) / stdev
    xp = jnp.transpose(xn, (0, 2, 1))                         # (B, enc_in, H)
    xseg = xp.reshape(B * enc_in, sx, seg_len)

    # --- fused core: valueEmbedding -> mamba1 -> mix -> mamba2 -> head ---
    y = core_fn(xseg, params, seg_len=seg_len, num_layer=num_layer,
                seg_num_x=sx, seg_num_y=sy)                   # (B', sy, seg_len)

    # --- output reshapes exactly as torch's .view()/.permute() (enc_in == 1) ---
    y = y.reshape(B, sy, seg_len)
    y = jnp.transpose(y, (0, 2, 1)).reshape(B, enc_in, L)

    # --- RevIN 'denorm' ---
    y = jnp.transpose(y, (0, 2, 1)) * stdev + mean            # (B, L, enc_in)
    return y


if __name__ == "__main__":
    # Hyper-parameters (small, consistent with the module; enc_in must be 1 for
    # the torch view() in the forward to be valid).
    H, L, enc_in = 32, 16, 1
    num_layer, seg_len = 32, 8
    D_STATE, DCONV, E_FACT = 8, 4, 2
    batch = 16   # -> 2 grid steps of 8 batch rows each (full sublane tiles,
                 #    and both v7x TensorCores busy)

    key = jax.random.PRNGKey(0)
    kx, kp = jax.random.split(key)
    x = jax.random.normal(kx, (batch, H, enc_in), jnp.float32)

    params = init_params(kp, H=H, L=L, num_layer=num_layer, seg_len=seg_len,
                         d_state=D_STATE, d_conv=DCONV, e_fact=E_FACT)

    fwd = jax.jit(functools.partial(model_forward, H=H, L=L, enc_in=enc_in,
                                    num_layer=num_layer, seg_len=seg_len,
                                    core_fn=fused_forward))
    y = jax.block_until_ready(fwd(x, params))
    assert y.shape == (batch, L, enc_in), y.shape
    assert bool(jnp.all(jnp.isfinite(y)))

    # Correctness self-check against a pure-JAX reference of the torch forward.
    ref = jax.jit(functools.partial(model_forward, H=H, L=L, enc_in=enc_in,
                                    num_layer=num_layer, seg_len=seg_len,
                                    core_fn=reference_core))
    y_ref = jax.block_until_ready(ref(x, params))
    err = float(jnp.max(jnp.abs(y - y_ref)))
    scale = float(jnp.max(jnp.abs(y_ref)))
    assert err <= 1e-3 + 5e-2 * scale, ("mismatch vs reference", err, scale)

    print("KERNEL_OK")
</pallas_src>

<mosaic_0001>
module attributes {stable_mosaic.version = 11 : i64} {
  func.func @_fused_kernel(%arg0: i32, %arg1: memref<1x32x8xf32, #tpu.memory_space<vmem>>, %arg2: memref<120x128xf32, #tpu.memory_space<vmem>>, %arg3: memref<360x128xf32, #tpu.memory_space<vmem>>, %arg4: memref<360x128xf32, #tpu.memory_space<vmem>>, %arg5: memref<1x16x8xf32, #tpu.memory_space<vmem>>) attributes {dimension_semantics = [#tpu.dimension_semantics<parallel>], iteration_bounds = array<i64: 2>, scalar_prefetch = 0 : i64, scratch_operands = 0 : i64, tpu.core_type = #tpu.core_type<tc>, window_params = [{transform_indices = @transform_0, window_bounds = array<i64: 1, 32, 8>}, {pipeline_mode = #tpu.pipeline_mode<synchronous>, transform_indices = @transform_1, window_bounds = array<i64: 120, 128>}, {pipeline_mode = #tpu.pipeline_mode<synchronous>, transform_indices = @transform_2, window_bounds = array<i64: 360, 128>}, {pipeline_mode = #tpu.pipeline_mode<synchronous>, transform_indices = @transform_3, window_bounds = array<i64: 360, 128>}, {transform_indices = @transform_4, window_bounds = array<i64: 1, 16, 8>}]} {
    %c0 = arith.constant 0 : index
    %c0_0 = arith.constant 0 : index
    %c0_1 = arith.constant 0 : index
    %0 = vector.load %arg1[%c0, %c0_0, %c0_1] : memref<1x32x8xf32, #tpu.memory_space<vmem>>, vector<1x32x8xf32>
    %1 = vector.shape_cast %0 : vector<1x32x8xf32> to vector<32x8xf32>
    %c0_2 = arith.constant 0 : index
    %c0_3 = arith.constant 0 : index
    %2 = vector.load %arg2[%c0_2, %c0_3] : memref<120x128xf32, #tpu.memory_space<vmem>>, vector<8x32xf32>
    %cst = arith.constant dense<0.000000e+00> : vector<32x32xf32>
    %3 = tpu.matmul %1, %2, %cst {dimension_numbers = #tpu.dot_dimension_numbers<[1], [0], [0], [1], [0, 0, 1, 1], [], []>} : vector<32x8xf32>, vector<8x32xf32>, vector<32x32xf32> -> vector<32x32xf32>
    %c8 = arith.constant 8 : index
    %c0_4 = arith.constant 0 : index
    %4 = vector.load %arg2[%c8, %c0_4] : memref<120x128xf32, #tpu.memory_space<vmem>>, vector<1x32xf32>
    %5 = vector.broadcast %4 : vector<1x32xf32> to vector<32x32xf32>
    %6 = arith.addf %3, %5 : vector<32x32xf32>
    %cst_5 = arith.constant 0.000000e+00 : f32
    %7 = vector.broadcast %cst_5 : f32 to vector<32x32xf32>
    %8 = arith.maximumf %6, %7 : vector<32x32xf32>
    %c0_6 = arith.constant 0 : index
    %c0_7 = arith.constant 0 : index
    %9 = vector.load %arg3[%c0_6, %c0_7] : memref<360x128xf32, #tpu.memory_space<vmem>>, vector<32x64xf32>
    %cst_8 = arith.constant dense<0.000000e+00> : vector<32x64xf32>
    %10 = tpu.matmul %8, %9, %cst_8 {dimension_numbers = #tpu.dot_dimension_numbers<[1], [0], [0], [1], [0, 0, 1, 1], [], []>} : vector<32x32xf32>, vector<32x64xf32>, vector<32x64xf32> -> vector<32x64xf32>
    %c32 = arith.constant 32 : index
    %c0_9 = arith.constant 0 : index
    %11 = vector.load %arg3[%c32, %c0_9] : memref<360x128xf32, #tpu.memory_space<vmem>>, vector<32x64xf32>
    %cst_10 = arith.constant dense<0.000000e+00> : vector<32x64xf32>
    %12 = tpu.matmul %8, %11, %cst_10 {dimension_numbers = #tpu.dot_dimension_numbers<[1], [0], [0], [1], [0, 0, 1, 1], [], []>} : vector<32x32xf32>, vector<32x64xf32>, vector<32x64xf32> -> vector<32x64xf32>
    %c64 = arith.constant 64 : index
    %c0_11 = arith.constant 0 : index
    %13 = vector.load %arg3[%c64, %c0_11] : memref<360x128xf32, #tpu.memory_space<vmem>>, vector<4x64xf32>
    %14 = vector.extract_strided_slice %13 {offsets = [3, 0], sizes = [1, 64], strides = [1, 1]} : vector<4x64xf32> to vector<1x64xf32>
    %15 = vector.broadcast %14 : vector<1x64xf32> to vector<32x64xf32>
    %16 = arith.mulf %10, %15 : vector<32x64xf32>
    %17 = tpu.iota {dimensions = array<i32: 0>} : vector<32x1xi32>
    %c8_i32 = arith.constant 8 : i32
    %18 = tpu.dynamic_rotate %10 by %c8_i32 dim 0 : vector<32x64xf32>, i32 -> vector<32x64xf32>
    %19 = vector.extract_strided_slice %13 {offsets = [2, 0], sizes = [1, 64], strides = [1, 1]} : vector<4x64xf32> to vector<1x64xf32>
    %20 = vector.broadcast %19 : vector<1x64xf32> to vector<32x64xf32>
    %21 = arith.mulf %18, %20 : vector<32x64xf32>
    %c8_i32_12 = arith.constant 8 : i32
    %22 = vector.broadcast %c8_i32_12 : i32 to vector<32x1xi32>
    %23 = arith.cmpi sge, %17, %22 : vector<32x1xi32>
    %cst_13 = arith.constant 0.000000e+00 : f32
    %24 = vector.shape_cast %23 : vector<32x1xi1> to vector<32x1xi1>
    %25 = vector.broadcast %24 : vector<32x1xi1> to vector<32x64xi1>
    %26 = vector.broadcast %cst_13 : f32 to vector<32x64xf32>
    %27 = arith.select %25, %21, %26 : vector<32x64xi1>, vector<32x64xf32>
    %28 = arith.addf %16, %27 : vector<32x64xf32>
    %c16_i32 = arith.constant 16 : i32
    %29 = tpu.dynamic_rotate %10 by %c16_i32 dim 0 : vector<32x64xf32>, i32 -> vector<32x64xf32>
    %30 = vector.extract_strided_slice %13 {offsets = [1, 0], sizes = [1, 64], strides = [1, 1]} : vector<4x64xf32> to vector<1x64xf32>
    %31 = vector.broadcast %30 : vector<1x64xf32> to vector<32x64xf32>
    %32 = arith.mulf %29, %31 : vector<32x64xf32>
    %c16_i32_14 = arith.constant 16 : i32
    %33 = vector.broadcast %c16_i32_14 : i32 to vector<32x1xi32>
    %34 = arith.cmpi sge, %17, %33 : vector<32x1xi32>
    %cst_15 = arith.constant 0.000000e+00 : f32
    %35 = vector.shape_cast %34 : vector<32x1xi1> to vector<32x1xi1>
    %36 = vector.broadcast %35 : vector<32x1xi1> to vector<32x64xi1>
    %37 = vector.broadcast %cst_15 : f32 to vector<32x64xf32>
    %38 = arith.select %36, %32, %37 : vector<32x64xi1>, vector<32x64xf32>
    %39 = arith.addf %28, %38 : vector<32x64xf32>
    %c24_i32 = arith.constant 24 : i32
    %40 = tpu.dynamic_rotate %10 by %c24_i32 dim 0 : vector<32x64xf32>, i32 -> vector<32x64xf32>
    %41 = vector.extract_strided_slice %13 {offsets = [0, 0], sizes = [1, 64], strides = [1, 1]} : vector<4x64xf32> to vector<1x64xf32>
    %42 = vector.broadcast %41 : vector<1x64xf32> to vector<32x64xf32>
    %43 = arith.mulf %40, %42 : vector<32x64xf32>
    %c24_i32_16 = arith.constant 24 : i32
    %44 = vector.broadcast %c24_i32_16 : i32 to vector<32x1xi32>
    %45 = arith.cmpi sge, %17, %44 : vector<32x1xi32>
    %cst_17 = arith.constant 0.000000e+00 : f32
    %46 = vector.shape_cast %45 : vector<32x1xi1> to vector<32x1xi1>
    %47 = vector.broadcast %46 : vector<32x1xi1> to vector<32x64xi1>
    %48 = vector.broadcast %cst_17 : f32 to vector<32x64xf32>
    %49 = arith.select %47, %43, %48 : vector<32x64xi1>, vector<32x64xf32>
    %50 = arith.addf %39, %49 : vector<32x64xf32>
    %c72 = arith.constant 72 : index
    %c0_18 = arith.constant 0 : index
    %51 = vector.load %arg3[%c72, %c0_18] : memref<360x128xf32, #tpu.memory_space<vmem>>, vector<1x64xf32>
    %52 = vector.broadcast %51 : vector<1x64xf32> to vector<32x64xf32>
    %53 = arith.addf %50, %52 : vector<32x64xf32>
    %54 = arith.negf %53 : vector<32x64xf32>
    %55 = math.exp %54 : vector<32x64xf32>
    %cst_19 = arith.constant 1.000000e+00 : f32
    %56 = vector.broadcast %cst_19 : f32 to vector<32x64xf32>
    %57 = arith.addf %56, %55 : vector<32x64xf32>
    %58 = arith.divf %56, %57 : vector<32x64xf32>
    %59 = arith.mulf %53, %58 : vector<32x64xf32>
    %c80 = arith.constant 80 : index
    %c0_20 = arith.constant 0 : index
    %60 = vector.load %arg3[%c80, %c0_20] : memref<360x128xf32, #tpu.memory_space<vmem>>, vector<64x64xf32>
    %cst_21 = arith.constant dense<0.000000e+00> : vector<32x64xf32>
    %61 = tpu.matmul %59, %60, %cst_21 {dimension_numbers = #tpu.dot_dimension_numbers<[1], [0], [0], [1], [0, 0, 1, 1], [], []>} : vector<32x64xf32>, vector<64x64xf32>, vector<32x64xf32> -> vector<32x64xf32>
    %c144 = arith.constant 144 : index
    %c0_22 = arith.constant 0 : index
    %62 = vector.load %arg3[%c144, %c0_22] : memref<360x128xf32, #tpu.memory_space<vmem>>, vector<1x64xf32>
    %63 = vector.broadcast %62 : vector<1x64xf32> to vector<32x64xf32>
    %64 = arith.addf %61, %63 : vector<32x64xf32>
    %cst_23 = arith.constant 2.000000e+01 : f32
    %65 = vector.broadcast %cst_23 : f32 to vector<32x64xf32>
    %66 = arith.cmpf ogt, %64, %65 : vector<32x64xf32>
    %cst_24 = arith.constant 2.000000e+01 : f32
    %67 = vector.broadcast %cst_24 : f32 to vector<32x64xf32>
    %68 = arith.minimumf %64, %67 : vector<32x64xf32>
    %69 = math.exp %68 : vector<32x64xf32>
    %70 = math.log1p %69 : vector<32x64xf32>
    %71 = arith.select %66, %64, %70 : vector<32x64xi1>, vector<32x64xf32>
    %c152 = arith.constant 152 : index
    %c0_25 = arith.constant 0 : index
    %72 = vector.load %arg3[%c152, %c0_25] : memref<360x128xf32, #tpu.memory_space<vmem>>, vector<64x8xf32>
    %cst_26 = arith.constant dense<0.000000e+00> : vector<32x8xf32>
    %73 = tpu.matmul %59, %72, %cst_26 {dimension_numbers = #tpu.dot_dimension_numbers<[1], [0], [0], [1], [0, 0, 1, 1], [], []>} : vector<32x64xf32>, vector<64x8xf32>, vector<32x8xf32> -> vector<32x8xf32>
    %c216 = arith.constant 216 : index
    %c0_27 = arith.constant 0 : index
    %74 = vector.load %arg3[%c216, %c0_27] : memref<360x128xf32, #tpu.memory_space<vmem>>, vector<64x8xf32>
    %cst_28 = arith.constant dense<0.000000e+00> : vector<32x8xf32>
    %75 = tpu.matmul %59, %74, %cst_28 {dimension_numbers = #tpu.dot_dimension_numbers<[1], [0], [0], [1], [0, 0, 1, 1], [], []>} : vector<32x64xf32>, vector<64x8xf32>, vector<32x8xf32> -> vector<32x8xf32>
    %c280 = arith.constant 280 : index
    %c0_29 = arith.constant 0 : index
    %76 = vector.load %arg3[%c280, %c0_29] : memref<360x128xf32, #tpu.memory_space<vmem>>, vector<8x64xf32>
    %77 = math.exp %76 : vector<8x64xf32>
    %cst_30 = arith.constant 0.000000e+00 : f32
    %78 = vector.broadcast %cst_30 : f32 to vector<8x64xf32>
    %79 = arith.subf %78, %77 : vector<8x64xf32>
    %cst_31 = arith.constant 0.000000e+00 : f32
    %80 = vector.broadcast %cst_31 : f32 to vector<8x8x64xf32>
    %81 = vector.extract_strided_slice %71 {offsets = [0, 0], sizes = [8, 64], strides = [1, 1]} : vector<32x64xf32> to vector<8x64xf32>
    %82 = vector.extract_strided_slice %59 {offsets = [0, 0], sizes = [8, 64], strides = [1, 1]} : vector<32x64xf32> to vector<8x64xf32>
    %83 = vector.extract_strided_slice %73 {offsets = [0, 0], sizes = [8, 8], strides = [1, 1]} : vector<32x8xf32> to vector<8x8xf32>
    %84 = vector.extract_strided_slice %75 {offsets = [0, 0], sizes = [8, 8], strides = [1, 1]} : vector<32x8xf32> to vector<8x8xf32>
    %85 = vector.shape_cast %81 : vector<8x64xf32> to vector<8x1x64xf32>
    %86 = vector.shape_cast %79 : vector<8x64xf32> to vector<1x8x64xf32>
    %87 = vector.broadcast %85 : vector<8x1x64xf32> to vector<8x8x64xf32>
    %88 = vector.broadcast %86 : vector<1x8x64xf32> to vector<8x8x64xf32>
    %89 = arith.mulf %87, %88 : vector<8x8x64xf32>
    %90 = math.exp %89 : vector<8x8x64xf32>
    %91 = arith.mulf %81, %82 : vector<8x64xf32>
    %92 = vector.shape_cast %91 : vector<8x64xf32> to vector<8x1x64xf32>
    %93 = vector.shape_cast %83 : vector<8x8xf32> to vector<8x8x1xf32>
    %94 = vector.broadcast %92 : vector<8x1x64xf32> to vector<8x8x64xf32>
    %95 = vector.broadcast %93 : vector<8x8x1xf32> to vector<8x8x64xf32>
    %96 = arith.mulf %94, %95 : vector<8x8x64xf32>
    %97 = arith.mulf %90, %80 : vector<8x8x64xf32>
    %98 = arith.addf %97, %96 : vector<8x8x64xf32>
    %99 = vector.shape_cast %84 : vector<8x8xf32> to vector<8x8x1xf32>
    %100 = vector.broadcast %99 : vector<8x8x1xf32> to vector<8x8x64xf32>
    %101 = arith.mulf %98, %100 : vector<8x8x64xf32>
    %cst_32 = arith.constant dense<0.000000e+00> : vector<8x64xf32>
    %102 = vector.multi_reduction <add>, %101, %cst_32 [1] : vector<8x8x64xf32> to vector<8x64xf32>
    %103 = vector.extract_strided_slice %71 {offsets = [8, 0], sizes = [8, 64], strides = [1, 1]} : vector<32x64xf32> to vector<8x64xf32>
    %104 = vector.extract_strided_slice %59 {offsets = [8, 0], sizes = [8, 64], strides = [1, 1]} : vector<32x64xf32> to vector<8x64xf32>
    %105 = vector.extract_strided_slice %73 {offsets = [8, 0], sizes = [8, 8], strides = [1, 1]} : vector<32x8xf32> to vector<8x8xf32>
    %106 = vector.extract_strided_slice %75 {offsets = [8, 0], sizes = [8, 8], strides = [1, 1]} : vector<32x8xf32> to vector<8x8xf32>
    %107 = vector.shape_cast %103 : vector<8x64xf32> to vector<8x1x64xf32>
    %108 = vector.shape_cast %79 : vector<8x64xf32> to vector<1x8x64xf32>
    %109 = vector.broadcast %107 : vector<8x1x64xf32> to vector<8x8x64xf32>
    %110 = vector.broadcast %108 : vector<1x8x64xf32> to vector<8x8x64xf32>
    %111 = arith.mulf %109, %110 : vector<8x8x64xf32>
    %112 = math.exp %111 : vector<8x8x64xf32>
    %113 = arith.mulf %103, %104 : vector<8x64xf32>
    %114 = vector.shape_cast %113 : vector<8x64xf32> to vector<8x1x64xf32>
    %115 = vector.shape_cast %105 : vector<8x8xf32> to vector<8x8x1xf32>
    %116 = vector.broadcast %114 : vector<8x1x64xf32> to vector<8x8x64xf32>
    %117 = vector.broadcast %115 : vector<8x8x1xf32> to vector<8x8x64xf32>
    %118 = arith.mulf %116, %117 : vector<8x8x64xf32>
    %119 = arith.mulf %112, %98 : vector<8x8x64xf32>
    %120 = arith.addf %119, %118 : vector<8x8x64xf32>
    %121 = vector.shape_cast %106 : vector<8x8xf32> to vector<8x8x1xf32>
    %122 = vector.broadcast %121 : vector<8x8x1xf32> to vector<8x8x64xf32>
    %123 = arith.mulf %120, %122 : vector<8x8x64xf32>
    %cst_33 = arith.constant dense<0.000000e+00> : vector<8x64xf32>
    %124 = vector.multi_reduction <add>, %123, %cst_33 [1] : vector<8x8x64xf32> to vector<8x64xf32>
    %125 = vector.extract_strided_slice %71 {offsets = [16, 0], sizes = [8, 64], strides = [1, 1]} : vector<32x64xf32> to vector<8x64xf32>
    %126 = vector.extract_strided_slice %59 {offsets = [16, 0], sizes = [8, 64], strides = [1, 1]} : vector<32x64xf32> to vector<8x64xf32>
    %127 = vector.extract_strided_slice %73 {offsets = [16, 0], sizes = [8, 8], strides = [1, 1]} : vector<32x8xf32> to vector<8x8xf32>
    %128 = vector.extract_strided_slice %75 {offsets = [16, 0], sizes = [8, 8], strides = [1, 1]} : vector<32x8xf32> to vector<8x8xf32>
    %129 = vector.shape_cast %125 : vector<8x64xf32> to vector<8x1x64xf32>
    %130 = vector.shape_cast %79 : vector<8x64xf32> to vector<1x8x64xf32>
    %131 = vector.broadcast %129 : vector<8x1x64xf32> to vector<8x8x64xf32>
    %132 = vector.broadcast %130 : vector<1x8x64xf32> to vector<8x8x64xf32>
    %133 = arith.mulf %131, %132 : vector<8x8x64xf32>
    %134 = math.exp %133 : vector<8x8x64xf32>
    %135 = arith.mulf %125, %126 : vector<8x64xf32>
    %136 = vector.shape_cast %135 : vector<8x64xf32> to vector<8x1x64xf32>
    %137 = vector.shape_cast %127 : vector<8x8xf32> to vector<8x8x1xf32>
    %138 = vector.broadcast %136 : vector<8x1x64xf32> to vector<8x8x64xf32>
    %139 = vector.broadcast %137 : vector<8x8x1xf32> to vector<8x8x64xf32>
    %140 = arith.mulf %138, %139 : vector<8x8x64xf32>
    %141 = arith.mulf %134, %120 : vector<8x8x64xf32>
    %142 = arith.addf %141, %140 : vector<8x8x64xf32>
    %143 = vector.shape_cast %128 : vector<8x8xf32> to vector<8x8x1xf32>
    %144 = vector.broadcast %143 : vector<8x8x1xf32> to vector<8x8x64xf32>
    %145 = arith.mulf %142, %144 : vector<8x8x64xf32>
    %cst_34 = arith.constant dense<0.000000e+00> : vector<8x64xf32>
    %146 = vector.multi_reduction <add>, %145, %cst_34 [1] : vector<8x8x64xf32> to vector<8x64xf32>
    %147 = vector.extract_strided_slice %71 {offsets = [24, 0], sizes = [8, 64], strides = [1, 1]} : vector<32x64xf32> to vector<8x64xf32>
    %148 = vector.extract_strided_slice %59 {offsets = [24, 0], sizes = [8, 64], strides = [1, 1]} : vector<32x64xf32> to vector<8x64xf32>
    %149 = vector.extract_strided_slice %73 {offsets = [24, 0], sizes = [8, 8], strides = [1, 1]} : vector<32x8xf32> to vector<8x8xf32>
    %150 = vector.extract_strided_slice %75 {offsets = [24, 0], sizes = [8, 8], strides = [1, 1]} : vector<32x8xf32> to vector<8x8xf32>
    %151 = vector.shape_cast %147 : vector<8x64xf32> to vector<8x1x64xf32>
    %152 = vector.shape_cast %79 : vector<8x64xf32> to vector<1x8x64xf32>
    %153 = vector.broadcast %151 : vector<8x1x64xf32> to vector<8x8x64xf32>
    %154 = vector.broadcast %152 : vector<1x8x64xf32> to vector<8x8x64xf32>
    %155 = arith.mulf %153, %154 : vector<8x8x64xf32>
    %156 = math.exp %155 : vector<8x8x64xf32>
    %157 = arith.mulf %147, %148 : vector<8x64xf32>
    %158 = vector.shape_cast %157 : vector<8x64xf32> to vector<8x1x64xf32>
    %159 = vector.shape_cast %149 : vector<8x8xf32> to vector<8x8x1xf32>
    %160 = vector.broadcast %158 : vector<8x1x64xf32> to vector<8x8x64xf32>
    %161 = vector.broadcast %159 : vector<8x8x1xf32> to vector<8x8x64xf32>
    %162 = arith.mulf %160, %161 : vector<8x8x64xf32>
    %163 = arith.mulf %156, %142 : vector<8x8x64xf32>
    %164 = arith.addf %163, %162 : vector<8x8x64xf32>
    %165 = vector.shape_cast %150 : vector<8x8xf32> to vector<8x8x1xf32>
    %166 = vector.broadcast %165 : vector<8x8x1xf32> to vector<8x8x64xf32>
    %167 = arith.mulf %164, %166 : vector<8x8x64xf32>
    %cst_35 = arith.constant dense<0.000000e+00> : vector<8x64xf32>
    %168 = vector.multi_reduction <add>, %167, %cst_35 [1] : vector<8x8x64xf32> to vector<8x64xf32>
    %169 = tpu.concatenate %102, %124, %146, %168 in 0 : vector<8x64xf32>, vector<8x64xf32>, vector<8x64xf32>, vector<8x64xf32> -> vector<32x64xf32>
    %c288 = arith.constant 288 : index
    %c0_36 = arith.constant 0 : index
    %170 = vector.load %arg3[%c288, %c0_36] : memref<360x128xf32, #tpu.memory_space<vmem>>, vector<1x64xf32>
    %171 = vector.broadcast %170 : vector<1x64xf32> to vector<32x64xf32>
    %172 = arith.mulf %59, %171 : vector<32x64xf32>
    %173 = arith.addf %169, %172 : vector<32x64xf32>
    %174 = arith.negf %12 : vector<32x64xf32>
    %175 = math.exp %174 : vector<32x64xf32>
    %cst_37 = arith.constant 1.000000e+00 : f32
    %176 = vector.broadcast %cst_37 : f32 to vector<32x64xf32>
    %177 = arith.addf %176, %175 : vector<32x64xf32>
    %178 = arith.divf %176, %177 : vector<32x64xf32>
    %179 = arith.mulf %12, %178 : vector<32x64xf32>
    %180 = arith.mulf %173, %179 : vector<32x64xf32>
    %c296 = arith.constant 296 : index
    %c0_38 = arith.constant 0 : index
    %181 = vector.load %arg3[%c296, %c0_38] : memref<360x128xf32, #tpu.memory_space<vmem>>, vector<64x32xf32>
    %cst_39 = arith.constant dense<0.000000e+00> : vector<32x32xf32>
    %182 = tpu.matmul %180, %181, %cst_39 {dimension_numbers = #tpu.dot_dimension_numbers<[1], [0], [0], [1], [0, 0, 1, 1], [], []>} : vector<32x64xf32>, vector<64x32xf32>, vector<32x32xf32> -> vector<32x32xf32>
    %183 = vector.extract_strided_slice %182 {offsets = [24, 0], sizes = [8, 32], strides = [1, 1]} : vector<32x32xf32> to vector<8x32xf32>
    %184 = vector.shape_cast %183 : vector<8x32xf32> to vector<1x8x32xf32>
    %185 = vector.shape_cast %184 : vector<1x8x32xf32> to vector<1x8x32xf32>
    %186 = vector.broadcast %185 : vector<1x8x32xf32> to vector<4x8x32xf32>
    %187 = vector.shape_cast %186 : vector<4x8x32xf32> to vector<32x32xf32>
    %c16 = arith.constant 16 : index
    %c0_40 = arith.constant 0 : index
    %188 = vector.load %arg2[%c16, %c0_40] : memref<120x128xf32, #tpu.memory_space<vmem>>, vector<32x1xf32>
    %189 = vector.broadcast %188 : vector<32x1xf32> to vector<32x32xf32>
    %190 = arith.mulf %189, %187 : vector<32x32xf32>
    %c48 = arith.constant 48 : index
    %c0_41 = arith.constant 0 : index
    %191 = vector.load %arg2[%c48, %c0_41] : memref<120x128xf32, #tpu.memory_space<vmem>>, vector<32x32xf32>
    %192 = arith.addf %190, %191 : vector<32x32xf32>
    %c0_42 = arith.constant 0 : index
    %c0_43 = arith.constant 0 : index
    %193 = vector.load %arg4[%c0_42, %c0_43] : memref<360x128xf32, #tpu.memory_space<vmem>>, vector<32x64xf32>
    %cst_44 = arith.constant dense<0.000000e+00> : vector<32x64xf32>
    %194 = tpu.matmul %192, %193, %cst_44 {dimension_numbers = #tpu.dot_dimension_numbers<[1], [0], [0], [1], [0, 0, 1, 1], [], []>} : vector<32x32xf32>, vector<32x64xf32>, vector<32x64xf32> -> vector<32x64xf32>
    %c32_45 = arith.constant 32 : index
    %c0_46 = arith.constant 0 : index
    %195 = vector.load %arg4[%c32_45, %c0_46] : memref<360x128xf32, #tpu.memory_space<vmem>>, vector<32x64xf32>
    %cst_47 = arith.constant dense<0.000000e+00> : vector<32x64xf32>
    %196 = tpu.matmul %192, %195, %cst_47 {dimension_numbers = #tpu.dot_dimension_numbers<[1], [0], [0], [1], [0, 0, 1, 1], [], []>} : vector<32x32xf32>, vector<32x64xf32>, vector<32x64xf32> -> vector<32x64xf32>
    %c64_48 = arith.constant 64 : index
    %c0_49 = arith.constant 0 : index
    %197 = vector.load %arg4[%c64_48, %c0_49] : memref<360x128xf32, #tpu.memory_space<vmem>>, vector<4x64xf32>
    %198 = vector.extract_strided_slice %197 {offsets = [3, 0], sizes = [1, 64], strides = [1, 1]} : vector<4x64xf32> to vector<1x64xf32>
    %199 = vector.broadcast %198 : vector<1x64xf32> to vector<32x64xf32>
    %200 = arith.mulf %194, %199 : vector<32x64xf32>
    %201 = tpu.iota {dimensions = array<i32: 0>} : vector<32x1xi32>
    %c8_i32_50 = arith.constant 8 : i32
    %202 = tpu.dynamic_rotate %194 by %c8_i32_50 dim 0 : vector<32x64xf32>, i32 -> vector<32x64xf32>
    %203 = vector.extract_strided_slice %197 {offsets = [2, 0], sizes = [1, 64], strides = [1, 1]} : vector<4x64xf32> to vector<1x64xf32>
    %204 = vector.broadcast %203 : vector<1x64xf32> to vector<32x64xf32>
    %205 = arith.mulf %202, %204 : vector<32x64xf32>
    %c8_i32_51 = arith.constant 8 : i32
    %206 = vector.broadcast %c8_i32_51 : i32 to vector<32x1xi32>
    %207 = arith.cmpi sge, %201, %206 : vector<32x1xi32>
    %cst_52 = arith.constant 0.000000e+00 : f32
    %208 = vector.shape_cast %207 : vector<32x1xi1> to vector<32x1xi1>
    %209 = vector.broadcast %208 : vector<32x1xi1> to vector<32x64xi1>
    %210 = vector.broadcast %cst_52 : f32 to vector<32x64xf32>
    %211 = arith.select %209, %205, %210 : vector<32x64xi1>, vector<32x64xf32>
    %212 = arith.addf %200, %211 : vector<32x64xf32>
    %c16_i32_53 = arith.constant 16 : i32
    %213 = tpu.dynamic_rotate %194 by %c16_i32_53 dim 0 : vector<32x64xf32>, i32 -> vector<32x64xf32>
    %214 = vector.extract_strided_slice %197 {offsets = [1, 0], sizes = [1, 64], strides = [1, 1]} : vector<4x64xf32> to vector<1x64xf32>
    %215 = vector.broadcast %214 : vector<1x64xf32> to vector<32x64xf32>
    %216 = arith.mulf %213, %215 : vector<32x64xf32>
    %c16_i32_54 = arith.constant 16 : i32
    %217 = vector.broadcast %c16_i32_54 : i32 to vector<32x1xi32>
    %218 = arith.cmpi sge, %201, %217 : vector<32x1xi32>
    %cst_55 = arith.constant 0.000000e+00 : f32
    %219 = vector.shape_cast %218 : vector<32x1xi1> to vector<32x1xi1>
    %220 = vector.broadcast %219 : vector<32x1xi1> to vector<32x64xi1>
    %221 = vector.broadcast %cst_55 : f32 to vector<32x64xf32>
    %222 = arith.select %220, %216, %221 : vector<32x64xi1>, vector<32x64xf32>
    %223 = arith.addf %212, %222 : vector<32x64xf32>
    %c24_i32_56 = arith.constant 24 : i32
    %224 = tpu.dynamic_rotate %194 by %c24_i32_56 dim 0 : vector<32x64xf32>, i32 -> vector<32x64xf32>
    %225 = vector.extract_strided_slice %197 {offsets = [0, 0], sizes = [1, 64], strides = [1, 1]} : vector<4x64xf32> to vector<1x64xf32>
    %226 = vector.broadcast %225 : vector<1x64xf32> to vector<32x64xf32>
    %227 = arith.mulf %224, %226 : vector<32x64xf32>
    %c24_i32_57 = arith.constant 24 : i32
    %228 = vector.broadcast %c24_i32_57 : i32 to vector<32x1xi32>
    %229 = arith.cmpi sge, %201, %228 : vector<32x1xi32>
    %cst_58 = arith.constant 0.000000e+00 : f32
    %230 = vector.shape_cast %229 : vector<32x1xi1> to vector<32x1xi1>
    %231 = vector.broadcast %230 : vector<32x1xi1> to vector<32x64xi1>
    %232 = vector.broadcast %cst_58 : f32 to vector<32x64xf32>
    %233 = arith.select %231, %227, %232 : vector<32x64xi1>, vector<32x64xf32>
    %234 = arith.addf %223, %233 : vector<32x64xf32>
    %c72_59 = arith.constant 72 : index
    %c0_60 = arith.constant 0 : index
    %235 = vector.load %arg4[%c72_59, %c0_60] : memref<360x128xf32, #tpu.memory_space<vmem>>, vector<1x64xf32>
    %236 = vector.broadcast %235 : vector<1x64xf32> to vector<32x64xf32>
    %237 = arith.addf %234, %236 : vector<32x64xf32>
    %238 = arith.negf %237 : vector<32x64xf32>
    %239 = math.exp %238 : vector<32x64xf32>
    %cst_61 = arith.constant 1.000000e+00 : f32
    %240 = vector.broadcast %cst_61 : f32 to vector<32x64xf32>
    %241 = arith.addf %240, %239 : vector<32x64xf32>
    %242 = arith.divf %240, %241 : vector<32x64xf32>
    %243 = arith.mulf %237, %242 : vector<32x64xf32>
    %c80_62 = arith.constant 80 : index
    %c0_63 = arith.constant 0 : index
    %244 = vector.load %arg4[%c80_62, %c0_63] : memref<360x128xf32, #tpu.memory_space<vmem>>, vector<64x64xf32>
    %cst_64 = arith.constant dense<0.000000e+00> : vector<32x64xf32>
    %245 = tpu.matmul %243, %244, %cst_64 {dimension_numbers = #tpu.dot_dimension_numbers<[1], [0], [0], [1], [0, 0, 1, 1], [], []>} : vector<32x64xf32>, vector<64x64xf32>, vector<32x64xf32> -> vector<32x64xf32>
    %c144_65 = arith.constant 144 : index
    %c0_66 = arith.constant 0 : index
    %246 = vector.load %arg4[%c144_65, %c0_66] : memref<360x128xf32, #tpu.memory_space<vmem>>, vector<1x64xf32>
    %247 = vector.broadcast %246 : vector<1x64xf32> to vector<32x64xf32>
    %248 = arith.addf %245, %247 : vector<32x64xf32>
    %cst_67 = arith.constant 2.000000e+01 : f32
    %249 = vector.broadcast %cst_67 : f32 to vector<32x64xf32>
    %250 = arith.cmpf ogt, %248, %249 : vector<32x64xf32>
    %cst_68 = arith.constant 2.000000e+01 : f32
    %251 = vector.broadcast %cst_68 : f32 to vector<32x64xf32>
    %252 = arith.minimumf %248, %251 : vector<32x64xf32>
    %253 = math.exp %252 : vector<32x64xf32>
    %254 = math.log1p %253 : vector<32x64xf32>
    %255 = arith.select %250, %248, %254 : vector<32x64xi1>, vector<32x64xf32>
    %c152_69 = arith.constant 152 : index
    %c0_70 = arith.constant 0 : index
    %256 = vector.load %arg4[%c152_69, %c0_70] : memref<360x128xf32, #tpu.memory_space<vmem>>, vector<64x8xf32>
    %cst_71 = arith.constant dense<0.000000e+00> : vector<32x8xf32>
    %257 = tpu.matmul %243, %256, %cst_71 {dimension_numbers = #tpu.dot_dimension_numbers<[1], [0], [0], [1], [0, 0, 1, 1], [], []>} : vector<32x64xf32>, vector<64x8xf32>, vector<32x8xf32> -> vector<32x8xf32>
    %c216_72 = arith.constant 216 : index
    %c0_73 = arith.constant 0 : index
    %258 = vector.load %arg4[%c216_72, %c0_73] : memref<360x128xf32, #tpu.memory_space<vmem>>, vector<64x8xf32>
    %cst_74 = arith.constant dense<0.000000e+00> : vector<32x8xf32>
    %259 = tpu.matmul %243, %258, %cst_74 {dimension_numbers = #tpu.dot_dimension_numbers<[1], [0], [0], [1], [0, 0, 1, 1], [], []>} : vector<32x64xf32>, vector<64x8xf32>, vector<32x8xf32> -> vector<32x8xf32>
    %c280_75 = arith.constant 280 : index
    %c0_76 = arith.constant 0 : index
    %260 = vector.load %arg4[%c280_75, %c0_76] : memref<360x128xf32, #tpu.memory_space<vmem>>, vector<8x64xf32>
    %261 = math.exp %260 : vector<8x64xf32>
    %cst_77 = arith.constant 0.000000e+00 : f32
    %262 = vector.broadcast %cst_77 : f32 to vector<8x64xf32>
    %263 = arith.subf %262, %261 : vector<8x64xf32>
    %cst_78 = arith.constant 0.000000e+00 : f32
    %264 = vector.broadcast %cst_78 : f32 to vector<8x8x64xf32>
    %265 = vector.extract_strided_slice %255 {offsets = [0, 0], sizes = [8, 64], strides = [1, 1]} : vector<32x64xf32> to vector<8x64xf32>
    %266 = vector.extract_strided_slice %243 {offsets = [0, 0], sizes = [8, 64], strides = [1, 1]} : vector<32x64xf32> to vector<8x64xf32>
    %267 = vector.extract_strided_slice %257 {offsets = [0, 0], sizes = [8, 8], strides = [1, 1]} : vector<32x8xf32> to vector<8x8xf32>
    %268 = vector.extract_strided_slice %259 {offsets = [0, 0], sizes = [8, 8], strides = [1, 1]} : vector<32x8xf32> to vector<8x8xf32>
    %269 = vector.shape_cast %265 : vector<8x64xf32> to vector<8x1x64xf32>
    %270 = vector.shape_cast %263 : vector<8x64xf32> to vector<1x8x64xf32>
    %271 = vector.broadcast %269 : vector<8x1x64xf32> to vector<8x8x64xf32>
    %272 = vector.broadcast %270 : vector<1x8x64xf32> to vector<8x8x64xf32>
    %273 = arith.mulf %271, %272 : vector<8x8x64xf32>
    %274 = math.exp %273 : vector<8x8x64xf32>
    %275 = arith.mulf %265, %266 : vector<8x64xf32>
    %276 = vector.shape_cast %275 : vector<8x64xf32> to vector<8x1x64xf32>
    %277 = vector.shape_cast %267 : vector<8x8xf32> to vector<8x8x1xf32>
    %278 = vector.broadcast %276 : vector<8x1x64xf32> to vector<8x8x64xf32>
    %279 = vector.broadcast %277 : vector<8x8x1xf32> to vector<8x8x64xf32>
    %280 = arith.mulf %278, %279 : vector<8x8x64xf32>
    %281 = arith.mulf %274, %264 : vector<8x8x64xf32>
    %282 = arith.addf %281, %280 : vector<8x8x64xf32>
    %283 = vector.shape_cast %268 : vector<8x8xf32> to vector<8x8x1xf32>
    %284 = vector.broadcast %283 : vector<8x8x1xf32> to vector<8x8x64xf32>
    %285 = arith.mulf %282, %284 : vector<8x8x64xf32>
    %cst_79 = arith.constant dense<0.000000e+00> : vector<8x64xf32>
    %286 = vector.multi_reduction <add>, %285, %cst_79 [1] : vector<8x8x64xf32> to vector<8x64xf32>
    %287 = vector.extract_strided_slice %255 {offsets = [8, 0], sizes = [8, 64], strides = [1, 1]} : vector<32x64xf32> to vector<8x64xf32>
    %288 = vector.extract_strided_slice %243 {offsets = [8, 0], sizes = [8, 64], strides = [1, 1]} : vector<32x64xf32> to vector<8x64xf32>
    %289 = vector.extract_strided_slice %257 {offsets = [8, 0], sizes = [8, 8], strides = [1, 1]} : vector<32x8xf32> to vector<8x8xf32>
    %290 = vector.extract_strided_slice %259 {offsets = [8, 0], sizes = [8, 8], strides = [1, 1]} : vector<32x8xf32> to vector<8x8xf32>
    %291 = vector.shape_cast %287 : vector<8x64xf32> to vector<8x1x64xf32>
    %292 = vector.shape_cast %263 : vector<8x64xf32> to vector<1x8x64xf32>
    %293 = vector.broadcast %291 : vector<8x1x64xf32> to vector<8x8x64xf32>
    %294 = vector.broadcast %292 : vector<1x8x64xf32> to vector<8x8x64xf32>
    %295 = arith.mulf %293, %294 : vector<8x8x64xf32>
    %296 = math.exp %295 : vector<8x8x64xf32>
    %297 = arith.mulf %287, %288 : vector<8x64xf32>
    %298 = vector.shape_cast %297 : vector<8x64xf32> to vector<8x1x64xf32>
    %299 = vector.shape_cast %289 : vector<8x8xf32> to vector<8x8x1xf32>
    %300 = vector.broadcast %298 : vector<8x1x64xf32> to vector<8x8x64xf32>
    %301 = vector.broadcast %299 : vector<8x8x1xf32> to vector<8x8x64xf32>
    %302 = arith.mulf %300, %301 : vector<8x8x64xf32>
    %303 = arith.mulf %296, %282 : vector<8x8x64xf32>
    %304 = arith.addf %303, %302 : vector<8x8x64xf32>
    %305 = vector.shape_cast %290 : vector<8x8xf32> to vector<8x8x1xf32>
    %306 = vector.broadcast %305 : vector<8x8x1xf32> to vector<8x8x64xf32>
    %307 = arith.mulf %304, %306 : vector<8x8x64xf32>
    %cst_80 = arith.constant dense<0.000000e+00> : vector<8x64xf32>
    %308 = vector.multi_reduction <add>, %307, %cst_80 [1] : vector<8x8x64xf32> to vector<8x64xf32>
    %309 = vector.extract_strided_slice %255 {offsets = [16, 0], sizes = [8, 64], strides = [1, 1]} : vector<32x64xf32> to vector<8x64xf32>
    %310 = vector.extract_strided_slice %243 {offsets = [16, 0], sizes = [8, 64], strides = [1, 1]} : vector<32x64xf32> to vector<8x64xf32>
    %311 = vector.extract_strided_slice %257 {offsets = [16, 0], sizes = [8, 8], strides = [1, 1]} : vector<32x8xf32> to vector<8x8xf32>
    %312 = vector.extract_strided_slice %259 {offsets = [16, 0], sizes = [8, 8], strides = [1, 1]} : vector<32x8xf32> to vector<8x8xf32>
    %313 = vector.shape_cast %309 : vector<8x64xf32> to vector<8x1x64xf32>
    %314 = vector.shape_cast %263 : vector<8x64xf32> to vector<1x8x64xf32>
    %315 = vector.broadcast %313 : vector<8x1x64xf32> to vector<8x8x64xf32>
    %316 = vector.broadcast %314 : vector<1x8x64xf32> to vector<8x8x64xf32>
    %317 = arith.mulf %315, %316 : vector<8x8x64xf32>
    %318 = math.exp %317 : vector<8x8x64xf32>
    %319 = arith.mulf %309, %310 : vector<8x64xf32>
    %320 = vector.shape_cast %319 : vector<8x64xf32> to vector<8x1x64xf32>
    %321 = vector.shape_cast %311 : vector<8x8xf32> to vector<8x8x1xf32>
    %322 = vector.broadcast %320 : vector<8x1x64xf32> to vector<8x8x64xf32>
    %323 = vector.broadcast %321 : vector<8x8x1xf32> to vector<8x8x64xf32>
    %324 = arith.mulf %322, %323 : vector<8x8x64xf32>
    %325 = arith.mulf %318, %304 : vector<8x8x64xf32>
    %326 = arith.addf %325, %324 : vector<8x8x64xf32>
    %327 = vector.shape_cast %312 : vector<8x8xf32> to vector<8x8x1xf32>
    %328 = vector.broadcast %327 : vector<8x8x1xf32> to vector<8x8x64xf32>
    %329 = arith.mulf %326, %328 : vector<8x8x64xf32>
    %cst_81 = arith.constant dense<0.000000e+00> : vector<8x64xf32>
    %330 = vector.multi_reduction <add>, %329, %cst_81 [1] : vector<8x8x64xf32> to vector<8x64xf32>
    %331 = vector.extract_strided_slice %255 {offsets = [24, 0], sizes = [8, 64], strides = [1, 1]} : vector<32x64xf32> to vector<8x64xf32>
    %332 = vector.extract_strided_slice %243 {offsets = [24, 0], sizes = [8, 64], strides = [1, 1]} : vector<32x64xf32> to vector<8x64xf32>
    %333 = vector.extract_strided_slice %257 {offsets = [24, 0], sizes = [8, 8], strides = [1, 1]} : vector<32x8xf32> to vector<8x8xf32>
    %334 = vector.extract_strided_slice %259 {offsets = [24, 0], sizes = [8, 8], strides = [1, 1]} : vector<32x8xf32> to vector<8x8xf32>
    %335 = vector.shape_cast %331 : vector<8x64xf32> to vector<8x1x64xf32>
    %336 = vector.shape_cast %263 : vector<8x64xf32> to vector<1x8x64xf32>
    %337 = vector.broadcast %335 : vector<8x1x64xf32> to vector<8x8x64xf32>
    %338 = vector.broadcast %336 : vector<1x8x64xf32> to vector<8x8x64xf32>
    %339 = arith.mulf %337, %338 : vector<8x8x64xf32>
    %340 = math.exp %339 : vector<8x8x64xf32>
    %341 = arith.mulf %331, %332 : vector<8x64xf32>
    %342 = vector.shape_cast %341 : vector<8x64xf32> to vector<8x1x64xf32>
    %343 = vector.shape_cast %333 : vector<8x8xf32> to vector<8x8x1xf32>
    %344 = vector.broadcast %342 : vector<8x1x64xf32> to vector<8x8x64xf32>
    %345 = vector.broadcast %343 : vector<8x8x1xf32> to vector<8x8x64xf32>
    %346 = arith.mulf %344, %345 : vector<8x8x64xf32>
    %347 = arith.mulf %340, %326 : vector<8x8x64xf32>
    %348 = arith.addf %347, %346 : vector<8x8x64xf32>
    %349 = vector.shape_cast %334 : vector<8x8xf32> to vector<8x8x1xf32>
    %350 = vector.broadcast %349 : vector<8x8x1xf32> to vector<8x8x64xf32>
    %351 = arith.mulf %348, %350 : vector<8x8x64xf32>
    %cst_82 = arith.constant dense<0.000000e+00> : vector<8x64xf32>
    %352 = vector.multi_reduction <add>, %351, %cst_82 [1] : vector<8x8x64xf32> to vector<8x64xf32>
    %353 = tpu.concatenate %286, %308, %330, %352 in 0 : vector<8x64xf32>, vector<8x64xf32>, vector<8x64xf32>, vector<8x64xf32> -> vector<32x64xf32>
    %c288_83 = arith.constant 288 : index
    %c0_84 = arith.constant 0 : index
    %354 = vector.load %arg4[%c288_83, %c0_84] : memref<360x128xf32, #tpu.memory_space<vmem>>, vector<1x64xf32>
    %355 = vector.broadcast %354 : vector<1x64xf32> to vector<32x64xf32>
    %356 = arith.mulf %243, %355 : vector<32x64xf32>
    %357 = arith.addf %353, %356 : vector<32x64xf32>
    %358 = arith.negf %196 : vector<32x64xf32>
    %359 = math.exp %358 : vector<32x64xf32>
    %cst_85 = arith.constant 1.000000e+00 : f32
    %360 = vector.broadcast %cst_85 : f32 to vector<32x64xf32>
    %361 = arith.addf %360, %359 : vector<32x64xf32>
    %362 = arith.divf %360, %361 : vector<32x64xf32>
    %363 = arith.mulf %196, %362 : vector<32x64xf32>
    %364 = arith.mulf %357, %363 : vector<32x64xf32>
    %c296_86 = arith.constant 296 : index
    %c0_87 = arith.constant 0 : index
    %365 = vector.load %arg4[%c296_86, %c0_87] : memref<360x128xf32, #tpu.memory_space<vmem>>, vector<64x32xf32>
    %cst_88 = arith.constant dense<0.000000e+00> : vector<32x32xf32>
    %366 = tpu.matmul %364, %365, %cst_88 {dimension_numbers = #tpu.dot_dimension_numbers<[1], [0], [0], [1], [0, 0, 1, 1], [], []>} : vector<32x64xf32>, vector<64x32xf32>, vector<32x32xf32> -> vector<32x32xf32>
    %367 = vector.extract_strided_slice %366 {offsets = [16, 0], sizes = [16, 32], strides = [1, 1]} : vector<32x32xf32> to vector<16x32xf32>
    %c80_89 = arith.constant 80 : index
    %c0_90 = arith.constant 0 : index
    %368 = vector.load %arg2[%c80_89, %c0_90] : memref<120x128xf32, #tpu.memory_space<vmem>>, vector<32x8xf32>
    %cst_91 = arith.constant dense<0.000000e+00> : vector<16x8xf32>
    %369 = tpu.matmul %367, %368, %cst_91 {dimension_numbers = #tpu.dot_dimension_numbers<[1], [0], [0], [1], [0, 0, 1, 1], [], []>} : vector<16x32xf32>, vector<32x8xf32>, vector<16x8xf32> -> vector<16x8xf32>
    %c112 = arith.constant 112 : index
    %c0_92 = arith.constant 0 : index
    %370 = vector.load %arg2[%c112, %c0_92] : memref<120x128xf32, #tpu.memory_space<vmem>>, vector<1x8xf32>
    %371 = vector.broadcast %370 : vector<1x8xf32> to vector<16x8xf32>
    %372 = arith.addf %369, %371 : vector<16x8xf32>
    %c0_93 = arith.constant 0 : index
    %c0_94 = arith.constant 0 : index
    %c0_95 = arith.constant 0 : index
    %373 = vector.load %arg5[%c0_93, %c0_94, %c0_95] : memref<1x16x8xf32, #tpu.memory_space<vmem>>, vector<1x16x8xf32>
    %374 = vector.shape_cast %373 : vector<1x16x8xf32> to vector<16x8xf32>
    %375 = vector.shape_cast %372 : vector<16x8xf32> to vector<1x16x8xf32>
    tpu.vector_store %arg5[%c0_93, %c0_94, %c0_95], %375 {strides = array<i32>} : memref<1x16x8xf32, #tpu.memory_space<vmem>>, vector<1x16x8xf32>,
    return
  }
  func.func @transform_0(%arg0: i32) -> (i32, i32, i32) {
    %c0_i32 = arith.constant 0 : i32
    %c0_i32_0 = arith.constant 0 : i32
    %c0_i32_1 = arith.constant 0 : i32
    return %arg0, %c0_i32, %c0_i32_0 : i32, i32, i32
  }
  func.func @transform_1(%arg0: i32) -> (i32, i32) {
    %c0_i32 = arith.constant 0 : i32
    %c0_i32_0 = arith.constant 0 : i32
    %c0_i32_1 = arith.constant 0 : i32
    return %c0_i32, %c0_i32_0 : i32, i32
  }
  func.func @transform_2(%arg0: i32) -> (i32, i32) {
    %c0_i32 = arith.constant 0 : i32
    %c0_i32_0 = arith.constant 0 : i32
    %c0_i32_1 = arith.constant 0 : i32
    return %c0_i32, %c0_i32_0 : i32, i32
  }
  func.func @transform_3(%arg0: i32) -> (i32, i32) {
    %c0_i32 = arith.constant 0 : i32
    %c0_i32_0 = arith.constant 0 : i32
    %c0_i32_1 = arith.constant 0 : i32
    return %c0_i32, %c0_i32_0 : i32, i32
  }
  func.func @transform_4(%arg0: i32) -> (i32, i32, i32) {
    %c0_i32 = arith.constant 0 : i32
    %c0_i32_0 = arith.constant 0 : i32
    %c0_i32_1 = arith.constant 0 : i32
    return %arg0, %c0_i32, %c0_i32_0 : i32, i32, i32
  }
}

</mosaic_0001>

<bundles_post_ra>
// kernel: model_forward.1
= control target key start
LH: loop header
LB: loop body
LE: loop exit
PB: predicated region body
PF: predicated region fallthrough
CT: control target
= control target key end

     0   :  { %s6410_s15 = smov 0   ;;  %s8779_s0 = inlined_call_operand.vmem [shape: f32[2,32,8], index: 0, kind: input, shape index: {}]   ;;  %s8780_s1 = inlined_call_operand.vmem [shape: f32[120,128], index: 1, kind: input, shape index: {}]   ;;  %s8781_s2 = inlined_call_operand.vmem [shape: f32[360,128], index: 2, kind: input, shape index: {}]   ;;  %s8782_s3 = inlined_call_operand.vmem [shape: f32[360,128], index: 3, kind: input, shape index: {}]   ;;  %s8783_s4 = inlined_call_operand.vmem [shape: f32[2,16,8], index: 4, kind: output, shape index: {}]  }
   0x1 LB: > { %s5486_s16 = sadd.s32 4294967295, %s6381_s15   ;;  %p5490_p0 = scmp.ge.s32.totalorder %s6381_s15, 1  ;;  %s6381_s15 = sphi %s6410_s15, %s14_s15  }
   0x2   : > { %p162_p1 = scmp.lt.s32.totalorder %s6381_s15, 3 }
   0x4   : > { %p163_p2 = pnand %p5490_p0, %p162_p1 }
   0x6   : > { %166 = sbr.rel (%p163_p2) target bundleno = 2342 (0x926), region = 36 }
   0xd   : > { %v202_v0 = vld [vmem:[%s8780_s1] sm:$0xff]  ;;  %p188_p3 = scmp.lt.s32.totalorder %s5486_s16, 1  ;;  %v311_v2 = vld [vmem:[%s8781_s2 + $0x8] sm:$0xff]  ;;  %vm208_vm0 = vcmask 64512   ;;  %v312_v11 = vld [vmem:[%s8781_s2 + $0x10] sm:$0xff]  ;;  %vm314_vm1 = vcmask 261120   ;;  %v502_v57 = vlaneseq }
   0xe   : > { %v310_v1 = vld [vmem:[%s8781_s2] sm:$0xff]  ;;  %5716 = vmatprep.subr.mxu0 %v202_v0  ;;  %v413_v5 = vld [vmem:[%s8781_s2 + $0x28] sm:$0xff]  ;;  %v313_v12 = vld [vmem:[%s8781_s2 + $0x18] sm:$0xff]  ;;  %vm649_vm2 = vcmask 523264   ;;  %vm2621_vm11 = vcmask 1041409   ;;  %vm2623_vm12 = vcmask 1042434  }
   0xf   : > { %v5967_v3 = vpack.c.bf16 %v311_v2, %v310_v1  ;;  %v412_v4 = vld [vmem:[%s8781_s2 + $0x20] sm:$0xff]  ;;  %5717 = vmatpush3.msra.mxu0 %v202_v0  ;;  %s8914_s16 = smov (!%p188_p3, %s5486_s16), 1  ;;  %v5971_v13 = vpack.c.bf16 %v313_v12, %v312_v11  ;;  %v414_v14 = vld [vmem:[%s8781_s2 + $0x30] sm:$0xff]  ;;  %v415_v15 = vld [vmem:[%s8781_s2 + $0x38] sm:$0xff]  ;;  %v6523_v58 = vshrl.u32 %v502_v57, 7  ;;  %vm2625_vm13 = vcmask 1043459  }
  0x10   : > { %v5975_v6 = vpack.c.bf16 %v413_v5, %v412_v4  ;;  %s5575_s27 = sshll.u32 %s8914_s16, 5  ;;  %v5979_v16 = vpack.c.bf16 %v415_v15, %v414_v14  ;;  %v5495_v17 = vld [vmem:[%s8780_s1 + $0x8] ss:$0 sm:$0xff]  ;;  %v636_v30 = vld [vmem:[%s8781_s2 + $0x50] sm:$0xff]  ;;  %v637_v31 = vld [vmem:[%s8781_s2 + $0x58] sm:$0xff]  ;;  %vm2627_vm14 = vcmask 1044484  }
  0x11   : > { %5968 = vmatprep.subr.bf16.mxu1 %v5967_v3  ;;  %s192_s30 = scalar_lea.vmem %s8779_s0, %s5575_s27  ;;  %v5983_v32 = vpack.c.bf16 %v637_v31, %v636_v30  ;;  %v803_v33 = vld [vmem:[%s8781_s2 + $0x98] sm:$0xff]  ;;  %v804_v34 = vld [vmem:[%s8781_s2 + $0xa0] sm:$0xff]  ;;  %v639_v37 = vld [vmem:[%s8781_s2 + $0x68] sm:$0xff]  ;;  %v6526_v59 = vsub.s32 3, %v6523_v58  ;;  %v6532_v61 = vsub.s32 2, %v6523_v58  ;;  %v6537_v0 = vsub.s32 1, %v6523_v58 }
  0x12   : > { %5976 = vmatprep.subr.bf16.mxu0 %v5975_v6  ;;  %5970 = vmatpush3.bf16.msra.mxu1 %v5967_v3  ;;  %v198_v7 = vld [vmem:[%s192_s30] sm:$0xff]  ;;  %v199_v8 = vld [vmem:[%s192_s30 + $0x8] sm:$0xff]  ;;  %v200_v9 = vld [vmem:[%s192_s30 + $0x10] sm:$0xff]  ;;  %v5999_v35 = vpack.c.bf16 %v804_v34, %v803_v33  ;;  %v6542_v4 = vsub.s32 0, %v6523_v58  ;;  %vm2629_vm15 = vcmask 1045509   ;;  %s5576_s11 = sshll.u32 %s8914_s16, 4 }
  0x13   : > { %5718 = vmatprep.mubr.msk.f32.mxu0 %vm208_vm0, %v198_v7  ;;  %v201_v10 = vld [vmem:[%s192_s30 + $0x18] sm:$0xff]  ;;  %5972 = vmatprep.subr.bf16.mxu1 %v5971_v13  ;;  %v638_v36 = vld [vmem:[%s8781_s2 + $0x60] sm:$0xff]  ;;  %v805_v39 = vld [vmem:[%s8781_s2 + $0xa8] sm:$0xff]  ;;  %8812 = vst [vmem:[#allocation2_spill] sm:$0xff] %v6526_v59  ;;  %s197_s18 = scalar_lea.vmem %s8783_s4, %s5576_s11 }
  0x14   : > { %5719 = vmatmul.mubr.msk.f32.vlgmr.msra.gmra.mrb[0].mxu0 %vm208_vm0, %v199_v8  ;;  %v5987_v38 = vpack.c.bf16 %v639_v37, %v638_v36  ;;  %v806_v40 = vld [vmem:[%s8781_s2 + $0xb0] sm:$0xff]  ;;  %v641_v43 = vld [vmem:[%s8781_s2 + $0x78] sm:$0xff]  ;;  %v808_v46 = vld [vmem:[%s8781_s2 + $0xc0] sm:$0xff]  ;;  %8813 = vst [vmem:[#allocation3_spill] sm:$0xff] %v6532_v61 }
  0x15   : > { %5721 = vmatprep.mubr.msk.f32.mxu0 %vm208_vm0, %v200_v9  ;;  %5978 = vmatpush3.bf16.msra.mxu0 %v5975_v6  ;;  %v6003_v41 = vpack.c.bf16 %v806_v40, %v805_v39  ;;  %v640_v42 = vld [vmem:[%s8781_s2 + $0x70] sm:$0xff]  ;;  %v807_v45 = vld [vmem:[%s8781_s2 + $0xb8] sm:$0xff]  ;;  %v642_v48 = vld [vmem:[%s8781_s2 + $0x80] sm:$0xff]  ;;  %8814 = vst [vmem:[#allocation4_spill] sm:$0xff] %v6537_v0 }
  0x16   : > { %5980 = vmatprep.subr.bf16.mxu0 %v5979_v16  ;;  %5974 = vmatpush3.bf16.msra.mxu1 %v5971_v13  ;;  %v5991_v44 = vpack.c.bf16 %v641_v43, %v640_v42  ;;  %v6007_v47 = vpack.c.bf16 %v808_v46, %v807_v45  ;;  %v643_v49 = vld [vmem:[%s8781_s2 + $0x88] sm:$0xff]  ;;  %v810_v52 = vld [vmem:[%s8781_s2 + $0xd0] sm:$0xff]  ;;  %v896_v54 = vld [vmem:[%s8781_s2 + $0xd8] sm:$0xff] }
  0x17   : > { %5984 = vmatprep.subr.bf16.mxu1 %v5983_v32  ;;  %v5995_v50 = vpack.c.bf16 %v643_v49, %v642_v48  ;;  %v809_v51 = vld [vmem:[%s8781_s2 + $0xc8] sm:$0xff]  ;;  %v897_v55 = vld [vmem:[%s8781_s2 + $0xe0] sm:$0xff] }
  0x18   : > { %5722 = vmatmul.mubr.msk.f32.gmra.mrb[2].mxu0 %vm208_vm0, %v201_v10  ;;  %v6011_v53 = vpack.c.bf16 %v810_v52, %v809_v51  ;;  %v6520_v56 = vpack.c.bf16 %v897_v55, %v896_v54  ;;  %v501_v60 = vld [vmem:[%s8781_s2 + $0x40] sm:$0xf]  ;;  %v5508_v6 = vld [vmem:[%s8781_s2 + $0x48] ss:$0 sm:$0xff]  ;;  %v900_v52 = vld [vmem:[%s8781_s2 + $0xf8] sm:$0xff] }
  0x19   : > { %5982 = vmatpush3.bf16.msra.mxu0 %v5979_v16  ;;  %v505_v62 = vrot.slane %v501_v60, %v6526_v59  ;;  %v518_v63 = vrot.slane %v501_v60, %v6532_v61  ;;  %v546_v10 = vrot.slane %v501_v60, %v6537_v0  ;;  %v574_v16 = vrot.slane %v501_v60, %v6542_v4  ;;  %v898_v46 = vld [vmem:[%s8781_s2 + $0xe8] sm:$0xff]  ;;  %v903_v60 = vld [vmem:[%s8781_s2 + $0x110] sm:$0xff] }
  0x1a   : > { %6000 = vmatprep.subr.bf16.mxu0 %v5999_v35  ;;  %v902_v57 = vld [vmem:[%s8781_s2 + $0x108] sm:$0xff] }
  0xe7   : > { %v5720_v18 = vpop.f32.mrb[0].mxu0 }
  0xe8   : > { %v293_v19 = vadd.f32 %v5720_v18, %v5495_v17  ;;  %v287_v20 = vpop.f32.mrb[1].mxu0 }
  0xe9   : > { %v288_v21 = vadd.f32 %v5495_v17, %v287_v20 }
  0xea   : > { %v307_v24 = vmax.f32 %v293_v19, 0.0 }
  0xeb   : > { %v306_v22 = vmax.f32 %v288_v21, 0.0  ;;  %v5723_v23 = vpop.f32.mrb[2].mxu0 }
  0xec   : > { %v303_v25 = vadd.f32 %v5723_v23, %v5495_v17  ;;  %v297_v26 = vpop.f32.mrb[3].mxu0 }
  0xed   : > { %v298_v27 = vadd.f32 %v5495_v17, %v297_v26  ;;  %5732 = vmatprep.mubr.msk.f32.mxu1 %vm314_vm1, %v306_v22  ;;  %5746 = vmatprep.mubr.msk.f32.mxu0 %vm314_vm1, %v306_v22 }
  0xee   : > { %v309_v28 = vmax.f32 %v303_v25, 0.0  ;;  %5733 = vmatmul.mubr.msk.f32.vlgmr.msra.gmra.mrb[0].mxu1 %vm314_vm1, %v307_v24  ;;  %5747 = vmatmul.mubr.msk.f32.vlgmr.msra.gmra.mrb[4].mxu0 %vm314_vm1, %v307_v24 }
  0xef   : > { %v308_v29 = vmax.f32 %v298_v27, 0.0  ;;  %5986 = vmatpush3.bf16.msra.mxu1 %v5983_v32  ;;  %6002 = vmatpush3.bf16.msra.mxu0 %v5999_v35 }
  0xf0   : > { %5988 = vmatprep.subr.bf16.mxu1 %v5987_v38  ;;  %6004 = vmatprep.subr.bf16.mxu0 %v6003_v41 }
  0xf1   : > { %5735 = vmatprep.mubr.msk.f32.mxu1 %vm314_vm1, %v308_v29  ;;  %5749 = vmatprep.mubr.msk.f32.mxu0 %vm314_vm1, %v308_v29 }
  0xf2   : > { %5736 = vmatmul.mubr.msk.f32.gmra.mrb[2].mxu1 %vm314_vm1, %v309_v28  ;;  %5750 = vmatmul.mubr.msk.f32.gmra.mrb[6].mxu0 %vm314_vm1, %v309_v28 }
  0xf3   : > { %5990 = vmatpush3.bf16.msra.mxu1 %v5987_v38  ;;  %6006 = vmatpush3.bf16.msra.mxu0 %v6003_v41 }
  0xf4   : > { %5992 = vmatprep.subr.bf16.mxu1 %v5991_v44  ;;  %6008 = vmatprep.subr.bf16.mxu0 %v6007_v47 }
  0xf7   : > { %5994 = vmatpush3.bf16.msra.mxu1 %v5991_v44  ;;  %6010 = vmatpush3.bf16.msra.mxu0 %v6007_v47  ;;  %v899_v47 = vld [vmem:[%s8781_s2 + $0xf0] sm:$0xff] }
  0xf8   : > { %5996 = vmatprep.subr.bf16.mxu1 %v5995_v50  ;;  %6012 = vmatprep.subr.bf16.mxu0 %v6011_v53  ;;  %v6019_v51 = vpack.c.bf16 %v899_v47, %v898_v46 }
  0xfb   : > { %5998 = vmatpush3.bf16.msra.mxu1 %v5995_v50  ;;  %6014 = vmatpush3.bf16.msra.mxu0 %v6011_v53  ;;  %v901_v53 = vld [vmem:[%s8781_s2 + $0x100] sm:$0xff] }
  0xfc   : > { %6016 = vmatprep.subr.bf16.mxu1 %v6520_v56  ;;  %v6023_v54 = vpack.c.bf16 %v901_v53, %v900_v52 }
 0x1c1   : > { %v5734_v1 = vpop.f32.mrb[0].mxu1  ;;  %v6539_v2 = vpop.f32.mrb[4].mxu0 }
 0x1c2   : > { %8815 = vst [vmem:[#allocation5_spill] sm:$0xff] %v6539_v2  ;;  %v507_v3 = vmul.f32 %v5734_v1, %v505_v62  ;;  %v393_v5 = vpop.f32.mrb[1].mxu1  ;;  %v6547_v7 = vpop.f32.mrb[5].mxu0  ;;  %v521_v15 = vmul.f32 %v5734_v1, %v518_v63  ;;  %v550_v24 = vmul.f32 %v5734_v1, %v546_v10 }
 0x1c3   : > { %8816 = vst [vmem:[#allocation6_spill] sm:$0xff] %v6547_v7  ;;  %v506_v8 = vmul.f32 %v505_v62, %v393_v5  ;;  %v520_v9 = vmul.f32 %v518_v63, %v393_v5  ;;  %v549_v25 = vmul.f32 %v546_v10, %v393_v5  ;;  %v578_v29 = vmul.f32 %v574_v16, %v393_v5 }
 0x1c5   : > { %v540_v11 = vadd.f32 %v520_v9, %v507_v3  ;;  %v604_v12 = vadd.f32 %v5508_v6, %v506_v8  ;;  %v5737_v13 = vpop.f32.mrb[2].mxu1  ;;  %v6550_v14 = vpop.f32.mrb[6].mxu0 }
 0x1c6   : > { %8817 = vst [vmem:[#allocation7_spill] sm:$0xff] %v6550_v14  ;;  %v509_v17 = vmul.f32 %v5737_v13, %v505_v62  ;;  %v403_v18 = vpop.f32.mrb[3].mxu1  ;;  %v6553_v19 = vpop.f32.mrb[7].mxu0 }
 0x1c7   : > { %8818 = vst [vmem:[#allocation8_spill] sm:$0xff] %v6553_v19  ;;  %v605_v20 = vadd.f32 %v5508_v6, %v540_v11  ;;  %v5509_v21 = vmul.f32 -1.442695, %v604_v12  ;;  %v508_v22 = vmul.f32 %v505_v62, %v403_v18  ;;  %v522_v23 = vmul.f32 %v518_v63, %v403_v18 }
 0x1c8   : > { %v6609_v11 = vsub.s32 4, %v6523_v58 }
 0x1c9   : > { %6147 = vpow2.f32 %v5509_v21  ;;  %v5510_v26 = vmul.f32 -1.442695, %v605_v20  ;;  %v541_v27 = vadd.f32 %v521_v15, %v508_v22  ;;  %v542_v28 = vadd.f32 %v522_v23, %v509_v17 }
 0x1ca   : > { %8823 = vst [vmem:[#allocation13_spill] sm:$0xff] %v6609_v11  ;;  %v6614_v15 = vsub.s32 6, %v6523_v58  ;;  %v6619_v21 = vsub.s32 5, %v6523_v58  ;;  %v6622_v22 = vsub.s32 7, %v6523_v58 }
 0x1cb   : > { %6149 = vpow2.f32 %v5510_v26  ;;  %v569_v30 = vadd.f32 %v549_v25, %v541_v27  ;;  %v570_v31 = vadd.f32 %v550_v24, %v542_v28 }
 0x1cc   : > { %8824 = vst [vmem:[#allocation14_spill] sm:$0xff] %v6614_v15  ;;  %8825 = vst [vmem:[#allocation15_spill] sm:$0xff] %v6619_v21 }
 0x1cd   : > { %v598_v32 = vadd.f32 %v578_v29, %v570_v31  ;;  %v606_v33 = vadd.f32 %v5508_v6, %v569_v30  ;;  %8826 = vst [vmem:[#allocation16_spill] sm:$0xff] %v6622_v22 }
 0x1cf   : > { %v607_v34 = vadd.f32 %v5508_v6, %v598_v32  ;;  %v5511_v35 = vmul.f32 -1.442695, %v606_v33 }
 0x1d1   : > { %v5512_v36 = vmul.f32 -1.442695, %v607_v34  ;;  %6151 = vpow2.f32 %v5511_v35  ;;  %v5513_v35 = vld [vmem:[%s8781_s2 + $0x90] ss:$0 sm:$0xff] }
 0x1d3   : > { %v6148_v37 = vpop.eup %6147  ;;  %6153 = vpow2.f32 %v5512_v36 }
 0x1d4   : > { %v620_v38 = vadd.f32 1.0, %v6148_v37 }
 0x1d5   : > { %v6150_v39 = vpop.eup %6149 }
 0x1d6   : > { %v621_v40 = vadd.f32 1.0, %v6150_v39  ;;  %6155 = vrcp.f32 %v620_v38 }
 0x1d8   : > { %6157 = vrcp.f32 %v621_v40 }
 0x1db   : > { %v6152_v41 = vpop.eup %6151 }
 0x1dc   : > { %v622_v42 = vadd.f32 1.0, %v6152_v41 }
 0x1dd   : > { %v6154_v43 = vpop.eup %6153 }
 0x1de   : > { %v623_v44 = vadd.f32 1.0, %v6154_v43  ;;  %6159 = vrcp.f32 %v622_v42 }
 0x1e0   : > { %v6156_v45 = vpop.eup %6155  ;;  %6161 = vrcp.f32 %v623_v44 }
 0x1e1   : > { %v6561_v48 = vmul.f32 %v6156_v45, %v604_v12 }
 0x1e2   : > { %v6158_v49 = vpop.eup %6157 }
 0x1e3   : > { %8819 = vst [vmem:[#allocation9_spill] sm:$0xff] %v6561_v48  ;;  %v6563_v50 = vmul.f32 %v6158_v49, %v605_v20  ;;  %5768 = vmatprep.mubr.msk.f32.mxu1 %vm649_vm2, %v6561_v48  ;;  %5790 = vmatprep.mubr.msk.f32.mxu0 %vm649_vm2, %v6561_v48 }
 0x1e5   : > { %8820 = vst [vmem:[#allocation10_spill] sm:$0xff] %v6563_v50  ;;  %5769 = vmatmul.mubr.msk.f32.vlgmr.msra.gmra.mrb[4].mxu1 %vm649_vm2, %v6563_v50  ;;  %5791 = vmatmul.mubr.msk.f32.vlgmr.msra.gmra.mrb[8].mxu0 %vm649_vm2, %v6563_v50 }
 0x1e6   : > { %6018 = vmatpush3.bf16.msra.mxu1 %v6520_v56  ;;  %v6027_v56 = vpack.c.bf16 %v903_v60, %v902_v57 }
 0x1e7   : > { %6020 = vmatprep.subr.bf16.mxu1 %v6019_v51 }
 0x1e8   : > { %v6160_v55 = vpop.eup %6159 }
 0x1e9   : > { %v6586_v62 = vmul.f32 %v6160_v55, %v606_v33 }
 0x1ea   : > { %6022 = vmatpush3.bf16.msra.mxu1 %v6019_v51  ;;  %v6162_v63 = vpop.eup %6161 }
 0x1eb   : > { %8821 = vst [vmem:[#allocation11_spill] sm:$0xff] %v6586_v62  ;;  %6024 = vmatprep.subr.bf16.mxu1 %v6023_v54  ;;  %v6588_v1 = vmul.f32 %v6162_v63, %v607_v34  ;;  %5771 = vmatprep.mubr.msk.f32.mxu1 %vm649_vm2, %v6586_v62 }
 0x1ec   : > { %5793 = vmatprep.mubr.msk.f32.mxu0 %vm649_vm2, %v6586_v62 }
 0x1ed   : > { %8822 = vst [vmem:[#allocation12_spill] sm:$0xff] %v6588_v1  ;;  %5772 = vmatmul.mubr.msk.f32.gmra.mrb[6].mxu1 %vm649_vm2, %v6588_v1  ;;  %5794 = vmatmul.mubr.msk.f32.gmra.mrb[10].mxu0 %vm649_vm2, %v6588_v1 }
 0x1ee   : > { %6026 = vmatpush3.bf16.msra.mxu1 %v6023_v54  ;;  %5812 = vmatprep.mubr.msk.f32.mxu1 %vm649_vm2, %v6561_v48 }
 0x1ef   : > { %6028 = vmatprep.subr.bf16.mxu1 %v6027_v56 }
 0x1f2   : > { %6030 = vmatpush3.bf16.msra.mxu1 %v6027_v56 }
 0x1f5   : > { %5813 = vmatmul.mubr.msk.f32.vlgmr.msra.gmra.mrb[8].mxu1 %vm649_vm2, %v6563_v50 }
 0x1f6   : > { %5815 = vmatprep.mubr.msk.f32.mxu1 %vm649_vm2, %v6586_v62 }
 0x1f9   : > { %5816 = vmatmul.mubr.msk.f32.gmra.mrb[10].mxu1 %vm649_vm2, %v6588_v1 }
 0x2b8   : > { %v5770_v3 = vpop.f32.mrb[4].mxu1  ;;  %v5792_v5 = vpop.f32.mrb[8].mxu0 }
 0x2b9   : > { %v728_v6 = vpop.f32.mrb[5].mxu1  ;;  %v877_v8 = vpop.f32.mrb[9].mxu0  ;;  %v1573_v9 = vrot.slane %v5792_v5, %v6537_v0  ;;  %v1566_v10 = vrot.slane %v5792_v5, %v6542_v4  ;;  %v1580_v12 = vrot.slane %v5792_v5, %v6532_v61  ;;  %v1594_v13 = vrot.slane %v5792_v5, %v6609_v11 }
 0x2ba   : > { %v1587_v18 = vrot.slane %v5792_v5, %v6526_v59  ;;  %v1608_v20 = vrot.slane %v5792_v5, %v6614_v15  ;;  %v1601_v25 = vrot.slane %v5792_v5, %v6619_v21  ;;  %v1615_v26 = vrot.slane %v5792_v5, %v6622_v22 }
 0x2bb   : > { %1575 = vbcast.lane.b32.xlu1 %v1573_v9, 256  ;;  %1568 = vbcast.lane.b32.xlu0 %v1566_v10, 256  ;;  %v1175_v28 = vrot.slane %v877_v8, %v6532_v61  ;;  %v1161_v29 = vrot.slane %v877_v8, %v6542_v4  ;;  %v1182_v32 = vrot.slane %v877_v8, %v6526_v59 }
 0x2bc   : > { %v1168_v33 = vrot.slane %v877_v8, %v6537_v0  ;;  %v1196_v36 = vrot.slane %v877_v8, %v6619_v21  ;;  %v1189_v37 = vrot.slane %v877_v8, %v6609_v11  ;;  %v6645_v38 = vadd.f32 %v5770_v3, %v5513_v35 }
 0x2bd   : > { %v1203_v39 = vrot.slane %v877_v8, %v6614_v15  ;;  %v6650_v42 = vadd.f32 %v5513_v35, %v728_v6  ;;  %v1210_v43 = vrot.slane %v877_v8, %v6622_v22 }
 0x2be   : > { %v752_v41 = vmin.f32 %v6645_v38, 20.0  ;;  %vm748_vm4 = vcmp.gt.f32.partialorder %v6645_v38, 20.0 }
 0x2bf   : > { %1582 = vbcast.lane.b32.xlu1 %v1580_v12, 256  ;;  %1596 = vbcast.lane.b32.xlu0 %v1594_v13, 256  ;;  %v751_v46 = vmin.f32 %v6650_v42, 20.0  ;;  %vm747_vm5 = vcmp.gt.f32.partialorder %v6650_v42, 20.0 }
 0x2c0   : > { %v5773_v16 = vpop.f32.mrb[6].mxu1  ;;  %v5795_v17 = vpop.f32.mrb[10].mxu0  ;;  %v757_v45 = vmul.f32 1.442695, %v752_v41 }
 0x2c1   : > { %v738_v23 = vpop.f32.mrb[7].mxu1  ;;  %v6624_v24 = vpop.f32.mrb[11].mxu0  ;;  %v2376_v40 = vrot.slane %v5795_v17, %v6542_v4  ;;  %v2404_v44 = vrot.slane %v5795_v17, %v6609_v11  ;;  %v2383_v47 = vrot.slane %v5795_v17, %v6537_v0  ;;  %v2411_v49 = vrot.slane %v5795_v17, %v6619_v21 }
 0x2c2   : > { %6163 = vpow2.f32 %v757_v45  ;;  %v755_v51 = vmul.f32 1.442695, %v751_v46  ;;  %v2390_v52 = vrot.slane %v5795_v17, %v6532_v61  ;;  %v2418_v53 = vrot.slane %v5795_v17, %v6614_v15 }
 0x2c3   : > { %1589 = vbcast.lane.b32.xlu1 %v1587_v18, 256  ;;  %1610 = vbcast.lane.b32.xlu0 %v1608_v20, 256  ;;  %v6659_v54 = vadd.f32 %v5513_v35, %v738_v23  ;;  %v2397_v55 = vrot.slane %v5795_v17, %v6526_v59  ;;  %v6662_v57 = vadd.f32 %v5773_v16, %v5513_v35 }
 0x2c4   : > { %6165 = vpow2.f32 %v755_v51  ;;  %v2425_v60 = vrot.slane %v5795_v17, %v6622_v22  ;;  %v1971_v56 = vrot.slane %v6624_v24, %v6542_v4  ;;  %v1978_v6 = vrot.slane %v6624_v24, %v6537_v0  ;;  %v989_v17 = vld [vmem:[%s8781_s2 + $0x118] sm:$0xff] }
 0x2c5   : > { %v753_v63 = vmin.f32 %v6659_v54, 20.0  ;;  %v754_v5 = vmin.f32 %v6662_v57, 20.0  ;;  %v1999_v10 = vrot.slane %v6624_v24, %v6609_v11  ;;  %v1985_v13 = vrot.slane %v6624_v24, %v6532_v61 }
 0x2c6   : > { %v2006_v18 = vrot.slane %v6624_v24, %v6619_v21  ;;  %v1992_v23 = vrot.slane %v6624_v24, %v6526_v59  ;;  %vm749_vm7 = vcmp.gt.f32.partialorder %v6659_v54, 20.0  ;;  %vm750_vm10 = vcmp.gt.f32.partialorder %v6662_v57, 20.0 }
 0x2c7   : > { %1603 = vbcast.lane.b32.xlu1 %v1601_v25, 256  ;;  %1617 = vbcast.lane.b32.xlu0 %v1615_v26, 256  ;;  %v759_v8 = vmul.f32 1.442695, %v753_v63  ;;  %v761_v12 = vmul.f32 1.442695, %v754_v5 }
 0x2c8   : > { %v6628_v27 = vpop.f32.mrb[8].mxu1  ;;  %v990_v25 = vmul.f32 1.442695, %v989_v17 }
 0x2c9   : > { %v6632_v30 = vpop.f32.mrb[9].mxu1  ;;  %6167 = vpow2.f32 %v759_v8  ;;  %v1686_v26 = vrot.slane %v6628_v27, %v6542_v4  ;;  %v1700_v35 = vrot.slane %v6628_v27, %v6532_v61  ;;  %v1707_v51 = vrot.slane %v6628_v27, %v6526_v59 }
 0x2cb   : > { %1177 = vbcast.lane.b32.xlu1 %v1175_v28, 256  ;;  %1163 = vbcast.lane.b32.xlu0 %v1161_v29, 256  ;;  %v2013_v28 = vrot.slane %v6624_v24, %v6614_v15 }
 0x2cc   : > { %v6634_v31 = vpop.f32.mrb[10].mxu1  ;;  %v6164_v3 = vpop.eup %6163 }
 0x2cd   : > { %v6638_v34 = vpop.f32.mrb[11].mxu1  ;;  %v772_v9 = vadd.f32 1.0, %v6164_v3  ;;  %v775_v29 = vmul.f32 -0.5, %v6164_v3  ;;  %v778_v45 = vand.u32 2147483647, %v6164_v3 }
 0x2ce   : > { %v6675_v16 = vpop.eup %6165 }
 0x2cf   : > { %1184 = vbcast.lane.b32.xlu1 %v1182_v32, 256  ;;  %1170 = vbcast.lane.b32.xlu0 %v1168_v33, 256  ;;  %6169 = vlog2.f32 %v772_v9  ;;  %v763_v20 = vadd.f32 1.0, %v6675_v16  ;;  %v2020_v33 = vrot.slane %v6624_v24, %v6622_v22  ;;  %v776_v41 = vadd.f32 1.0, %v775_v29 }
 0x2d0   : > { %6171 = vpow2.f32 %v761_v12  ;;  %v766_v46 = vmul.f32 -0.5, %v6675_v16  ;;  %v5527_v24 = vmul.f32 -1.442695, %v6547_v7  ;;  %vm6707_vm3 = vcmp.lt.f32.partialorder %v778_v45, 0.0004427343 }
 0x2d1   : > { %6173 = vlog2.f32 %v763_v20  ;;  %v777_v63 = vmul.f32 %v6164_v3, %v776_v41  ;;  %v769_v8 = vand.u32 2147483647, %v6675_v16  ;;  %v1714_v3 = vrot.slane %v6628_v27, %v6609_v11 }
 0x2d2   : > { %6175 = vpow2.f32 %v990_v25  ;;  %v1309_v45 = vrot.slane %v6632_v30, %v6609_v11 }
 0x2d3   : > { %1198 = vbcast.lane.b32.xlu1 %v1196_v36, 256  ;;  %1191 = vbcast.lane.b32.xlu0 %v1189_v37, 256  ;;  %v6689_v32 = vpop.eup %6167  ;;  %v6383_v37 = vmov 1966171168   ;;  %vm6727_vm6 = vcmp.lt.f32.partialorder %v769_v8, 0.0004427343 }
 0x2d4   : > { %v784_v29 = vmul.f32 -0.5, %v6689_v32 }
 0x2d7   : > { %1205 = vbcast.lane.b32.xlu0 %v1203_v39, 256  ;;  %2378 = vbcast.lane.b32.xlu1 %v2376_v40, 256  ;;  %v996_v39 = vunpack.c.l.s4 %v6383_v37 }
 0x2d9   : > { %v6170_v36 = vpop.eup %6169 }
 0x2da   : > { %v6695_v40 = vpop.eup %6171 }
 0x2db   : > { %1212 = vbcast.lane.b32.xlu0 %v1210_v43, 256  ;;  %2406 = vbcast.lane.b32.xlu1 %v2404_v44, 256  ;;  %v781_v43 = vadd.f32 1.0, %v6689_v32  ;;  %v5528_v44 = vmul.f32 -1.442695, %v6539_v2  ;;  %v793_v25 = vmul.f32 -0.5, %v6695_v40 }
 0x2dc   : > { %v796_v37 = vand.u32 2147483647, %v6695_v40 }
 0x2dd   : > { %6177 = vlog2.f32 %v781_v43  ;;  %v1302_v43 = vrot.slane %v6632_v30, %v6526_v59 }
 0x2de   : > { %6179 = vpow2.f32 %v5528_v44  ;;  %v2510_v44 = vrot.slane %v6634_v31, %v6532_v61  ;;  %vm6777_vm8 = vcmp.lt.f32.partialorder %v796_v37, 0.0004427343 }
 0x2df   : > { %2385 = vbcast.lane.b32.xlu0 %v2383_v47, 256  ;;  %2413 = vbcast.lane.b32.xlu1 %v2411_v49, 256  ;;  %v774_v47 = vmul.f32 0.6931472, %v6170_v36  ;;  %v1693_v49 = vrot.slane %v6628_v27, %v6537_v0  ;;  %6181 = vpow2.f32 %v5527_v24 }
 0x2e1   : > { %v780_v9 = vsel %vm6707_vm3, %v777_v63, %v774_v47  ;;  %v794_v47 = vadd.f32 1.0, %v793_v25  ;;  %vm2631_vm3 = vcmask 1046534  }
 0x2e3   : > { %2392 = vbcast.lane.b32.xlu0 %v2390_v52, 256  ;;  %2420 = vbcast.lane.b32.xlu1 %v2418_v53, 256  ;;  %v997_v52 = vunpack.c.0.s8 %v996_v39  ;;  %v790_v53 = vadd.f32 1.0, %v6695_v40  ;;  %v2496_v39 = vrot.slane %v6634_v31, %v6542_v4  ;;  %v795_v25 = vmul.f32 %v6695_v40, %v794_v47 }
 0x2e5   : > { %v6719_v12 = vsub.s32 %v997_v52, %v6523_v58  ;;  %6183 = vlog2.f32 %v790_v53  ;;  %v1728_v58 = vrot.slane %v6628_v27, %v6614_v15  ;;  %v785_v53 = vadd.f32 1.0, %v784_v29 }
 0x2e7   : > { %2399 = vbcast.lane.b32.xlu0 %v2397_v55, 256  ;;  %2427 = vbcast.lane.b32.xlu1 %v2425_v60, 256  ;;  %v6174_v55 = vpop.eup %6173  ;;  %v5530_v60 = vmul.f32 -1.442695, %v6550_v14  ;;  %8829 = vst [vmem:[#allocation17_spill] sm:$0xff] %v6719_v12 }
 0x2e9   : > { %6185 = vpow2.f32 %v5530_v60  ;;  %v2524_v60 = vrot.slane %v6634_v31, %v6609_v11 }
 0x2eb   : > { %1973 = vbcast.lane.b32.xlu0 %v1971_v56, 256  ;;  %1980 = vbcast.lane.b32.xlu1 %v1978_v6, 256  ;;  %v6176_v56 = vpop.eup %6175  ;;  %v767_v6 = vadd.f32 1.0, %v766_v46 }
 0x2ec   : > { %v6722_v17 = vsub.f32 0.0, %v6176_v56  ;;  %v6178_v46 = vpop.eup %6177 }
 0x2ed   : > { %v768_v20 = vmul.f32 %v6675_v16, %v767_v6  ;;  %v6765_v52 = vpop.eup %6179  ;;  %v2531_v6 = vrot.slane %v6634_v31, %v6619_v21 }
 0x2ee   : > { %v6774_v63 = vpop.eup %6181 }
 0x2ef   : > { %2001 = vbcast.lane.b32.xlu0 %v1999_v10, 256  ;;  %1987 = vbcast.lane.b32.xlu1 %v1985_v13, 256  ;;  %v1721_v10 = vrot.slane %v6628_v27, %v6619_v21  ;;  %v765_v13 = vmul.f32 0.6931472, %v6174_v55  ;;  %v1316_v55 = vrot.slane %v6632_v30, %v6619_v21  ;;  %8832 = vst [vmem:[#allocation18_spill] sm:$0xff] %v6774_v63 }
 0x2f1   : > { %v771_v16 = vsel %vm6727_vm6, %v768_v20, %v765_v13  ;;  %v783_v13 = vmul.f32 0.6931472, %v6178_v46 }
 0x2f2   : > { %v799_v24 = vsel %vm747_vm5, %v6650_v42, %v771_v16  ;;  %v2503_v42 = vrot.slane %v6634_v31, %v6537_v0  ;;  %v786_v16 = vmul.f32 %v6689_v32, %v785_v53 }
 0x2f3   : > { %2008 = vbcast.lane.b32.xlu0 %v2006_v18, 256  ;;  %1994 = vbcast.lane.b32.xlu1 %v1992_v23, 256  ;;  %v800_v18 = vsel %vm748_vm4, %v6645_v38, %v780_v9  ;;  %v1323_v38 = vrot.slane %v6632_v30, %v6614_v15  ;;  %v6184_v9 = vpop.eup %6183  ;;  %vm2633_vm4 = vcmask 1047559  }
 0x2f4   : > { %v1399_v36 = vcombine.high %v800_v18, %v800_v18  ;;  %v1406_v41 = vrot.slane %v800_v18, %v6719_v12  ;;  %v6787_v23 = vpop.eup %6185  ;;  %v792_v40 = vmul.f32 0.6931472, %v6184_v9 }
 0x2f5   : > { %8835 = vst [vmem:[#allocation19_spill] sm:$0xff] %v6787_v23 }
 0x2f6   : > { %v1413_v56 = vrot.slane %v1399_v36, %v6719_v12 }
 0x2f7   : > { %1688 = vbcast.lane.b32.xlu0 %v1686_v26, 256  ;;  %2015 = vbcast.lane.b32.xlu1 %v2013_v28, 256  ;;  %v1281_v26 = vrot.slane %v6632_v30, %v6542_v4  ;;  %v1735_v28 = vrot.slane %v6628_v27, %v6622_v22  ;;  %v1295_v27 = vrot.slane %v6632_v30, %v6532_v61 }
 0x2f8   : > { %v1415_v37 = vcombine.high %v1413_v56, %v1413_v56  ;;  %v1429_v53 = vrot.slane %v1413_v56, %v6719_v12 }
 0x2fa   : > { %v6828_v56 = vrot.slane %v1415_v37, %v6719_v12  ;;  %v1445_v37 = vcombine.high %v1429_v53, %v1429_v53 }
 0x2fb   : > { %2022 = vbcast.lane.b32.xlu1 %v2020_v33, 256  ;;  %1702 = vbcast.lane.b32.xlu0 %v1700_v35, 256  ;;  %v1288_v33 = vrot.slane %v6632_v30, %v6537_v0  ;;  %v1330_v35 = vrot.slane %v6632_v30, %v6622_v22 }
 0x2ff   : > { %1695 = vbcast.lane.b32.xlu1 %v1693_v49, 256  ;;  %1709 = vbcast.lane.b32.xlu0 %v1707_v51, 256  ;;  %v787_v49 = vand.u32 2147483647, %v6689_v32  ;;  %v2517_v51 = vrot.slane %v6634_v31, %v6526_v59  ;;  %v1001_v32 = vrot.slane %v799_v24, %v6719_v12 }
 0x301   : > { %vm6791_vm9 = vcmp.lt.f32.partialorder %v787_v49, 0.0004427343 }
 0x302   : > { %v789_v49 = vsel %vm6791_vm9, %v786_v16, %v783_v13  ;;  %v1009_v13 = vcombine.high %v1001_v32, %v1001_v32 }
 0x303   : > { %1723 = vbcast.lane.b32.xlu1 %v1721_v10, 256  ;;  %1716 = vbcast.lane.b32.xlu0 %v1714_v3, 256  ;;  %v1414_v10 = vcombine.high %v1406_v41, %v1406_v41  ;;  %v994_v3 = vcombine.high %v799_v24, %v799_v24 }
 0x305   : > { %v1008_v47 = vrot.slane %v994_v3, %v6719_v12 }
 0x307   : > { %1730 = vbcast.lane.b32.xlu1 %v1728_v58, 256  ;;  %1283 = vbcast.lane.b32.xlu0 %v1281_v26, 256  ;;  %v1422_v58 = vrot.slane %v1406_v41, %v6719_v12  ;;  %v6836_v26 = vsel %vm749_vm7, %v6659_v54, %v789_v49  ;;  %v1010_v3 = vcombine.high %v1008_v47, %v1008_v47 }
 0x308   : > { %v1447_v49 = vcombine.high %v6828_v56, %v6828_v56 }
 0x309   : > { %v1444_v9 = vcombine.high %v1422_v58, %v1422_v58 }
 0x30b   : > { %1737 = vbcast.lane.b32.xlu1 %v1735_v28, 256  ;;  %1325 = vbcast.lane.b32.xlu0 %v1323_v38, 256  ;;  %v6798_v38 = vmul.f32 %v800_v18, %v6563_v50  ;;  %v1436_v18 = vrot.slane %v1414_v10, %v6719_v12  ;;  %v6821_v10 = vmul.f32 %v799_v24, %v6561_v48  ;;  %v2731_v48 = vld [vmem:[%s8781_s2 + $0x138] sm:$0xff] }
 0x30c   : > { %v1459_v41 = vrot.slane %v1444_v9, %v6542_v4  ;;  %v6856_v9 = vrot.slane %v1008_v47, %v6719_v12  ;;  %v6873_v47 = vrot.slane %v1010_v3, %v6719_v12 }
 0x30d   : > { %v1514_v46 = vcombine.high %v6798_v38, %v6798_v38  ;;  %v1446_v24 = vcombine.high %v1436_v18, %v1436_v18  ;;  %v1521_v16 = vrot.slane %v6798_v38, %v6719_v12 }
 0x30f   : > { %1290 = vbcast.lane.b32.xlu1 %v1288_v33, 256  ;;  %1332 = vbcast.lane.b32.xlu0 %v1330_v35, 256  ;;  %v1451_v33 = vrot.slane %v1422_v58, %v6542_v4  ;;  %v798_v58 = vsel %vm6777_vm8, %v795_v25, %v792_v40  ;;  %v1455_v35 = vrot.slane %v1436_v18, %v6542_v4  ;;  %v5529_v40 = vmul.f32 -1.442695, %v6553_v19 }
 0x310   : > { %v1467_v25 = vrot.slane %v1429_v53, %v6542_v4  ;;  %v802_v54 = vsel %vm750_vm10, %v6662_v57, %v798_v58  ;;  %v6853_v18 = vrot.slane %v1001_v32, %v6719_v12  ;;  %v6865_v57 = vrot.slane %v1446_v24, %v6542_v4 }
 0x311   : > { %v1488_v5 = vmul.f32 %v1451_v33, %v6722_v17  ;;  %v6870_v32 = vrot.slane %v1009_v13, %v6719_v12  ;;  %v6876_v33 = vrot.slane %v1445_v37, %v6542_v4  ;;  %v1490_v24 = vmul.f32 %v1459_v41, %v6722_v17 }
 0x312   : > { %v1492_v36 = vmul.f32 %v1467_v25, %v6722_v17  ;;  %6187 = vpow2.f32 %v5529_v40  ;;  %v6884_v13 = vrot.slane %v1447_v49, %v6542_v4  ;;  %v2209_v3 = vcombine.high %v802_v54, %v802_v54 }
 0x313   : > { %1297 = vbcast.lane.b32.xlu1 %v1295_v27, 256  ;;  %2498 = vbcast.lane.b32.xlu0 %v2496_v39, 256  ;;  %v1804_v27 = vcombine.high %v6836_v26, %v6836_v26  ;;  %v1811_v39 = vrot.slane %v6836_v26, %v6719_v12  ;;  %v1496_v58 = vmul.f32 1.442695, %v1488_v5  ;;  %v1039_v41 = vcombine.high %v6853_v18, %v6853_v18 }
 0x314   : > { %v1041_v5 = vcombine.high %v6870_v32, %v6870_v32  ;;  %v6900_v25 = vrot.slane %v6821_v10, %v6719_v12  ;;  %v1046_v49 = vrot.slane %v6853_v18, %v6542_v4  ;;  %v1500_v20 = vmul.f32 1.442695, %v1490_v24 }
 0x315   : > { %v1818_v53 = vrot.slane %v1804_v27, %v6719_v12  ;;  %v1819_v29 = vcombine.high %v1811_v39, %v1811_v39  ;;  %6189 = vpow2.f32 %v1496_v58  ;;  %v1827_v27 = vrot.slane %v1811_v39, %v6719_v12 }
 0x316   : > { %v6914_v58 = vrot.slane %v2209_v3, %v6719_v12  ;;  %v6932_v39 = vrot.slane %v1514_v46, %v6719_v12  ;;  %v1054_v18 = vrot.slane %v1039_v41, %v6542_v4  ;;  %v6937_v30 = vrot.slane %v6900_v25, %v6719_v12 }
 0x317   : > { %1304 = vbcast.lane.b32.xlu1 %v1302_v43, 256  ;;  %2512 = vbcast.lane.b32.xlu0 %v2510_v44, 256  ;;  %v1489_v43 = vmul.f32 %v1455_v35, %v6722_v17  ;;  %v2216_v44 = vrot.slane %v802_v54, %v6719_v12  ;;  %v1529_v35 = vcombine.high %v1521_v16, %v1521_v16  ;;  %6191 = vpow2.f32 %v1500_v20 }
 0x318   : > { %v1820_v28 = vcombine.high %v1818_v53, %v1818_v53  ;;  %v1841_v37 = vrot.slane %v1819_v29, %v6719_v12  ;;  %v6947_v38 = vmul.f32 %v802_v54, %v6588_v1  ;;  %v1849_v24 = vcombine.high %v1827_v27, %v1827_v27 }
 0x319   : > { %v6906_v40 = vmul.f32 1.442695, %v1489_v43  ;;  %v6926_v29 = vrot.slane %v2216_v44, %v6719_v12  ;;  %v1856_v43 = vrot.slane %v1827_v27, %v6542_v4  ;;  %v1058_v27 = vrot.slane %v1041_v5, %v6542_v4 }
 0x31a   : > { %v6950_v46 = vrot.slane %v1820_v28, %v6719_v12  ;;  %v1851_v3 = vcombine.high %v1841_v37, %v1841_v37  ;;  %v1050_v28 = vrot.slane %v6870_v32, %v6542_v4  ;;  %v1864_v54 = vrot.slane %v1849_v24, %v6542_v4 }
 0x31b   : > { %1311 = vbcast.lane.b32.xlu1 %v1309_v45, 256  ;;  %2519 = vbcast.lane.b32.xlu0 %v2517_v51, 256  ;;  %v2224_v45 = vcombine.high %v2216_v44, %v2216_v44  ;;  %v6904_v51 = vrot.slane %v1521_v16, %v6719_v12  ;;  %v6923_v16 = vrot.slane %v1529_v35, %v6719_v12  ;;  %v6952_v35 = vmul.f32 1.442695, %v1492_v36 }
 0x31c   : > { %v6974_v41 = vpop.eup %6187  ;;  %v1852_v36 = vcombine.high %v6950_v46, %v6950_v46  ;;  %v1085_v5 = vmul.f32 %v1054_v18, %v6722_v17  ;;  %v8840_v32 = vrot.slane %v6638_v34, %v6542_v4  ;;  %v1083_v24 = vmul.f32 %v1046_v49, %v6722_v17 }
 0x31d   : > { %8838 = vst [vmem:[#allocation20_spill] sm:$0xff] %v6974_v41  ;;  %v1062_v49 = vrot.slane %v6856_v9, %v6542_v4  ;;  %v1895_v18 = vmul.f32 %v1864_v54, %v6722_v17 }
 0x31e   : > { %v7013_v1 = vrot.slane %v1852_v36, %v6542_v4  ;;  %v1559_v36 = vcombine.high %v6904_v51, %v6904_v51  ;;  %v1091_v54 = vmul.f32 1.442695, %v1083_v24  ;;  %v2730_v24 = vld [vmem:[%s8781_s2 + $0x130] sm:$0xff] }
 0x31f   : > { %1318 = vbcast.lane.b32.xlu1 %v1316_v55, 256  ;;  %2526 = vbcast.lane.b32.xlu0 %v2524_v60, 256  ;;  %v6940_v55 = vrot.slane %v2224_v45, %v6719_v12  ;;  %v1834_v60 = vrot.slane %v1818_v53, %v6719_v12  ;;  %v6958_v53 = vrot.slane %v6914_v58, %v6719_v12  ;;  %v6988_v8 = vpop.eup %6189 }
 0x320   : > { %v1860_v45 = vrot.slane %v1841_v37, %v6542_v4  ;;  %v6985_v37 = vrot.slane %v1851_v3, %v6542_v4  ;;  %v1042_v3 = vcombine.high %v6873_v47, %v6873_v47 }
 0x321   : > { %v1850_v44 = vcombine.high %v1834_v60, %v1834_v60 }
 0x322   : > { %v1894_v20 = vmul.f32 %v1860_v45, %v6722_v17  ;;  %v1095_v45 = vmul.f32 1.442695, %v1085_v5  ;;  %v1074_v5 = vrot.slane %v1042_v3, %v6542_v4 }
 0x323   : > { %2505 = vbcast.lane.b32.xlu1 %v2503_v42, 256  ;;  %2533 = vbcast.lane.b32.xlu0 %v2531_v6, 256  ;;  %v1893_v6 = vmul.f32 %v1856_v43, %v6722_v17  ;;  %v1872_v42 = vrot.slane %v1834_v60, %v6542_v4  ;;  %v8839_v43 = vrot.slane %v6638_v34, %v6537_v0 }
 0x324   : > { %v1086_v60 = vmul.f32 %v1058_v27, %v6722_v17  ;;  %v1066_v0 = vrot.slane %v6873_v47, %v6542_v4  ;;  %v8841_v27 = vcombine.high %v6856_v9, %v6856_v9  ;;  %v7030_v19 = vmul.f32 1.442695, %v1894_v20 }
 0x325   : > { %v1901_v14 = vmul.f32 1.442695, %v1893_v6  ;;  %v8842_v6 = vrot.slane %v6638_v34, %v6532_v61  ;;  %v1087_v20 = vmul.f32 %v1062_v49, %v6722_v17  ;;  %v8845_v49 = vrot.slane %v6638_v34, %v6614_v15 }
 0x326   : > { %v1070_v47 = vrot.slane %v8841_v27, %v6542_v4 }
 0x327   : > { %2100 = vbcast.lane.b32.xlu0 %v8839_v43, 256  ;;  %2093 = vbcast.lane.b32.xlu1 %v8840_v32, 256  ;;  %v7007_v43 = vrot.slane %v1850_v44, %v6542_v4  ;;  %v1084_v32 = vmul.f32 %v1050_v28, %v6722_v17  ;;  %v1897_v44 = vmul.f32 %v1872_v42, %v6722_v17  ;;  %6193 = vpow2.f32 %v1901_v14 }
 0x328   : > { %v8843_v28 = vrot.slane %v6638_v34, %v6619_v21  ;;  %v7038_v42 = vrot.slane %v6932_v39, %v6719_v12  ;;  %v1088_v21 = vmul.f32 %v1066_v0, %v6722_v17  ;;  %v2732_v0 = vld [vmem:[%s8781_s2 + $0x140] sm:$0xff]  ;;  %6195 = vpow2.f32 %v1095_v45 }
 0x329   : > { %v1093_v3 = vmul.f32 1.442695, %v1084_v32  ;;  %v1089_v50 = vmul.f32 %v1070_v47, %v6722_v17  ;;  %v6035_v7 = vpack.c.bf16 %v2732_v0, %v2731_v48  ;;  %v1905_v14 = vmul.f32 1.442695, %v1895_v18  ;;  %v2733_v0 = vld [vmem:[%s8781_s2 + $0x148] sm:$0xff] }
 0x32a   : > { %v8844_v32 = vrot.slane %v6638_v34, %v6526_v59  ;;  %6197 = vpow2.f32 %v1091_v54  ;;  %v1090_v45 = vmul.f32 %v1074_v5, %v6722_v17  ;;  %v1560_v18 = vcombine.high %v7038_v42, %v7038_v42  ;;  %v2734_v54 = vld [vmem:[%s8781_s2 + $0x150] sm:$0xff] }
 0x32b   : > { %2107 = vbcast.lane.b32.xlu0 %v8842_v6, 256  ;;  %2128 = vbcast.lane.b32.xlu1 %v8843_v28, 256  ;;  %v1097_v6 = vmul.f32 1.442695, %v1086_v60  ;;  %v2729_v28 = vld [vmem:[%s8781_s2 + $0x128] sm:$0xff]  ;;  %v1124_v60 = vcombine.high %v6900_v25, %v6900_v25  ;;  %v7083_v5 = vrot.slane %v1559_v36, %v6542_v4  ;;  %v6039_v23 = vpack.c.bf16 %v2734_v54, %v2733_v0 }
 0x32c   : > { %v6031_v61 = vpack.c.bf16 %v2730_v24, %v2729_v28  ;;  %v1561_v28 = vcombine.high %v6923_v16, %v6923_v16  ;;  %v7066_v24 = vmul.f32 1.442695, %v1897_v44  ;;  %v1101_v47 = vmul.f32 1.442695, %v1088_v21  ;;  %v7080_v44 = vpop.eup %6191 }
 0x32d   : > { %v7032_v9 = vpop.permute.xlu1 %1575  ;;  %v7034_v27 = vpop.permute.xlu0 %1568  ;;  %6199 = vpow2.f32 %v1097_v6  ;;  %v1099_v6 = vmul.f32 1.442695, %v1087_v20  ;;  %v7088_v21 = vrot.slane %v1124_v60, %v6719_v12  ;;  %v1103_v2 = vmul.f32 1.442695, %v1089_v50 }
 0x32e   : > { %6032 = vmatprep.subr.bf16.mxu0 %v6031_v61  ;;  %6201 = vpow2.f32 %v1093_v3  ;;  %v1105_v3 = vmul.f32 1.442695, %v1090_v45  ;;  %v7107_v50 = vrot.slane %v1561_v28, %v6542_v4  ;;  %v1154_v0 = vcombine.high %v6937_v30, %v6937_v30 }
 0x32f   : > { %2114 = vbcast.lane.b32.xlu0 %v8844_v32, 256  ;;  %2135 = vbcast.lane.b32.xlu1 %v8845_v49, 256  ;;  %v1530_v32 = vcombine.high %v6932_v39, %v6932_v39  ;;  %v8846_v49 = vcombine.high %v6821_v10, %v6821_v10  ;;  %6203 = vpow2.f32 %v1905_v14  ;;  %v8847_v39 = vrot.slane %v6638_v34, %v6609_v11 }
 0x330   : > { %6034 = vmatpush3.bf16.msra.mxu0 %v6031_v61  ;;  %v8848_v61 = vrot.slane %v6638_v34, %v6622_v22  ;;  %v1491_v10 = vmul.f32 %v6865_v57, %v6722_v17  ;;  %v7112_v14 = vrot.slane %v1560_v18, %v6542_v4  ;;  %6205 = vpow2.f32 %v1101_v47 }
 0x331   : > { %v7068_v25 = vpop.permute.xlu1 %1582  ;;  %v7070_v48 = vpop.permute.xlu0 %1596  ;;  %v1123_v59 = vrot.slane %v8846_v49, %v6719_v12  ;;  %6036 = vmatprep.subr.bf16.mxu0 %v6035_v7  ;;  %v7117_v34 = vrot.slane %v1530_v32, %v6719_v12  ;;  %v1217_v57 = vrot.slane %v6937_v30, %v6542_v4  ;;  %6207 = vpow2.f32 %v1099_v6  ;;  %v2735_v49 = vld [vmem:[%s8781_s2 + $0x158] sm:$0xff] }
 0x332   : > { %v1896_v28 = vmul.f32 %v6985_v37, %v6722_v17  ;;  %v1156_v45 = vcombine.high %v7088_v21, %v7088_v21  ;;  %6209 = vpow2.f32 %v1103_v2  ;;  %v8849_v47 = vrot.slane %v6828_v56, %v6542_v4  ;;  %v7129_v32 = vpop.eup %6193 }
 0x333   : > { %2121 = vbcast.lane.b32.xlu0 %v8847_v39, 256  ;;  %2142 = vbcast.lane.b32.xlu1 %v8848_v61, 256  ;;  %v1125_v18 = vcombine.high %v1123_v59, %v1123_v59  ;;  %v8850_v30 = vrot.slane %v6634_v31, %v6614_v15  ;;  %v7138_v37 = vrot.slane %v1123_v59, %v6719_v12  ;;  %6211 = vpow2.f32 %v1105_v3  ;;  %v2736_v39 = vld [vmem:[%s8781_s2 + $0x160] sm:$0xff] }
 0x334   : > { %6038 = vmatpush3.bf16.msra.mxu0 %v6035_v7  ;;  %v1493_v54 = vmul.f32 %v8849_v47, %v6722_v17  ;;  %v8851_v7 = vrot.slane %v6634_v31, %v6622_v22  ;;  %v1502_v2 = vmul.f32 1.442695, %v1491_v10  ;;  %v8852_v56 = vrot.slane %v6950_v46, %v6542_v4  ;;  %v6196_v31 = vpop.eup %6195 }
 0x335   : > { %v7104_v20 = vpop.permute.xlu1 %1589  ;;  %v7109_v60 = vpop.permute.xlu0 %1610  ;;  %6040 = vmatprep.subr.bf16.mxu0 %v6039_v23  ;;  %v1225_v3 = vrot.slane %v1154_v0, %v6542_v4  ;;  %6213 = vpow2.f32 %v6906_v40  ;;  %v1494_v46 = vmul.f32 %v6876_v33, %v6722_v17  ;;  %v6043_v10 = vpack.c.bf16 %v2736_v39, %v2735_v49 }
 0x336   : > { %v1898_v6 = vmul.f32 %v8852_v56, %v6722_v17  ;;  %v6198_v47 = vpop.eup %6197  ;;  %6215 = vpow2.f32 %v7030_v19  ;;  %v1907_v56 = vmul.f32 1.442695, %v1896_v28  ;;  %v1229_v0 = vrot.slane %v1156_v45, %v6542_v4 }
 0x337   : > { %2540 = vbcast.lane.b32.xlu0 %v8850_v30, 256  ;;  %2547 = vbcast.lane.b32.xlu1 %v8851_v7, 256  ;;  %v1221_v7 = vrot.slane %v7088_v21, %v6542_v4  ;;  %v6200_v36 = vpop.eup %6199  ;;  %v1506_v22 = vmul.f32 1.442695, %v1493_v54  ;;  %6217 = vpow2.f32 %v6952_v35  ;;  %v1495_v33 = vmul.f32 %v6884_v13, %v6722_v17 }
 0x338   : > { %6042 = vmatpush3.bf16.msra.mxu0 %v6039_v23  ;;  %v6202_v40 = vpop.eup %6201  ;;  %v7168_v49 = vrot.slane %v1125_v18, %v6719_v12  ;;  %v1155_v21 = vcombine.high %v7138_v37, %v7138_v37  ;;  %6219 = vpow2.f32 %v1502_v2  ;;  %v1911_v19 = vmul.f32 1.442695, %v1898_v6 }
 0x339   : > { %v7150_v61 = vpop.permute.xlu1 %1603  ;;  %v7152_v59 = vpop.permute.xlu0 %1617  ;;  %6044 = vmatprep.subr.bf16.mxu0 %v6043_v10  ;;  %v1264_v28 = vmul.f32 0.0, %v6196_v31  ;;  %6221 = vpow2.f32 %v7066_v24  ;;  %v1508_v45 = vmul.f32 1.442695, %v1494_v46  ;;  %v1899_v35 = vmul.f32 %v7007_v43, %v6722_v17 }
 0x33a   : > { %v6204_v13 = vpop.eup %6203  ;;  %v1262_v15 = vmul.f32 0.0, %v6198_v47  ;;  %6223 = vpow2.f32 %v1907_v56  ;;  %v1265_v11 = vmul.f32 0.0, %v6200_v36  ;;  %v1263_v41 = vmul.f32 0.0, %v6202_v40 }
 0x33b   : > { %v6206_v18 = vpop.eup %6205  ;;  %6225 = vpow2.f32 %v1506_v22  ;;  %v1510_v2 = vmul.f32 1.442695, %v1495_v33  ;;  %v1900_v43 = vmul.f32 %v7013_v1, %v6722_v17  ;;  %v1661_v36 = vmul.f32 %v7083_v5, %v7068_v25 }
 0x33c   : > { %6046 = vmatpush3.bf16.msra.mxu0 %v6043_v10  ;;  %v6208_v6 = vpop.eup %6207  ;;  %6227 = vpow2.f32 %v1911_v19  ;;  %v1913_v10 = vmul.f32 1.442695, %v1899_v35  ;;  %v1241_v25 = vrot.slane %v1155_v21, %v6542_v4 }
 0x33d   : > { %v1178_v23 = vpop.permute.xlu1 %1177  ;;  %v1164_v39 = vpop.permute.xlu0 %1163  ;;  %6229 = vpow2.f32 %v1508_v45  ;;  %v1915_v45 = vmul.f32 1.442695, %v1900_v43 }
 0x33e   : > { %v1256_v54 = vmul.f32 %v1225_v3, %v1178_v23  ;;  %v1254_v30 = vmul.f32 %v1217_v57, %v1164_v39  ;;  %v6210_v24 = vpop.eup %6209  ;;  %v8853_v57 = vrot.slane %v6904_v51, %v6542_v4  ;;  %v1237_v51 = vrot.slane %v7168_v49, %v6542_v4 }
 0x33f   : > { %v7187_v47 = vpop.eup %6211  ;;  %6231 = vpow2.f32 %v1510_v2  ;;  %v1267_v23 = vmul.f32 0.0, %v6206_v18  ;;  %v1266_v39 = vmul.f32 0.0, %v6208_v6  ;;  %v8854_v2 = vrot.slane %v6923_v16, %v6542_v4  ;;  %v2831_v16 = vld [vmem:[%s8780_s1 + $0x10] sm:$0xff] }
 0x340   : > { %v7175_v31 = vadd.f32 %v1264_v28, %v1256_v54  ;;  %v7177_v63 = vadd.f32 %v1262_v15, %v1254_v30  ;;  %v1659_v3 = vmul.f32 %v8853_v57, %v7034_v27  ;;  %v6214_v33 = vpop.eup %6213  ;;  %v1233_v27 = vrot.slane %v7138_v37, %v6542_v4 }
 0x341   : > { %v1185_v22 = vpop.permute.xlu1 %1184  ;;  %v1171_v46 = vpop.permute.xlu0 %1170  ;;  %6233 = vpow2.f32 %v1913_v10  ;;  %v1660_v18 = vmul.f32 %v8854_v2, %v7032_v9  ;;  %v1662_v6 = vmul.f32 %v7107_v50, %v7104_v20  ;;  %v2832_v9 = vld [vmem:[%s8780_s1 + $0x18] sm:$0xff]  ;;  %v8855_v50 = vrot.slane %v7038_v42, %v6542_v4 }
 0x342   : > { %v1669_v15 = vmul.f32 %v7080_v44, %v7175_v31  ;;  %v1667_v1 = vmul.f32 %v6988_v8, %v7177_v63  ;;  %v1257_v30 = vmul.f32 %v1229_v0, %v1185_v22  ;;  %v1255_v56 = vmul.f32 %v1221_v7, %v1171_v46  ;;  %v6216_v5 = vpop.eup %6215 }
 0x343   : > { %v6218_v7 = vpop.eup %6217  ;;  %v1663_v22 = vmul.f32 %v8855_v50, %v7070_v48  ;;  %v1268_v10 = vmul.f32 0.0, %v6210_v24  ;;  %6235 = vpow2.f32 %v1915_v45  ;;  %v8857_v45 = vcombine.high %v6914_v58, %v6914_v58 }
 0x344   : > { %v7198_v40 = vadd.f32 %v1265_v11, %v1257_v30  ;;  %v7200_v19 = vadd.f32 %v1263_v41, %v1255_v56  ;;  %v7202_v44 = vadd.f32 %v1667_v1, %v1659_v3  ;;  %v7204_v8 = vadd.f32 %v1669_v15, %v1661_v36  ;;  %v6220_v37 = vpop.eup %6219 }
 0x345   : > { %v1199_v0 = vpop.permute.xlu1 %1198  ;;  %v1192_v28 = vpop.permute.xlu0 %1191  ;;  %v6384_v30 = vmov 0   ;;  %v1665_v2 = vmul.f32 %v7112_v14, %v7109_v60  ;;  %v8858_v60 = vcombine.high %v6926_v29, %v6926_v29 }
 0x346   : > { %v1259_v35 = vmul.f32 %v1237_v51, %v1199_v0  ;;  %v1258_v21 = vmul.f32 %v1233_v27, %v1192_v28  ;;  %v7208_v11 = vmul.f32 %v7129_v32, %v7202_v44  ;;  %v7211_v41 = vmul.f32 %v6204_v13, %v7204_v8  ;;  %v6222_v54 = vpop.eup %6221  ;;  %6146 = vset.pattern.permute.xlu1 %v6384_v30 }
 0x347   : > { %v1668_v43 = vmul.f32 %v6214_v33, %v7200_v19  ;;  %v1670_v57 = vmul.f32 %v6220_v37, %v7198_v40  ;;  %v6224_v3 = vpop.eup %6223  ;;  %v1157_v13 = vcombine.high %v7168_v49, %v7168_v49  ;;  %6145 = vset.pattern.permute.xlu0 %v6384_v30  ;;  %v8856_v33 = vrot.slane %v7117_v34, %v6542_v4 }
 0x348   : > { %v7221_v36 = vadd.f32 %v1267_v23, %v1259_v35  ;;  %v7223_v32 = vadd.f32 %v1266_v39, %v1258_v21  ;;  %v6226_v20 = vpop.eup %6225  ;;  %2837 = vperm.xlu0 %6145, %v2831_v16   ;;  %v1562_v0 = vcombine.high %v7117_v34, %v7117_v34  ;;  %2842 = vperm.xlu1 %6146, %v2832_v9   ;;  %v2833_v34 = vld [vmem:[%s8780_s1 + $0x20] sm:$0xff]  ;;  %v2710_v30 = vadd.f32 1.0, %v6765_v52 }
 0x349   : > { %v1206_v46 = vpop.permute.xlu0 %1205  ;;  %v7237_v15 = vpop.permute.xlu1 %2378  ;;  %v7239_v1 = vadd.f32 %v1668_v43, %v1660_v18  ;;  %v7241_v49 = vadd.f32 %v1670_v57, %v1662_v6  ;;  %v1664_v51 = vmul.f32 %v8856_v33, %v7150_v61  ;;  %v2834_v61 = vld [vmem:[%s8780_s1 + $0x28] sm:$0xff]  ;;  %v7274_v35 = vrot.slane %v8857_v45, %v6719_v12 }
 0x34a   : > { %v6228_v56 = vpop.eup %6227  ;;  %v1260_v27 = vmul.f32 %v1241_v25, %v1206_v46  ;;  %v1672_v42 = vmul.f32 %v6226_v20, %v7221_v36  ;;  %v1671_v48 = vmul.f32 %v6218_v7, %v7223_v32  ;;  %v1245_v7 = vrot.slane %v1157_v13, %v6542_v4 }
 0x34b   : > { %v6230_v24 = vpop.eup %6229  ;;  %v7252_v23 = vmul.f32 %v6216_v5, %v7239_v1  ;;  %v7255_v28 = vmul.f32 %v6224_v3, %v7241_v49  ;;  %v1917_v21 = vmul.f32 %v6836_v26, %v6586_v62  ;;  %v1269_v6 = vmul.f32 0.0, %v7187_v47 }
 0x34c   : > { %v7260_v25 = vadd.f32 %v1268_v10, %v1260_v27  ;;  %v7263_v39 = vadd.f32 %v1672_v42, %v1664_v51  ;;  %v7265_v37 = vadd.f32 %v1671_v48, %v1663_v22  ;;  %v6232_v5 = vpop.eup %6231  ;;  %2852 = vperm.xlu0 %6145, %v2834_v61   ;;  %v2256_v26 = vcombine.high %v6940_v55, %v6940_v55 }
 0x34d   : > { %v1213_v18 = vpop.permute.xlu0 %1212  ;;  %v7281_v57 = vpop.permute.xlu1 %2406  ;;  %v2269_v14 = vrot.slane %v8858_v60, %v6542_v4  ;;  %v2277_v47 = vrot.slane %v6958_v53, %v6542_v4  ;;  %2847 = vperm.xlu1 %6146, %v2833_v34   ;;  %v8860_v20 = vrot.slane %v6940_v55, %v6542_v4  ;;  %v1650_v22 = vrot.slane %v1562_v0, %v6542_v4 }
 0x34e   : > { %v1261_v43 = vmul.f32 %v1245_v7, %v1213_v18  ;;  %v7284_v3 = vmul.f32 %v6228_v56, %v7263_v39  ;;  %v7287_v13 = vmul.f32 %v6222_v54, %v7265_v37  ;;  %v1673_v58 = vmul.f32 %v6230_v24, %v7260_v25  ;;  %v6234_v16 = vpop.eup %6233 }
 0x34f   : > { %v8859_v54 = vrot.slane %v6926_v29, %v6542_v4  ;;  %v2299_v50 = vmul.f32 %v8860_v20, %v6722_v17  ;;  %v2255_v56 = vcombine.high %v6958_v53, %v6958_v53  ;;  %v2324_v29 = vcombine.high %v6947_v38, %v6947_v38  ;;  %v6236_v45 = vpop.eup %6235 }
 0x350   : > { %v7307_v46 = vadd.f32 %v1269_v6, %v1261_v43  ;;  %v7309_v10 = vadd.f32 %v1673_v58, %v1665_v2  ;;  %v1926_v33 = vrot.slane %v1917_v21, %v6719_v12  ;;  %v1666_v55 = vmul.f32 %v1650_v22, %v7152_v59 }
 0x351   : > { %v2298_v9 = vmul.f32 %v8859_v54, %v6722_v17  ;;  %v7317_v51 = vpop.permute.xlu0 %2385  ;;  %v2331_v27 = vrot.slane %v6947_v38, %v6719_v12  ;;  %v7322_v42 = vpop.permute.xlu1 %2413  ;;  %v2281_v53 = vrot.slane %v7274_v35, %v6542_v4  ;;  %v2302_v24 = vmul.f32 %v2277_v47, %v6722_v17 }
 0x352   : > { %v1674_v48 = vmul.f32 %v6232_v5, %v7307_v46  ;;  %v7326_v52 = vmul.f32 %v6234_v16, %v7309_v10  ;;  %v1919_v61 = vcombine.high %v1917_v21, %v1917_v21  ;;  %v2273_v7 = vrot.slane %v2256_v26, %v6542_v4  ;;  %v8861_v5 = vld [vmem:[#allocation18_spill] sm:$0xff] }
 0x353   : > { %v2306_v0 = vmul.f32 1.442695, %v2298_v9  ;;  %v2300_v59 = vmul.f32 %v2269_v14, %v6722_v17  ;;  %v2308_v34 = vmul.f32 1.442695, %v2299_v50  ;;  %6237 = vrcp.f32 %v2710_v30 }
 0x354   : > { %v7333_v38 = vadd.f32 %v1674_v48, %v1666_v55  ;;  %v2709_v2 = vadd.f32 1.0, %v8861_v5  ;;  %v2257_v18 = vcombine.high %v7274_v35, %v7274_v35  ;;  %v1934_v43 = vcombine.high %v1926_v33, %v1926_v33 }
 0x355   : > { %v7338_v6 = vpop.permute.xlu0 %2392  ;;  %v2285_v58 = vrot.slane %v2255_v56, %v6542_v4  ;;  %v2338_v21 = vrot.slane %v2324_v29, %v6719_v12  ;;  %v2339_v16 = vcombine.high %v2331_v27, %v2331_v27  ;;  %v7342_v26 = vpop.permute.xlu1 %2420  ;;  %6239 = vpow2.f32 %v2306_v0 }
 0x356   : > { %v7345_v60 = vmul.f32 %v6236_v45, %v7333_v38  ;;  %v2314_v14 = vmul.f32 1.442695, %v2302_v24  ;;  %v1933_v47 = vrot.slane %v1919_v61, %v6719_v12  ;;  %v2303_v54 = vmul.f32 %v2281_v53, %v6722_v17 }
 0x357   : > { %v2310_v35 = vmul.f32 1.442695, %v2300_v59  ;;  %v1942_v9 = vrot.slane %v1926_v33, %v6719_v12  ;;  %v2301_v20 = vmul.f32 %v2273_v7, %v6722_v17  ;;  %6241 = vpow2.f32 %v2308_v34 }
 0x358   : > { %6243 = vrcp.f32 %v2709_v2  ;;  %v2347_v50 = vrot.slane %v2331_v27, %v6719_v12  ;;  %v1956_v30 = vrot.slane %v1934_v43, %v6719_v12  ;;  %v2289_v56 = vrot.slane %v2257_v18, %v6542_v4 }
 0x359   : > { %v7352_v22 = vpop.permute.xlu0 %2399  ;;  %v7357_v29 = vrot.slane %v2338_v21, %v6719_v12  ;;  %v7360_v55 = vrot.slane %v2339_v16, %v6719_v12  ;;  %v2340_v48 = vcombine.high %v2338_v21, %v2338_v21  ;;  %v7362_v33 = vpop.permute.xlu1 %2427  ;;  %v7365_v53 = vrot.slane %v1933_v47, %v6719_v12 }
 0x35a   : > { %v1935_v24 = vcombine.high %v1933_v47, %v1933_v47  ;;  %6245 = vpow2.f32 %v2314_v14  ;;  %v2316_v27 = vmul.f32 1.442695, %v2303_v54  ;;  %v2027_v0 = vrot.slane %v1942_v9, %v6542_v4 }
 0x35b   : > { %6247 = vpow2.f32 %v2310_v35  ;;  %v2312_v61 = vmul.f32 1.442695, %v2301_v20  ;;  %v2304_v7 = vmul.f32 %v2285_v58, %v6722_v17  ;;  %v2432_v59 = vrot.slane %v2347_v50, %v6542_v4 }
 0x35c   : > { %v2369_v34 = vcombine.high %v2347_v50, %v2347_v50  ;;  %v2031_v45 = vrot.slane %v1956_v30, %v6542_v4  ;;  %v1964_v2 = vcombine.high %v1942_v9, %v1942_v9  ;;  %v2448_v18 = vrot.slane %v7357_v29, %v6542_v4 }
 0x35d   : > { %v1974_v5 = vpop.permute.xlu0 %1973  ;;  %v2436_v43 = vrot.slane %v7360_v55, %v6542_v4  ;;  %v7376_v21 = vrot.slane %v2340_v48, %v6719_v12  ;;  %v1981_v16 = vpop.permute.xlu1 %1980  ;;  %v2043_v54 = vrot.slane %v7365_v53, %v6542_v4  ;;  %v7383_v35 = vrot.slane %v1935_v24, %v6719_v12 }
 0x35e   : > { %v2064_v14 = vmul.f32 %v2027_v0, %v1974_v5  ;;  %v7378_v47 = vpop.eup %6237  ;;  %v2065_v58 = vmul.f32 %v2031_v45, %v1981_v16  ;;  %6249 = vpow2.f32 %v2316_v27  ;;  %v2318_v20 = vmul.f32 1.442695, %v2304_v7 }
 0x35f   : > { %6251 = vpow2.f32 %v2312_v61  ;;  %v2305_v50 = vmul.f32 %v2289_v56, %v6722_v17  ;;  %v6240_v48 = vpop.eup %6239  ;;  %v2440_v0 = vrot.slane %v2369_v34, %v6542_v4  ;;  %v2035_v5 = vrot.slane %v1964_v2, %v6542_v4 }
 0x360   : > { %v7386_v9 = vadd.f32 %v7208_v11, %v2064_v14  ;;  %v1966_v16 = vcombine.high %v1956_v30, %v1956_v30  ;;  %v7392_v62 = vadd.f32 %v7252_v23, %v2065_v58  ;;  %v2469_v27 = vmul.f32 %v2432_v59, %v7237_v15 }
 0x361   : > { %v2002_v45 = vpop.permute.xlu0 %2001  ;;  %v6242_v24 = vpop.eup %6241  ;;  %v2371_v11 = vcombine.high %v7360_v55, %v7360_v55  ;;  %v2470_v34 = vmul.f32 %v2436_v43, %v7317_v51  ;;  %v2047_v30 = vrot.slane %v7383_v35, %v6542_v4  ;;  %6253 = vpow2.f32 %v2318_v20 }
 0x362   : > { %v1988_v61 = vpop.permute.xlu1 %1987  ;;  %v2068_v7 = vmul.f32 %v2043_v54, %v2002_v45  ;;  %v2477_v17 = vmul.f32 %v6240_v48, %v7386_v9  ;;  %v7398_v56 = vpop.eup %6243  ;;  %v2478_v23 = vmul.f32 %v6242_v24, %v7392_v62  ;;  %v2320_v55 = vmul.f32 1.442695, %v2305_v50 }
 0x363   : > { %v2066_v2 = vmul.f32 %v2035_v5, %v1988_v61  ;;  %v2039_v54 = vrot.slane %v1966_v16, %v6542_v4  ;;  %v1965_v43 = vcombine.high %v7365_v53, %v7365_v53  ;;  %v2473_v45 = vmul.f32 %v2448_v18, %v7281_v57 }
 0x364   : > { %v7404_v14 = vadd.f32 %v2477_v17, %v2469_v27  ;;  %v7407_v15 = vadd.f32 %v7287_v13, %v2068_v7  ;;  %v6246_v59 = vpop.eup %6245  ;;  %v7415_v48 = vadd.f32 %v2478_v23, %v2470_v34  ;;  %v2370_v13 = vcombine.high %v7357_v29, %v7357_v29 }
 0x365   : > { %v7410_v58 = vadd.f32 %v7211_v41, %v2066_v2  ;;  %v2009_v51 = vpop.permute.xlu0 %2008  ;;  %v6248_v5 = vpop.eup %6247  ;;  %v2452_v41 = vrot.slane %v7376_v21, %v6542_v4  ;;  %v2471_v16 = vmul.f32 %v2440_v0, %v7338_v6  ;;  %v2444_v61 = vrot.slane %v2371_v11, %v6542_v4 }
 0x366   : > { %v1995_v20 = vpop.permute.xlu1 %1994  ;;  %v2069_v50 = vmul.f32 %v2047_v30, %v2009_v51  ;;  %v2481_v24 = vmul.f32 %v6246_v59, %v7407_v15  ;;  %6255 = vpow2.f32 %v2320_v55  ;;  %v2051_v18 = vrot.slane %v1965_v43, %v6542_v4 }
 0x367   : > { %v2067_v27 = vmul.f32 %v2039_v54, %v1995_v20  ;;  %v2479_v53 = vmul.f32 %v6248_v5, %v7410_v58  ;;  %v1967_v34 = vcombine.high %v7383_v35, %v7383_v35  ;;  %v2474_v11 = vmul.f32 %v2452_v41, %v7322_v42 }
 0x368   : > { %v7426_v7 = vadd.f32 %v2481_v24, %v2473_v45  ;;  %v7429_v57 = vadd.f32 %v7284_v3, %v2069_v50  ;;  %v6250_v29 = vpop.eup %6249  ;;  %v2472_v55 = vmul.f32 %v2444_v61, %v7352_v22  ;;  %v2456_v35 = vrot.slane %v2370_v13, %v6542_v4 }
 0x369   : > { %v1689_v17 = vpop.permute.xlu0 %1688  ;;  %v7434_v2 = vadd.f32 %v2479_v53, %v2471_v16  ;;  %v7437_v6 = vadd.f32 %v7255_v28, %v2067_v27  ;;  %v6252_v0 = vpop.eup %6251  ;;  %v2372_v51 = vcombine.high %v7376_v21, %v7376_v21  ;;  %v2055_v5 = vrot.slane %v1967_v34, %v6542_v4  ;;  %v8862_v27 = vld [vmem:[#allocation20_spill] sm:$0xff] }
 0x36a   : > { %v2016_v30 = vpop.permute.xlu1 %2015  ;;  %v1739_v3 = vmul.f32 %v1689_v17, %v7202_v44  ;;  %v2482_v23 = vmul.f32 %v6250_v29, %v7429_v57  ;;  %v2475_v20 = vmul.f32 %v2456_v35, %v7342_v26  ;;  %v2711_v53 = vadd.f32 1.0, %v8862_v27  ;;  %v7477_v35 = vld [vmem:[%s8781_s2 + $0x120] ss:$0 sm:$0xff]  ;;  %v8867_v27 = vld [vmem:[#allocation9_spill] sm:$0xff] }
 0x36b   : > { %v2070_v59 = vmul.f32 %v2051_v18, %v2016_v30  ;;  %v2480_v54 = vmul.f32 %v6252_v0, %v7437_v6  ;;  %v6254_v22 = vpop.eup %6253  ;;  %v2460_v61 = vrot.slane %v2372_v51, %v6542_v4  ;;  %v8864_v51 = vld [vmem:[#allocation5_spill] sm:$0xff] }
 0x36c   : > { %v1747_v28 = vsel %vm649_vm2, %v1739_v3, 0.0  ;;  %v7448_v43 = vadd.f32 %v2482_v23, %v2474_v11  ;;  %6257 = vrcp.f32 %v2711_v53  ;;  %v7499_v53 = vmul.f32 %v7477_v35, %v8867_v27 }
 0x36d   : > { %v1748_v42 = vrot.slane %v1747_v28, 4  ;;  %v7451_v44 = vadd.f32 %v2480_v54, %v2472_v55  ;;  %v7454_v45 = vadd.f32 %v7326_v52, %v2070_v59  ;;  %v1703_v13 = vpop.permute.xlu0 %1702  ;;  %v8863_v55 = vld [vmem:[#allocation19_spill] sm:$0xff] }
 0x36e   : > { %v2023_v50 = vpop.permute.xlu1 %2022  ;;  %v1741_v21 = vmul.f32 %v1703_v13, %v7204_v8  ;;  %v2476_v8 = vmul.f32 %v2460_v61, %v7362_v33  ;;  %v7472_v59 = vadd.f32 1.0, %v8863_v55  ;;  %v7481_v33 = vmul.f32 %v7378_v47, %v8864_v51 }
 0x36f   : > { %v1749_v24 = vadd.f32 %v1748_v42, %v1747_v28  ;;  %v2071_v41 = vmul.f32 %v2055_v5, %v2023_v50  ;;  %v2483_v16 = vmul.f32 %v6254_v22, %v7454_v45  ;;  %v8865_v42 = vld [vmem:[#allocation6_spill] sm:$0xff] }
 0x370   : > { %v1761_v18 = vsel %vm649_vm2, %v1741_v21, 0.0  ;;  %v6256_v26 = vpop.eup %6255  ;;  %v7489_v5 = vmul.f32 %v7398_v56, %v8865_v42  ;;  %v8866_v21 = vld [vmem:[#allocation10_spill] sm:$0xff]  ;;  %6259 = vrcp.f32 %v7472_v59 }
 0x371   : > { %v1750_v29 = vrot.slane %v1749_v24, 2  ;;  %v7463_v52 = vadd.f32 %v7345_v60, %v2071_v41  ;;  %v7465_v17 = vadd.f32 %v2483_v16, %v2475_v20  ;;  %v1762_v34 = vrot.slane %v1761_v18, 4  ;;  %v1710_v11 = vpop.permute.xlu0 %1709 }
 0x372   : > { %v1696_v0 = vpop.permute.xlu1 %1695  ;;  %v1742_v3 = vmul.f32 %v1710_v11, %v7241_v49  ;;  %v7495_v16 = vmul.f32 %v7477_v35, %v8866_v21 }
 0x373   : > { %v1740_v30 = vmul.f32 %v1696_v0, %v7239_v1  ;;  %v2484_v23 = vmul.f32 %v6256_v26, %v7463_v52  ;;  %v1751_v60 = vadd.f32 %v1750_v29, %v1749_v24  ;;  %v1763_v54 = vadd.f32 %v1762_v34, %v1761_v18 }
 0x374   : > { %v1768_v49 = vsel %vm649_vm2, %v1742_v3, 0.0 }
 0x375   : > { %v1754_v1 = vsel %vm649_vm2, %v1740_v30, 0.0  ;;  %v7485_v28 = vadd.f32 %v2484_v23, %v2476_v8  ;;  %v1764_v22 = vrot.slane %v1763_v54, 2  ;;  %v1769_v50 = vrot.slane %v1768_v49, 4  ;;  %v1717_v24 = vpop.permute.xlu0 %1716 }
 0x376   : > { %v1755_v20 = vrot.slane %v1754_v1, 4  ;;  %v1724_v13 = vpop.permute.xlu1 %1723  ;;  %v1743_v47 = vmul.f32 %v1717_v24, %v7265_v37  ;;  %v1752_v61 = vrot.slane %v1751_v60, 1 }
 0x377   : > { %v1744_v41 = vmul.f32 %v1724_v13, %v7263_v39  ;;  %v1765_v56 = vadd.f32 %v1764_v22, %v1763_v54  ;;  %v1770_v18 = vadd.f32 %v1769_v50, %v1768_v49  ;;  %v7507_v13 = vpop.eup %6257 }
 0x378   : > { %v1756_v29 = vadd.f32 %v1755_v20, %v1754_v1  ;;  %v1775_v39 = vsel %vm649_vm2, %v1743_v47, 0.0  ;;  %v1753_v54 = vadd.f32 %v1752_v61, %v1751_v60 }
 0x379   : > { %v1782_v26 = vsel %vm649_vm2, %v1744_v41, 0.0  ;;  %v1766_v34 = vrot.slane %v1765_v56, 1  ;;  %v1771_v0 = vrot.slane %v1770_v18, 2  ;;  %v1284_v30 = vpop.permute.xlu0 %1283  ;;  %v1776_v3 = vrot.slane %v1775_v39, 4 }
 0x37a   : > { %v1757_v37 = vrot.slane %v1756_v29, 2  ;;  %v1783_v11 = vrot.slane %v1782_v26, 4  ;;  %v1731_v8 = vpop.permute.xlu1 %1730  ;;  %v1334_v55 = vmul.f32 %v1284_v30, %v7177_v63 }
 0x37b   : > { %v1745_v23 = vmul.f32 %v1731_v8, %v7309_v10  ;;  %v1772_v1 = vadd.f32 %v1771_v0, %v1770_v18  ;;  %v1767_v42 = vadd.f32 %v1766_v34, %v1765_v56  ;;  %v1777_v22 = vadd.f32 %v1776_v3, %v1775_v39 }
 0x37c   : > { %v1758_v51 = vadd.f32 %v1757_v37, %v1756_v29  ;;  %v1784_v49 = vadd.f32 %v1783_v11, %v1782_v26  ;;  %v1342_v50 = vsel %vm649_vm2, %v1334_v55, 0.0 }
 0x37d   : > { %v1789_v20 = vsel %vm649_vm2, %v1745_v23, 0.0  ;;  %v1773_v41 = vrot.slane %v1772_v1, 1  ;;  %v1326_v27 = vpop.permute.xlu0 %1325  ;;  %v1778_v63 = vrot.slane %v1777_v22, 2  ;;  %v1343_v60 = vrot.slane %v1342_v50, 4 }
 0x37e   : > { %v1759_v24 = vrot.slane %v1758_v51, 1  ;;  %v1785_v47 = vrot.slane %v1784_v49, 2  ;;  %v1790_v21 = vrot.slane %v1789_v20, 4  ;;  %v1738_v10 = vpop.permute.xlu1 %1737  ;;  %v1340_v29 = vmul.f32 %v1326_v27, %v7260_v25 }
 0x37f   : > { %v1746_v61 = vmul.f32 %v1738_v10, %v7333_v38  ;;  %v1774_v18 = vadd.f32 %v1773_v41, %v1772_v1  ;;  %v1779_v34 = vadd.f32 %v1778_v63, %v1777_v22  ;;  %v1344_v37 = vadd.f32 %v1343_v60, %v1342_v50 }
 0x380   : > { %v1760_v56 = vadd.f32 %v1759_v24, %v1758_v51  ;;  %v1786_v26 = vadd.f32 %v1785_v47, %v1784_v49  ;;  %v1791_v39 = vadd.f32 %v1790_v21, %v1789_v20  ;;  %v1384_v11 = vsel %vm649_vm2, %v1340_v29, 0.0 }
 0x381   : > { %v1796_v0 = vsel %vm649_vm2, %v1746_v61, 0.0  ;;  %v1333_v12 = vpop.permute.xlu0 %1332  ;;  %v1780_v25 = vrot.slane %v1779_v34, 1  ;;  %v1345_v51 = vrot.slane %v1344_v37, 2  ;;  %v1385_v1 = vrot.slane %v1384_v11, 4 }
 0x382   : > { %v2644_v8 = vsel %vm2621_vm11, %v1760_v56, %v1753_v54  ;;  %v1787_v30 = vrot.slane %v1786_v26, 1  ;;  %v1792_v3 = vrot.slane %v1791_v39, 2  ;;  %v1797_v23 = vrot.slane %v1796_v0, 4  ;;  %v1291_v55 = vpop.permute.xlu1 %1290 }
 0x383   : > { %v2645_v38 = vsel %vm2623_vm12, %v1767_v42, %v2644_v8  ;;  %v1781_v24 = vadd.f32 %v1780_v25, %v1779_v34  ;;  %v1386_v41 = vadd.f32 %v1385_v1, %v1384_v11  ;;  %v1335_v54 = vmul.f32 %v1291_v55, %v7200_v19 }
 0x384   : > { %v2646_v49 = vsel %vm2625_vm13, %v1774_v18, %v2645_v38  ;;  %v1788_v22 = vadd.f32 %v1787_v30, %v1786_v26  ;;  %v1793_v20 = vadd.f32 %v1792_v3, %v1791_v39  ;;  %v1798_v50 = vadd.f32 %v1797_v23, %v1796_v0 }
 0x385   : > { %v1341_v10 = vmul.f32 %v1333_v12, %v7307_v46  ;;  %v2499_v42 = vpop.permute.xlu0 %2498  ;;  %v2647_v63 = vsel %vm2627_vm14, %v1781_v24, %v2646_v49  ;;  %v1346_v60 = vadd.f32 %v1345_v51, %v1344_v37  ;;  %v1387_v61 = vrot.slane %v1386_v41, 2 }
 0x386   : > { %v1794_v47 = vrot.slane %v1793_v20, 1  ;;  %v1799_v21 = vrot.slane %v1798_v50, 2  ;;  %v1298_v27 = vpop.permute.xlu1 %1297  ;;  %v1349_v29 = vsel %vm649_vm2, %v1335_v54, 0.0  ;;  %v2648_v18 = vsel %vm2629_vm15, %v1788_v22, %v2647_v63 }
 0x387   : > { %v1350_v39 = vrot.slane %v1349_v29, 4  ;;  %v1388_v19 = vadd.f32 %v1387_v61, %v1386_v41  ;;  %v1391_v34 = vsel %vm649_vm2, %v1341_v10, 0.0  ;;  %v1336_v0 = vmul.f32 %v1298_v27, %v7175_v31 }
 0x388   : > { %v1795_v56 = vadd.f32 %v1794_v47, %v1793_v20  ;;  %v1800_v26 = vadd.f32 %v1799_v21, %v1798_v50  ;;  %v1392_v8 = vrot.slane %v1391_v34, 4  ;;  %v1347_v3 = vrot.slane %v1346_v60, 1 }
 0x389   : > { %v1351_v11 = vadd.f32 %v1350_v39, %v1349_v29  ;;  %v2513_v30 = vpop.permute.xlu0 %2512  ;;  %v1356_v23 = vsel %vm649_vm2, %v1336_v0, 0.0  ;;  %v2549_v55 = vmul.f32 %v2499_v42, %v7404_v14  ;;  %v1389_v22 = vrot.slane %v1388_v19, 1 }
 0x38a   : > { %v2649_v12 = vsel %vm2631_vm3, %v1795_v56, %v2648_v18  ;;  %v1801_v46 = vrot.slane %v1800_v26, 1  ;;  %v1305_v37 = vpop.permute.xlu1 %1304  ;;  %v1393_v1 = vadd.f32 %v1392_v8, %v1391_v34  ;;  %v1357_v49 = vrot.slane %v1356_v23, 4 }
 0x38b   : > { %v1337_v38 = vmul.f32 %v1305_v37, %v7198_v40  ;;  %v1352_v51 = vrot.slane %v1351_v11, 2  ;;  %v2557_v31 = vsel %vm649_vm2, %v2549_v55, 0.0  ;;  %v2551_v50 = vmul.f32 %v2513_v30, %v7434_v2 }
 0x38c   : > { %v1802_v25 = vadd.f32 %v1801_v46, %v1800_v26  ;;  %v1394_v54 = vrot.slane %v1393_v1, 2  ;;  %v1358_v47 = vadd.f32 %v1357_v49, %v1356_v23  ;;  %v2558_v10 = vrot.slane %v2557_v31, 4 }
 0x38d   : > { %v1363_v20 = vsel %vm649_vm2, %v1337_v38, 0.0  ;;  %v1353_v41 = vadd.f32 %v1352_v51, %v1351_v11  ;;  %v2520_v14 = vpop.permute.xlu0 %2519  ;;  %v2571_v42 = vsel %vm649_vm2, %v2551_v50, 0.0  ;;  %v1348_v34 = vadd.f32 %v1347_v3, %v1346_v60 }
 0x38e   : > { %v2650_v24 = vsel %vm2633_vm4, %v1802_v25, %v2649_v12  ;;  %v1312_v21 = vpop.permute.xlu1 %1311  ;;  %v1364_v27 = vrot.slane %v1363_v20, 4  ;;  %v7533_v61 = vadd.f32 %v1394_v54, %v1393_v1  ;;  %v1359_v29 = vrot.slane %v1358_v47, 2 }
 0x38f   : > { %v2694_v40 = vadd.f32 %v7495_v16, %v2650_v24  ;;  %v1354_v63 = vrot.slane %v1353_v41, 1  ;;  %v2572_v56 = vrot.slane %v2571_v42, 4  ;;  %v2559_v18 = vadd.f32 %v2558_v10, %v2557_v31 }
 0x390   : > { %v1365_v26 = vadd.f32 %v1364_v27, %v1363_v20  ;;  %v1338_v39 = vmul.f32 %v1312_v21, %v7223_v32  ;;  %v7539_v0 = vadd.f32 %v1389_v22, %v1388_v19  ;;  %v1360_v16 = vadd.f32 %v1359_v29, %v1358_v47 }
 0x391   : > { %v7536_v2 = vmul.f32 %v7481_v33, %v2694_v40  ;;  %v2573_v12 = vadd.f32 %v2572_v56, %v2571_v42  ;;  %v2527_v11 = vpop.permute.xlu0 %2526  ;;  %v2560_v8 = vrot.slane %v2559_v18, 2  ;;  %v2552_v23 = vmul.f32 %v2520_v14, %v7451_v44 }
 0x392   : > { %v1319_v46 = vpop.permute.xlu1 %1318  ;;  %v1366_v37 = vrot.slane %v1365_v26, 2  ;;  %v1370_v30 = vsel %vm649_vm2, %v1338_v39, 0.0  ;;  %v1355_v55 = vadd.f32 %v1354_v63, %v1353_v41  ;;  %v1396_v33 = vrot.slane %v7533_v61, 1 }
 0x393   : > { %v1361_v38 = vrot.slane %v1360_v16, 1  ;;  %v2574_v25 = vrot.slane %v2573_v12, 2  ;;  %v2561_v51 = vadd.f32 %v2560_v8, %v2559_v18  ;;  %v1371_v60 = vrot.slane %v1370_v30, 4 }
 0x394   : > { %v1367_v32 = vadd.f32 %v1366_v37, %v1365_v26  ;;  %v2578_v19 = vsel %vm649_vm2, %v2552_v23, 0.0  ;;  %v1339_v22 = vmul.f32 %v1319_v46, %v7221_v36  ;;  %v2553_v41 = vmul.f32 %v2527_v11, %v7426_v7 }
 0x395   : > { %v1362_v3 = vadd.f32 %v1361_v38, %v1360_v16  ;;  %v2575_v1 = vadd.f32 %v2574_v25, %v2573_v12  ;;  %v2579_v49 = vrot.slane %v2578_v19, 4  ;;  %v2534_v20 = vpop.permute.xlu0 %2533  ;;  %v2562_v50 = vrot.slane %v2561_v51, 1 }
 0x396   : > { %v2506_v31 = vpop.permute.xlu1 %2505  ;;  %v1368_v24 = vrot.slane %v1367_v32, 1  ;;  %v1372_v44 = vadd.f32 %v1371_v60, %v1370_v30  ;;  %v2622_v54 = vsel %vm2621_vm11, %v1355_v55, %v1348_v34  ;;  %v1377_v14 = vsel %vm649_vm2, %v1339_v22, 0.0 }
 0x397   : > { %v2576_v47 = vrot.slane %v2575_v1, 1  ;;  %v2580_v21 = vadd.f32 %v2579_v49, %v2578_v19  ;;  %v2624_v40 = vsel %vm2623_vm12, %v1362_v3, %v2622_v54  ;;  %v7550_v10 = vadd.f32 %v2562_v50, %v2561_v51 }
 0x398   : > { %v1373_v27 = vrot.slane %v1372_v44, 2  ;;  %v1378_v42 = vrot.slane %v1377_v14, 4  ;;  %v1369_v36 = vadd.f32 %v1368_v24, %v1367_v32  ;;  %v2585_v29 = vsel %vm649_vm2, %v2553_v41, 0.0 }
 0x399   : > { %v2581_v63 = vrot.slane %v2580_v21, 2  ;;  %v2550_v56 = vmul.f32 %v2506_v31, %v7415_v48  ;;  %v2101_v18 = vpop.permute.xlu0 %2100  ;;  %v7554_v26 = vadd.f32 %v2576_v47, %v2575_v1  ;;  %v2586_v16 = vrot.slane %v2585_v29, 4 }
 0x39a   : > { %v2094_v7 = vpop.permute.xlu1 %2093  ;;  %v1374_v39 = vadd.f32 %v1373_v27, %v1372_v44  ;;  %v1379_v34 = vadd.f32 %v1378_v42, %v1377_v14  ;;  %v2554_v11 = vmul.f32 %v2534_v20, %v7448_v43  ;;  %v2145_v8 = vmul.f32 %v2101_v18, %v7392_v62 }
 0x39b   : > { %v2582_v12 = vadd.f32 %v2581_v63, %v2580_v21  ;;  %v2564_v46 = vsel %vm649_vm2, %v2550_v56, 0.0  ;;  %v2587_v23 = vadd.f32 %v2586_v16, %v2585_v29  ;;  %v2144_v51 = vmul.f32 %v2094_v7, %v7386_v9 }
 0x39c   : > { %v1375_v37 = vrot.slane %v1374_v39, 1  ;;  %v1380_v30 = vrot.slane %v1379_v34, 2  ;;  %v2565_v55 = vrot.slane %v2564_v46, 4  ;;  %v2592_v48 = vsel %vm649_vm2, %v2554_v11, 0.0 }
 0x39d   : > { %v2583_v38 = vrot.slane %v2582_v12, 1  ;;  %v2159_v25 = vsel %vm649_vm2, %v2145_v8, 0.0  ;;  %v2108_v32 = vpop.permute.xlu0 %2107  ;;  %v2588_v3 = vrot.slane %v2587_v23, 2  ;;  %v2626_v43 = vsel %vm2625_vm13, %v1369_v36, %v2624_v40 }
 0x39e   : > { %v1376_v60 = vadd.f32 %v1375_v37, %v1374_v39  ;;  %v1381_v19 = vadd.f32 %v1380_v30, %v1379_v34  ;;  %v2566_v1 = vadd.f32 %v2565_v55, %v2564_v46  ;;  %v2129_v49 = vpop.permute.xlu1 %2128  ;;  %v2593_v62 = vrot.slane %v2592_v48, 4 }
 0x39f   : > { %v2160_v22 = vrot.slane %v2159_v25, 4  ;;  %v2152_v31 = vsel %vm649_vm2, %v2144_v51, 0.0  ;;  %v2584_v20 = vadd.f32 %v2583_v38, %v2582_v12  ;;  %v2589_v24 = vadd.f32 %v2588_v3, %v2587_v23 }
 0x3a0   : > { %v1382_v50 = vrot.slane %v1381_v19, 1  ;;  %v2567_v44 = vrot.slane %v2566_v1, 2  ;;  %v2594_v41 = vadd.f32 %v2593_v62, %v2592_v48  ;;  %v2153_v47 = vrot.slane %v2152_v31, 4 }
 0x3a1   : > { %v2161_v54 = vadd.f32 %v2160_v22, %v2159_v25  ;;  %v2146_v9 = vmul.f32 %v2108_v32, %v7410_v58  ;;  %v2115_v21 = vpop.permute.xlu0 %2114  ;;  %v2628_v14 = vsel %vm2627_vm14, %v1376_v60, %v2626_v43  ;;  %v2149_v40 = vmul.f32 %v2129_v49, %v7429_v57 }
 0x3a2   : > { %v1383_v27 = vadd.f32 %v1382_v50, %v1381_v19  ;;  %v2568_v42 = vadd.f32 %v2567_v44, %v2566_v1  ;;  %v2595_v36 = vrot.slane %v2594_v41, 2  ;;  %v2154_v29 = vadd.f32 %v2153_v47, %v2152_v31  ;;  %v2136_v16 = vpop.permute.xlu1 %2135 }
 0x3a3   : > { %v2162_v63 = vrot.slane %v2161_v54, 2  ;;  %v2166_v56 = vsel %vm649_vm2, %v2146_v9, 0.0  ;;  %v2590_v7 = vrot.slane %v2589_v24, 1  ;;  %v2187_v11 = vsel %vm649_vm2, %v2149_v40, 0.0 }
 0x3a4   : > { %v2630_v18 = vsel %vm2629_vm15, %v1383_v27, %v2628_v14  ;;  %v2569_v39 = vrot.slane %v2568_v42, 1  ;;  %v2167_v34 = vrot.slane %v2166_v56, 4  ;;  %v2596_v12 = vadd.f32 %v2595_v36, %v2594_v41 }
 0x3a5   : > { %v2163_v58 = vadd.f32 %v2162_v63, %v2161_v54  ;;  %v2155_v46 = vrot.slane %v2154_v29, 2  ;;  %v2188_v30 = vrot.slane %v2187_v11, 4  ;;  %v2147_v57 = vmul.f32 %v2115_v21, %v7437_v6  ;;  %v2122_v23 = vpop.permute.xlu0 %2121 }
 0x3a6   : > { %v2570_v8 = vadd.f32 %v2569_v39, %v2568_v42  ;;  %v2168_v37 = vadd.f32 %v2167_v34, %v2166_v56  ;;  %v2597_v55 = vrot.slane %v2596_v12, 1  ;;  %v2150_v25 = vmul.f32 %v2136_v16, %v7454_v45  ;;  %v2143_v50 = vpop.permute.xlu1 %2142 }
 0x3a7   : > { %v2164_v38 = vrot.slane %v2163_v58, 1  ;;  %v2156_v48 = vadd.f32 %v2155_v46, %v2154_v29  ;;  %v2189_v60 = vadd.f32 %v2188_v30, %v2187_v11  ;;  %v2173_v19 = vsel %vm649_vm2, %v2147_v57, 0.0 }
 0x3a8   : > { %v2676_v51 = vsel %vm2621_vm11, %v2570_v8, %v7550_v10  ;;  %v2169_v32 = vrot.slane %v2168_v37, 2  ;;  %v2591_v3 = vadd.f32 %v2590_v7, %v2589_v24  ;;  %v2598_v6 = vadd.f32 %v2597_v55, %v2596_v12 }
 0x3a9   : > { %v2677_v1 = vsel %vm2623_vm12, %v7554_v26, %v2676_v51  ;;  %v2165_v49 = vadd.f32 %v2164_v38, %v2163_v58  ;;  %v2157_v43 = vrot.slane %v2156_v48, 1  ;;  %v2174_v31 = vrot.slane %v2173_v19, 4  ;;  %v2541_v9 = vpop.permute.xlu0 %2540 }
 0x3aa   : > { %v2678_v62 = vsel %vm2625_vm13, %v2584_v20, %v2677_v1  ;;  %v2170_v22 = vadd.f32 %v2169_v32, %v2168_v37  ;;  %v2194_v10 = vsel %vm649_vm2, %v2150_v25, 0.0  ;;  %v2148_v41 = vmul.f32 %v2122_v23, %v7407_v15  ;;  %v2548_v12 = vpop.permute.xlu1 %2547 }
 0x3ab   : > { %v2679_v45 = vsel %vm2627_vm14, %v2591_v3, %v2678_v62  ;;  %v2158_v44 = vadd.f32 %v2157_v43, %v2156_v48  ;;  %v2190_v26 = vrot.slane %v2189_v60, 2  ;;  %v2175_v47 = vadd.f32 %v2174_v31, %v2173_v19 }
 0x3ac   : > { %v7582_v24 = vsel %vm2629_vm15, %v2598_v6, %v2679_v45  ;;  %v2171_v54 = vrot.slane %v2170_v22, 1  ;;  %v2195_v20 = vrot.slane %v2194_v10, 4  ;;  %v2180_v14 = vsel %vm649_vm2, %v2148_v41, 0.0 }
 0x3ad   : > { %v2660_v21 = vsel %vm2621_vm11, %v2165_v49, %v2158_v44  ;;  %v2151_v27 = vmul.f32 %v2143_v50, %v7463_v52  ;;  %v1397_v42 = vadd.f32 %v1396_v33, %v7533_v61  ;;  %v2176_v15 = vrot.slane %v2175_v47, 2 }
 0x3ae   : > { %v2172_v40 = vadd.f32 %v2171_v54, %v2170_v22  ;;  %v2181_v36 = vrot.slane %v2180_v14, 4  ;;  %v2196_v63 = vadd.f32 %v2195_v20, %v2194_v10  ;;  %v2632_v56 = vsel %vm2631_vm3, %v7539_v0, %v2630_v18  ;;  %v8868_v54 = vld [vmem:[#allocation11_spill] sm:$0xff] }
 0x3af   : > { %v2201_v29 = vsel %vm649_vm2, %v2151_v27, 0.0  ;;  %v2555_v7 = vmul.f32 %v2541_v9, %v7465_v17  ;;  %v2191_v34 = vadd.f32 %v2190_v26, %v2189_v60  ;;  %v2177_v16 = vadd.f32 %v2176_v15, %v2175_v47  ;;  %v6260_v26 = vpop.eup %6259  ;;  %v8869_v9 = vld [vmem:[#allocation8_spill] sm:$0xff] }
 0x3b0   : > { %v2661_v39 = vsel %vm2623_vm12, %v2172_v40, %v2660_v21  ;;  %v2182_v52 = vadd.f32 %v2181_v36, %v2180_v14  ;;  %v2197_v58 = vrot.slane %v2196_v63, 2  ;;  %v2202_v46 = vrot.slane %v2201_v29, 4  ;;  %v8870_v15 = vld [vmem:[#allocation12_spill] sm:$0xff] }
 0x3b1   : > { %v2634_v61 = vsel %vm2633_vm4, %v1397_v42, %v2632_v56  ;;  %v2599_v33 = vsel %vm649_vm2, %v2555_v7, 0.0  ;;  %v2178_v11 = vrot.slane %v2177_v16, 1  ;;  %v2556_v18 = vmul.f32 %v2548_v12, %v7485_v28  ;;  %v2869_v12 = vld [vmem:[%s8782_s3 + $0x10] sm:$0xff] }
 0x3b2   : > { %v2183_v8 = vrot.slane %v2182_v52, 2  ;;  %v2693_v37 = vadd.f32 %v7499_v53, %v2634_v61  ;;  %v2600_v30 = vrot.slane %v2599_v33, 4  ;;  %v2198_v17 = vadd.f32 %v2197_v58, %v2196_v63  ;;  %v2870_v58 = vld [vmem:[%s8782_s3 + $0x18] sm:$0xff] }
 0x3b3   : > { %v2203_v0 = vadd.f32 %v2202_v46, %v2201_v29  ;;  %v2179_v57 = vadd.f32 %v2178_v11, %v2177_v16  ;;  %v2192_v48 = vrot.slane %v2191_v34, 1  ;;  %v2606_v32 = vsel %vm649_vm2, %v2556_v18, 0.0  ;;  %v8871_v29 = vld [vmem:[#allocation7_spill] sm:$0xff]  ;;  %v2970_v46 = vld [vmem:[%s8782_s3 + $0x30] sm:$0xff] }
 0x3b4   : > { %v2184_v23 = vadd.f32 %v2183_v8, %v2182_v52  ;;  %v2725_v55 = vmul.f32 %v7489_v5, %v2693_v37  ;;  %v2601_v38 = vadd.f32 %v2600_v30, %v2599_v33  ;;  %v2199_v25 = vrot.slane %v2198_v17, 1  ;;  %v2969_v16 = vld [vmem:[%s8782_s3 + $0x28] sm:$0xff]  ;;  %v2971_v33 = vld [vmem:[%s8782_s3 + $0x38] sm:$0xff] }
 0x3b5   : > { %v2204_v51 = vrot.slane %v2203_v0, 2  ;;  %v2662_v60 = vsel %vm2625_vm13, %v2179_v57, %v2661_v39  ;;  %v2607_v19 = vrot.slane %v2606_v32, 4  ;;  %v2193_v49 = vadd.f32 %v2192_v48, %v2191_v34  ;;  %v2860_v57 = vld [vmem:[%s8780_s1 + $0x38] sm:$0xff] }
 0x3b6   : > { %v2185_v53 = vrot.slane %v2184_v23, 1  ;;  %5834 = vmatprep.mubr.msk.f32.mxu0 %vm649_vm2, %v2725_v55  ;;  %v2602_v59 = vrot.slane %v2601_v38, 2  ;;  %v2200_v6 = vadd.f32 %v2199_v25, %v2198_v17  ;;  %v2723_v21 = vmul.f32 %v7507_v13, %v8869_v9  ;;  %v2867_v13 = vld [vmem:[%s8782_s3] sm:$0xff] }
 0x3b7   : > { %v2205_v3 = vadd.f32 %v2204_v51, %v2203_v0  ;;  %5835 = vmatmul.mubr.msk.f32.vlgmr.msra.gmra.mrb[12].mxu0 %vm649_vm2, %v7536_v2  ;;  %v2608_v5 = vadd.f32 %v2607_v19, %v2606_v32  ;;  %v2691_v2 = vmul.f32 %v7477_v35, %v8868_v54  ;;  %v2692_v36 = vmul.f32 %v7477_v35, %v8870_v15  ;;  %v2968_v35 = vld [vmem:[%s8782_s3 + $0x20] sm:$0xff]  ;;  %v3156_v54 = vld [vmem:[%s8782_s3 + $0x78] sm:$0xff] }
 0x3b8   : > { %v2186_v28 = vadd.f32 %v2185_v53, %v2184_v23  ;;  %v2603_v1 = vadd.f32 %v2602_v59, %v2601_v38  ;;  %v2724_v56 = vmul.f32 %v6260_v26, %v8871_v29  ;;  %v6055_v52 = vpack.c.bf16 %v2969_v16, %v2968_v35  ;;  %v2859_v23 = vld [vmem:[%s8780_s1 + $0x30] sm:$0xff]  ;;  %v2861_v32 = vld [vmem:[%s8780_s1 + $0x40] sm:$0xff]  ;;  %v3410_v15 = vld [vmem:[%s8782_s3 + $0xd8] sm:$0xff] }
 0x3b9   : > { %v2206_v43 = vrot.slane %v2205_v3, 1  ;;  %v2609_v31 = vrot.slane %v2608_v5, 2  ;;  %v6051_v61 = vpack.c.bf16 %v2870_v58, %v2869_v12  ;;  %v6059_v11 = vpack.c.bf16 %v2971_v33, %v2970_v46  ;;  %v3322_v26 = vld [vmem:[%s8782_s3 + $0xc0] sm:$0xff] }
 0x3ba   : > { %v2663_v62 = vsel %vm2627_vm14, %v2186_v28, %v2662_v60  ;;  %v2604_v22 = vrot.slane %v2603_v1, 1  ;;  %6056 = vmatprep.subr.bf16.mxu0 %v6055_v52  ;;  %v3057_v29 = vld [vmem:[%s8782_s3 + $0x40] sm:$0xf] }
 0x3bb   : > { %v2664_v50 = vsel %vm2629_vm15, %v2193_v49, %v2663_v62  ;;  %v2207_v45 = vadd.f32 %v2206_v43, %v2205_v3  ;;  %v2610_v10 = vadd.f32 %v2609_v31, %v2608_v5  ;;  %6058 = vmatpush3.bf16.msra.mxu0 %v6055_v52  ;;  %v2862_v3 = vld [vmem:[%s8780_s1 + $0x48] sm:$0xff]  ;;  %v3152_v5 = vld [vmem:[%s8782_s3 + $0x58] sm:$0xff]  ;;  %v3153_v62 = vld [vmem:[%s8782_s3 + $0x60] sm:$0xff] }
 0x3bc   : > { %v2605_v44 = vadd.f32 %v2604_v22, %v2603_v1  ;;  %v2665_v41 = vsel %vm2631_vm3, %v2200_v6, %v2664_v50  ;;  %6060 = vmatprep.subr.bf16.mxu0 %v6059_v11  ;;  %v3151_v1 = vld [vmem:[%s8782_s3 + $0x50] sm:$0xff]  ;;  %v3317_v49 = vld [vmem:[%s8782_s3 + $0x98] sm:$0xff]  ;;  %v3318_v6 = vld [vmem:[%s8782_s3 + $0xa0] sm:$0xff] }
 0x3bd   : > { %v2666_v47 = vsel %vm2633_vm4, %v2207_v45, %v2665_v41  ;;  %v2611_v14 = vrot.slane %v2610_v10, 1  ;;  %v6063_v43 = vpack.c.bf16 %v3152_v5, %v3151_v1  ;;  %v3154_v22 = vld [vmem:[%s8782_s3 + $0x68] sm:$0xff]  ;;  %v6079_v31 = vpack.c.bf16 %v3318_v6, %v3317_v49 }
 0x3be   : > { %v2681_v20 = vsel %vm2631_vm3, %v2605_v44, %v7582_v24  ;;  %v2695_v27 = vadd.f32 %v2691_v2, %v2666_v47  ;;  %v2868_v24 = vld [vmem:[%s8782_s3 + $0x8] sm:$0xff]  ;;  %v6067_v50 = vpack.c.bf16 %v3154_v22, %v3153_v62  ;;  %v3320_v44 = vld [vmem:[%s8782_s3 + $0xb0] sm:$0xff]  ;;  %v3321_v2 = vld [vmem:[%s8782_s3 + $0xb8] sm:$0xff] }
 0x3bf   : > { %v2612_v42 = vadd.f32 %v2611_v14, %v2610_v10  ;;  %v6047_v34 = vpack.c.bf16 %v2868_v24, %v2867_v13  ;;  %6062 = vmatpush3.bf16.msra.mxu0 %v6059_v11  ;;  %v3319_v45 = vld [vmem:[%s8782_s3 + $0xa8] sm:$0xff]  ;;  %v3155_v10 = vld [vmem:[%s8782_s3 + $0x70] sm:$0xff]  ;;  %v6087_v9 = vpack.c.bf16 %v3322_v26, %v3321_v2 }
 0x3c0   : > { %v2727_v40 = vmul.f32 %v2723_v21, %v2695_v27  ;;  %v6083_v41 = vpack.c.bf16 %v3320_v44, %v3319_v45  ;;  %6080 = vmatprep.subr.bf16.mxu0 %v6079_v31  ;;  %v6071_v47 = vpack.c.bf16 %v3156_v54, %v3155_v10  ;;  %v3157_v21 = vld [vmem:[%s8782_s3 + $0x80] sm:$0xff]  ;;  %v3323_v14 = vld [vmem:[%s8782_s3 + $0xc8] sm:$0xff]  ;;  %v3324_v27 = vld [vmem:[%s8782_s3 + $0xd0] sm:$0xff] }
 0x3c1   : > { %v2682_v63 = vsel %vm2633_vm4, %v2612_v42, %v2681_v20  ;;  %6048 = vmatprep.subr.bf16.mxu1 %v6047_v34  ;;  %v3158_v20 = vld [vmem:[%s8782_s3 + $0x88] sm:$0xff]  ;;  %v3413_v26 = vld [vmem:[%s8782_s3 + $0xf0] sm:$0xff] }
 0x3c2   : > { %5837 = vmatprep.mubr.msk.f32.mxu0 %vm649_vm2, %v2727_v40  ;;  %v2696_v7 = vadd.f32 %v2692_v36, %v2682_v63  ;;  %6050 = vmatpush3.bf16.msra.mxu1 %v6047_v34  ;;  %v6075_v42 = vpack.c.bf16 %v3158_v20, %v3157_v21  ;;  %v6091_v40 = vpack.c.bf16 %v3324_v27, %v3323_v14  ;;  %v3411_v36 = vld [vmem:[%s8782_s3 + $0xe0] sm:$0xff]  ;;  %v5543_v52 = vld [vmem:[%s8782_s3 + $0x48] ss:$0 sm:$0xff]  ;;  %v3414_v14 = vld [vmem:[%s8782_s3 + $0xf8] sm:$0xff] }
 0x3c3   : > { %6052 = vmatprep.subr.bf16.mxu1 %v6051_v61  ;;  %v7720_v63 = vpack.c.bf16 %v3411_v36, %v3410_v15  ;;  %v3412_v2 = vld [vmem:[%s8782_s3 + $0xe8] sm:$0xff]  ;;  %v3415_v27 = vld [vmem:[%s8782_s3 + $0x100] sm:$0xff]  ;;  %v3417_v36 = vld [vmem:[%s8782_s3 + $0x110] sm:$0xff] }
 0x3c4   : > { %v2728_v39 = vmul.f32 %v2724_v56, %v2696_v7  ;;  %v8872_v56 = vld [vmem:[#allocation2_spill] sm:$0xff]  ;;  %v6099_v20 = vpack.c.bf16 %v3413_v26, %v3412_v2  ;;  %v3416_v15 = vld [vmem:[%s8782_s3 + $0x108] sm:$0xff] }
 0x3c5   : > { %v3061_v7 = vrot.slane %v3057_v29, %v8872_v56 }
 0x3c6   : > { %5838 = vmatmul.mubr.msk.f32.gmra.mrb[14].mxu0 %vm649_vm2, %v2728_v39  ;;  %6054 = vmatpush3.bf16.msra.mxu1 %v6051_v61  ;;  %v8873_v39 = vld [vmem:[#allocation3_spill] sm:$0xff]  ;;  %v8874_v61 = vld [vmem:[#allocation4_spill] sm:$0xff] }
 0x3c7   : > { %v2843_v30 = vpop.permute.xlu1 %2842  ;;  %v2838_v17 = vpop.permute.xlu0 %2837  ;;  %6064 = vmatprep.subr.bf16.mxu1 %v6063_v43  ;;  %v3069_v13 = vrot.slane %v3057_v29, %v8873_v39  ;;  %v3085_v33 = vrot.slane %v3057_v29, %v8874_v61 }
 0x3cb   : > { %v2853_v55 = vpop.permute.xlu0 %2852 }
 0x3cc   : > { %v2848_v0 = vpop.permute.xlu1 %2847 }
 0x48a   : > { %v5836_v8 = vpop.f32.mrb[12].mxu0 }
 0x48b   : > { %v2815_v37 = vpop.f32.mrb[13].mxu0 }
 0x499   : > { %v5839_v18 = vpop.f32.mrb[14].mxu0 }
 0x49a   : > { %v2855_v38 = vmul.f32 %v5839_v18, %v2838_v17  ;;  %v2856_v48 = vmul.f32 %v5839_v18, %v2843_v30  ;;  %v2857_v25 = vmul.f32 %v5839_v18, %v2848_v0  ;;  %v2823_v51 = vpop.f32.mrb[15].mxu0  ;;  %v2858_v59 = vmul.f32 %v5839_v18, %v2853_v55 }
 0x49b   : > { %v3101_v0 = vrot.slane %v3057_v29, %v6542_v4 }
 0x49c   : > { %v2864_v60 = vadd.f32 %v2860_v57, %v2856_v48  ;;  %v2863_v53 = vadd.f32 %v2859_v23, %v2855_v38  ;;  %v2865_v19 = vadd.f32 %v2861_v32, %v2857_v25  ;;  %v2866_v28 = vadd.f32 %v2862_v3, %v2858_v59 }
 0x49e   : > { %5848 = vmatprep.mubr.msk.f32.mxu1 %vm314_vm1, %v2863_v53  ;;  %5862 = vmatprep.mubr.msk.f32.mxu0 %vm314_vm1, %v2863_v53 }
 0x49f   : > { %5849 = vmatmul.mubr.msk.f32.vlgmr.msra.gmra.mrb[12].mxu1 %vm314_vm1, %v2864_v60  ;;  %5863 = vmatmul.mubr.msk.f32.vlgmr.msra.gmra.mrb[16].mxu0 %vm314_vm1, %v2864_v60 }
 0x4a0   : > { %5851 = vmatprep.mubr.msk.f32.mxu1 %vm314_vm1, %v2865_v19  ;;  %5865 = vmatprep.mubr.msk.f32.mxu0 %vm314_vm1, %v2865_v19 }
 0x4a1   : > { %6066 = vmatpush3.bf16.msra.mxu1 %v6063_v43  ;;  %6082 = vmatpush3.bf16.msra.mxu0 %v6079_v31 }
 0x4a2   : > { %6068 = vmatprep.subr.bf16.mxu1 %v6067_v50  ;;  %6084 = vmatprep.subr.bf16.mxu0 %v6083_v41 }
 0x4a3   : > { %5852 = vmatmul.mubr.msk.f32.gmra.mrb[14].mxu1 %vm314_vm1, %v2866_v28  ;;  %5866 = vmatmul.mubr.msk.f32.gmra.mrb[18].mxu0 %vm314_vm1, %v2866_v28 }
 0x4a5   : > { %6070 = vmatpush3.bf16.msra.mxu1 %v6067_v50  ;;  %6086 = vmatpush3.bf16.msra.mxu0 %v6083_v41 }
 0x4a6   : > { %6072 = vmatprep.subr.bf16.mxu1 %v6071_v47  ;;  %6088 = vmatprep.subr.bf16.mxu0 %v6087_v9 }
 0x4a9   : > { %6074 = vmatpush3.bf16.msra.mxu1 %v6071_v47  ;;  %6090 = vmatpush3.bf16.msra.mxu0 %v6087_v9 }
 0x4aa   : > { %6076 = vmatprep.subr.bf16.mxu1 %v6075_v42  ;;  %6092 = vmatprep.subr.bf16.mxu0 %v6091_v40 }
 0x4ad   : > { %6078 = vmatpush3.bf16.msra.mxu1 %v6075_v42  ;;  %6094 = vmatpush3.bf16.msra.mxu0 %v6091_v40  ;;  %v6103_v42 = vpack.c.bf16 %v3415_v27, %v3414_v14 }
 0x4ae   : > { %6096 = vmatprep.subr.bf16.mxu1 %v7720_v63 }
 0x572   : > { %v5850_v24 = vpop.f32.mrb[12].mxu1  ;;  %v7728_v35 = vpop.f32.mrb[16].mxu0 }
 0x573   : > { %v3063_v34 = vmul.f32 %v5850_v24, %v3061_v7  ;;  %v2949_v16 = vpop.f32.mrb[13].mxu1  ;;  %v7733_v12 = vpop.f32.mrb[17].mxu0  ;;  %v3072_v17 = vmul.f32 %v5850_v24, %v3069_v13  ;;  %v3089_v51 = vmul.f32 %v5850_v24, %v3085_v33 }
 0x574   : > { %v3062_v58 = vmul.f32 %v3061_v7, %v2949_v16  ;;  %v3071_v46 = vmul.f32 %v3069_v13, %v2949_v16  ;;  %v3088_v32 = vmul.f32 %v3085_v33, %v2949_v16  ;;  %v3105_v19 = vmul.f32 %v3101_v0, %v2949_v16 }
 0x576   : > { %v3079_v11 = vadd.f32 %v3071_v46, %v3063_v34  ;;  %v3119_v8 = vadd.f32 %v5543_v52, %v3062_v58  ;;  %v5853_v37 = vpop.f32.mrb[14].mxu1  ;;  %v7736_v30 = vpop.f32.mrb[18].mxu0 }
 0x577   : > { %v3065_v18 = vmul.f32 %v5853_v37, %v3061_v7  ;;  %v2959_v57 = vpop.f32.mrb[15].mxu1  ;;  %v7739_v23 = vpop.f32.mrb[19].mxu0 }
 0x578   : > { %v3120_v55 = vadd.f32 %v5543_v52, %v3079_v11  ;;  %v5544_v38 = vmul.f32 -1.442695, %v3119_v8  ;;  %v3064_v48 = vmul.f32 %v3061_v7, %v2959_v57  ;;  %v3073_v25 = vmul.f32 %v3069_v13, %v2959_v57  ;;  %v8879_v11 = vld [vmem:[#allocation13_spill] sm:$0xff] }
 0x57a   : > { %6261 = vpow2.f32 %v5544_v38  ;;  %v5545_v60 = vmul.f32 -1.442695, %v3120_v55  ;;  %v3080_v53 = vadd.f32 %v3072_v17, %v3064_v48  ;;  %v3081_v59 = vadd.f32 %v3073_v25, %v3065_v18  ;;  %v8880_v18 = vld [vmem:[#allocation14_spill] sm:$0xff]  ;;  %v8881_v48 = vld [vmem:[#allocation15_spill] sm:$0xff] }
 0x57c   : > { %6263 = vpow2.f32 %v5545_v60  ;;  %v3096_v3 = vadd.f32 %v3088_v32, %v3080_v53  ;;  %v3097_v28 = vadd.f32 %v3089_v51, %v3081_v59  ;;  %v8882_v51 = vld [vmem:[#allocation16_spill] sm:$0xff] }
 0x57e   : > { %v3113_v1 = vadd.f32 %v3105_v19, %v3097_v28  ;;  %v3121_v5 = vadd.f32 %v5543_v52, %v3096_v3 }
 0x580   : > { %v3122_v49 = vadd.f32 %v5543_v52, %v3113_v1  ;;  %v5546_v43 = vmul.f32 -1.442695, %v3121_v5 }
 0x582   : > { %v5547_v6 = vmul.f32 -1.442695, %v3122_v49  ;;  %6265 = vpow2.f32 %v5546_v43 }
 0x584   : > { %v6262_v62 = vpop.eup %6261  ;;  %6267 = vpow2.f32 %v5547_v6 }
 0x585   : > { %v3135_v22 = vadd.f32 1.0, %v6262_v62 }
 0x586   : > { %v6264_v31 = vpop.eup %6263 }
 0x587   : > { %v3136_v50 = vadd.f32 1.0, %v6264_v31  ;;  %6269 = vrcp.f32 %v3135_v22 }
 0x589   : > { %6271 = vrcp.f32 %v3136_v50 }
 0x58c   : > { %v6266_v45 = vpop.eup %6265 }
 0x58d   : > { %v3137_v44 = vadd.f32 1.0, %v6266_v45 }
 0x58e   : > { %v6268_v10 = vpop.eup %6267 }
 0x58f   : > { %v3138_v41 = vadd.f32 1.0, %v6268_v10  ;;  %6273 = vrcp.f32 %v3137_v44 }
 0x591   : > { %v6270_v54 = vpop.eup %6269  ;;  %6275 = vrcp.f32 %v3138_v41 }
 0x592   : > { %v7747_v47 = vmul.f32 %v6270_v54, %v3119_v8 }
 0x593   : > { %v6272_v9 = vpop.eup %6271 }
 0x594   : > { %8875 = vst [vmem:[#allocation18_spill] sm:$0xff] %v7747_v47  ;;  %v7749_v21 = vmul.f32 %v6272_v9, %v3120_v55  ;;  %5884 = vmatprep.mubr.msk.f32.mxu1 %vm649_vm2, %v7747_v47  ;;  %5906 = vmatprep.mubr.msk.f32.mxu0 %vm649_vm2, %v7747_v47 }
 0x596   : > { %8876 = vst [vmem:[#allocation20_spill] sm:$0xff] %v7749_v21  ;;  %5885 = vmatmul.mubr.msk.f32.vlgmr.msra.gmra.mrb[16].mxu1 %vm649_vm2, %v7749_v21  ;;  %5907 = vmatmul.mubr.msk.f32.vlgmr.msra.gmra.mrb[20].mxu0 %vm649_vm2, %v7749_v21 }
 0x597   : > { %6098 = vmatpush3.bf16.msra.mxu1 %v7720_v63  ;;  %v6107_v63 = vpack.c.bf16 %v3417_v36, %v3416_v15 }
 0x598   : > { %6100 = vmatprep.subr.bf16.mxu1 %v6099_v20 }
 0x599   : > { %v6274_v40 = vpop.eup %6273 }
 0x59a   : > { %v7772_v29 = vmul.f32 %v6274_v40, %v3121_v5  ;;  %v5548_v5 = vld [vmem:[%s8782_s3 + $0x90] ss:$0 sm:$0xff] }
 0x59b   : > { %6102 = vmatpush3.bf16.msra.mxu1 %v6099_v20  ;;  %v6276_v7 = vpop.eup %6275 }
 0x59c   : > { %8877 = vst [vmem:[#allocation19_spill] sm:$0xff] %v7772_v29  ;;  %6104 = vmatprep.subr.bf16.mxu1 %v6103_v42  ;;  %v7774_v13 = vmul.f32 %v6276_v7, %v3122_v49  ;;  %5887 = vmatprep.mubr.msk.f32.mxu1 %vm649_vm2, %v7772_v29 }
 0x59d   : > { %5909 = vmatprep.mubr.msk.f32.mxu0 %vm649_vm2, %v7772_v29 }
 0x59e   : > { %8878 = vst [vmem:[#allocation5_spill] sm:$0xff] %v7774_v13  ;;  %5888 = vmatmul.mubr.msk.f32.gmra.mrb[18].mxu1 %vm649_vm2, %v7774_v13  ;;  %5910 = vmatmul.mubr.msk.f32.gmra.mrb[22].mxu0 %vm649_vm2, %v7774_v13 }
 0x59f   : > { %6106 = vmatpush3.bf16.msra.mxu1 %v6103_v42  ;;  %5928 = vmatprep.mubr.msk.f32.mxu1 %vm649_vm2, %v7747_v47 }
 0x5a0   : > { %6108 = vmatprep.subr.bf16.mxu1 %v6107_v63 }
 0x5a3   : > { %6110 = vmatpush3.bf16.msra.mxu1 %v6107_v63 }
 0x5a6   : > { %5929 = vmatmul.mubr.msk.f32.vlgmr.msra.gmra.mrb[20].mxu1 %vm649_vm2, %v7749_v21 }
 0x5a7   : > { %5931 = vmatprep.mubr.msk.f32.mxu1 %vm649_vm2, %v7772_v29 }
 0x5aa   : > { %5932 = vmatmul.mubr.msk.f32.gmra.mrb[22].mxu1 %vm649_vm2, %v7774_v13 }
 0x669   : > { %v5886_v24 = vpop.f32.mrb[16].mxu1  ;;  %v5908_v34 = vpop.f32.mrb[20].mxu0 }
 0x66a   : > { %v3242_v16 = vpop.f32.mrb[17].mxu1  ;;  %v3391_v52 = vpop.f32.mrb[21].mxu0  ;;  %v4087_v58 = vrot.slane %v5908_v34, %v8874_v61  ;;  %v4080_v46 = vrot.slane %v5908_v34, %v6542_v4  ;;  %v4094_v33 = vrot.slane %v5908_v34, %v8873_v39  ;;  %v4108_v8 = vrot.slane %v5908_v34, %v8879_v11 }
 0x66b   : > { %v4101_v0 = vrot.slane %v5908_v34, %v8872_v56  ;;  %v4122_v57 = vrot.slane %v5908_v34, %v8880_v18  ;;  %v4115_v25 = vrot.slane %v5908_v34, %v8881_v48  ;;  %v4129_v32 = vrot.slane %v5908_v34, %v8882_v51 }
 0x66c   : > { %4089 = vbcast.lane.b32.xlu0 %v4087_v58, 256  ;;  %4082 = vbcast.lane.b32.xlu1 %v4080_v46, 256  ;;  %v3682_v53 = vrot.slane %v3391_v52, %v8874_v61  ;;  %v3675_v59 = vrot.slane %v3391_v52, %v6542_v4  ;;  %v3696_v28 = vrot.slane %v3391_v52, %v8872_v56  ;;  %v3503_v46 = vld [vmem:[%s8782_s3 + $0x118] sm:$0xff] }
 0x66d   : > { %v3689_v1 = vrot.slane %v3391_v52, %v8873_v39  ;;  %v7817_v43 = vadd.f32 %v5886_v24, %v5548_v5  ;;  %v3710_v6 = vrot.slane %v3391_v52, %v8881_v48  ;;  %v3703_v62 = vrot.slane %v3391_v52, %v8879_v11 }
 0x66e   : > { %v3717_v31 = vrot.slane %v3391_v52, %v8880_v18  ;;  %v7824_v45 = vadd.f32 %v5548_v5, %v3242_v16  ;;  %v3724_v10 = vrot.slane %v3391_v52, %v8882_v51 }
 0x66f   : > { %v3266_v22 = vmin.f32 %v7817_v43, 20.0  ;;  %vm3262_vm6 = vcmp.gt.f32.partialorder %v7817_v43, 20.0 }
 0x670   : > { %4096 = vbcast.lane.b32.xlu0 %v4094_v33, 256  ;;  %4110 = vbcast.lane.b32.xlu1 %v4108_v8, 256  ;;  %v3265_v54 = vmin.f32 %v7824_v45, 20.0  ;;  %vm3261_vm7 = vcmp.gt.f32.partialorder %v7824_v45, 20.0 }
 0x671   : > { %v5889_v37 = vpop.f32.mrb[18].mxu1  ;;  %v5911_v17 = vpop.f32.mrb[22].mxu0  ;;  %v3271_v44 = vmul.f32 1.442695, %v3266_v22 }
 0x672   : > { %v3252_v55 = vpop.f32.mrb[19].mxu1  ;;  %v7798_v38 = vpop.f32.mrb[23].mxu0  ;;  %v4890_v50 = vrot.slane %v5911_v17, %v6542_v4  ;;  %v4918_v41 = vrot.slane %v5911_v17, %v8879_v11  ;;  %v4897_v2 = vrot.slane %v5911_v17, %v8874_v61  ;;  %v4925_v9 = vrot.slane %v5911_v17, %v8881_v48 }
 0x673   : > { %6277 = vpow2.f32 %v3271_v44  ;;  %v7830_v26 = vadd.f32 %v5548_v5, %v3252_v55  ;;  %v3269_v20 = vmul.f32 1.442695, %v3265_v54  ;;  %v7833_v14 = vadd.f32 %v5889_v37, %v5548_v5 }
 0x674   : > { %4103 = vbcast.lane.b32.xlu0 %v4101_v0, 256  ;;  %4124 = vbcast.lane.b32.xlu1 %v4122_v57, 256  ;;  %v4904_v27 = vrot.slane %v5911_v17, %v8873_v39  ;;  %v4932_v40 = vrot.slane %v5911_v17, %v8880_v18  ;;  %v4911_v36 = vrot.slane %v5911_v17, %v8872_v56 }
 0x675   : > { %v3267_v42 = vmin.f32 %v7830_v26, 20.0  ;;  %6279 = vpow2.f32 %v3269_v20  ;;  %v3268_v15 = vmin.f32 %v7833_v14, 20.0  ;;  %v4939_v63 = vrot.slane %v5911_v17, %v8882_v51 }
 0x676   : > { %v4485_v16 = vrot.slane %v7798_v38, %v6542_v4  ;;  %v4492_v58 = vrot.slane %v7798_v38, %v8874_v61  ;;  %v4513_v33 = vrot.slane %v7798_v38, %v8879_v11  ;;  %v4499_v37 = vrot.slane %v7798_v38, %v8873_v39 }
 0x677   : > { %v3273_v7 = vmul.f32 1.442695, %v3267_v42  ;;  %v3275_v34 = vmul.f32 1.442695, %v3268_v15  ;;  %v3504_v17 = vmul.f32 1.442695, %v3503_v46  ;;  %v4520_v57 = vrot.slane %v7798_v38, %v8881_v48 }
 0x678   : > { %4117 = vbcast.lane.b32.xlu0 %v4115_v25, 256  ;;  %4131 = vbcast.lane.b32.xlu1 %v4129_v32, 256  ;;  %v4506_v55 = vrot.slane %v7798_v38, %v8872_v56  ;;  %v4527_v5 = vrot.slane %v7798_v38, %v8880_v18  ;;  %vm3263_vm9 = vcmp.gt.f32.partialorder %v7830_v26, 20.0  ;;  %vm3264_vm10 = vcmp.gt.f32.partialorder %v7833_v14, 20.0 }
 0x679   : > { %v7802_v60 = vpop.f32.mrb[20].mxu1  ;;  %6281 = vpow2.f32 %v3273_v7 }
 0x67a   : > { %v7806_v19 = vpop.f32.mrb[21].mxu1  ;;  %6283 = vpow2.f32 %v3275_v34  ;;  %v4228_v7 = vrot.slane %v7802_v60, %v8879_v11 }
 0x67b   : > { %v3795_v46 = vrot.slane %v7806_v19, %v6542_v4 }
 0x67c   : > { %3684 = vbcast.lane.b32.xlu0 %v3682_v53, 256  ;;  %3677 = vbcast.lane.b32.xlu1 %v3675_v59, 256  ;;  %v4200_v53 = vrot.slane %v7802_v60, %v6542_v4 }
 0x67d   : > { %v7808_v3 = vpop.f32.mrb[22].mxu1  ;;  %v6278_v24 = vpop.eup %6277 }
 0x67e   : > { %v7815_v49 = vpop.f32.mrb[23].mxu1  ;;  %v3286_v52 = vadd.f32 1.0, %v6278_v24  ;;  %v3289_v32 = vmul.f32 -0.5, %v6278_v24  ;;  %v3292_v22 = vand.u32 2147483647, %v6278_v24 }
 0x67f   : > { %v6280_v8 = vpop.eup %6279 }
 0x680   : > { %3698 = vbcast.lane.b32.xlu0 %v3696_v28, 256  ;;  %3691 = vbcast.lane.b32.xlu1 %v3689_v1, 256  ;;  %6285 = vlog2.f32 %v3286_v52  ;;  %v3277_v0 = vadd.f32 1.0, %v6280_v8  ;;  %vm3293_vm5 = vcmp.lt.f32.partialorder %v3292_v22, 0.0004427343 }
 0x681   : > { %6287 = vpow2.f32 %v3504_v17  ;;  %v3844_v17 = vrot.slane %v7806_v19, %v8882_v51 }
 0x682   : > { %6289 = vlog2.f32 %v3277_v0 }
 0x683   : > { %v7856_v25 = vpop.eup %6281 }
 0x684   : > { %3712 = vbcast.lane.b32.xlu0 %v3710_v6, 256  ;;  %3705 = vbcast.lane.b32.xlu1 %v3703_v62, 256  ;;  %v7860_v59 = vpop.eup %6283  ;;  %v3295_v28 = vadd.f32 1.0, %v7856_v25  ;;  %v3290_v6 = vadd.f32 1.0, %v3289_v32  ;;  %v4214_v62 = vrot.slane %v7802_v60, %v8873_v39  ;;  %v3298_v34 = vmul.f32 -0.5, %v7856_v25 }
 0x685   : > { %v3304_v44 = vadd.f32 1.0, %v7860_v59  ;;  %v3301_v22 = vand.u32 2147483647, %v7856_v25 }
 0x686   : > { %6291 = vlog2.f32 %v3295_v28  ;;  %v3291_v54 = vmul.f32 %v6278_v24, %v3290_v6  ;;  %v5024_v6 = vrot.slane %v7808_v3, %v8873_v39 }
 0x687   : > { %6293 = vlog2.f32 %v3304_v44 }
 0x688   : > { %3719 = vbcast.lane.b32.xlu1 %v3717_v31, 256  ;;  %4892 = vbcast.lane.b32.xlu0 %v4890_v50, 256  ;;  %v3280_v50 = vmul.f32 -0.5, %v6280_v8 }
 0x68a   : > { %v6286_v1 = vpop.eup %6285  ;;  %v3281_v42 = vadd.f32 1.0, %v3280_v50  ;;  %v5031_v50 = vrot.slane %v7808_v3, %v8872_v56 }
 0x68b   : > { %v3288_v31 = vmul.f32 0.6931472, %v6286_v1  ;;  %v3310_v1 = vand.u32 2147483647, %v7860_v59 }
 0x68c   : > { %3726 = vbcast.lane.b32.xlu1 %v3724_v10, 256  ;;  %4920 = vbcast.lane.b32.xlu0 %v4918_v41, 256  ;;  %v4534_v10 = vrot.slane %v7798_v38, %v8882_v51  ;;  %v6288_v41 = vpop.eup %6287  ;;  %v4207_v38 = vrot.slane %v7802_v60, %v8874_v61  ;;  %v3282_v52 = vmul.f32 %v6280_v8, %v3281_v42 }
 0x68d   : > { %v6290_v20 = vpop.eup %6289  ;;  %v5045_v42 = vrot.slane %v7808_v3, %v8881_v48 }
 0x68e   : > { %v3279_v24 = vmul.f32 0.6931472, %v6290_v20 }
 0x690   : > { %4899 = vbcast.lane.b32.xlu1 %v4897_v2, 256  ;;  %4927 = vbcast.lane.b32.xlu0 %v4925_v9, 256  ;;  %v3283_v2 = vand.u32 2147483647, %v6280_v8  ;;  %v4221_v9 = vrot.slane %v7802_v60, %v8872_v56  ;;  %v3809_v8 = vrot.slane %v7806_v19, %v8873_v39  ;;  %v6292_v0 = vpop.eup %6291 }
 0x691   : > { %v3297_v44 = vmul.f32 0.6931472, %v6292_v0 }
 0x692   : > { %vm7878_vm8 = vcmp.lt.f32.partialorder %v3283_v2, 0.0004427343  ;;  %v6294_v2 = vpop.eup %6293 }
 0x693   : > { %v3285_v28 = vsel %vm7878_vm8, %v3282_v52, %v3279_v24 }
 0x694   : > { %4906 = vbcast.lane.b32.xlu1 %v4904_v27, 256  ;;  %4934 = vbcast.lane.b32.xlu0 %v4932_v40, 256  ;;  %v3294_v27 = vsel %vm3293_vm5, %v3291_v54, %v3288_v31  ;;  %v7873_v40 = vsub.f32 0.0, %v6288_v41  ;;  %v3823_v31 = vrot.slane %v7806_v19, %v8879_v11  ;;  %v5038_v41 = vrot.slane %v7808_v3, %v8879_v11 }
 0x695   : > { %v5017_v54 = vrot.slane %v7808_v3, %v8874_v61  ;;  %vm7933_vm5 = vcmp.lt.f32.partialorder %v3310_v1, 0.0004427343 }
 0x698   : > { %4913 = vbcast.lane.b32.xlu1 %v4911_v36, 256  ;;  %4941 = vbcast.lane.b32.xlu0 %v4939_v63, 256  ;;  %v4235_v36 = vrot.slane %v7802_v60, %v8881_v48  ;;  %v3314_v63 = vsel %vm3262_vm6, %v7817_v43, %v3294_v27  ;;  %v3837_v43 = vrot.slane %v7806_v19, %v8880_v18  ;;  %vm7941_vm6 = vcmp.lt.f32.partialorder %v3301_v22, 0.0004427343 }
 0x699   : > { %v3313_v27 = vsel %vm3261_vm7, %v7824_v45, %v3285_v28 }
 0x69a   : > { %v7966_v22 = vmul.f32 %v3313_v27, %v7747_v47 }
 0x69c   : > { %4487 = vbcast.lane.b32.xlu1 %v4485_v16, 256  ;;  %4494 = vbcast.lane.b32.xlu0 %v4492_v58, 256  ;;  %v4242_v16 = vrot.slane %v7802_v60, %v8880_v18  ;;  %v3307_v58 = vmul.f32 -0.5, %v7860_v59 }
 0x6a0   : > { %4515 = vbcast.lane.b32.xlu1 %v4513_v33, 256  ;;  %4501 = vbcast.lane.b32.xlu0 %v4499_v37, 256  ;;  %v4249_v33 = vrot.slane %v7802_v60, %v8882_v51  ;;  %v3802_v37 = vrot.slane %v7806_v19, %v8874_v61  ;;  %v3816_v60 = vrot.slane %v7806_v19, %v8872_v56 }
 0x6a4   : > { %4522 = vbcast.lane.b32.xlu1 %v4520_v57, 256  ;;  %4508 = vbcast.lane.b32.xlu0 %v4506_v55, 256  ;;  %v3913_v57 = vcombine.high %v3314_v63, %v3314_v63  ;;  %v8885_v55 = vld [vmem:[#allocation17_spill] sm:$0xff] }
 0x6a5   : > { %v3920_v32 = vrot.slane %v3314_v63, %v8885_v55  ;;  %v3515_v28 = vrot.slane %v3313_v27, %v8885_v55 }
 0x6a7   : > { %v3936_v20 = vrot.slane %v3920_v32, %v8885_v55  ;;  %v3523_v45 = vcombine.high %v3515_v28, %v3515_v28  ;;  %v7993_v15 = vrot.slane %v3515_v28, %v8885_v55 }
 0x6a8   : > { %4202 = vbcast.lane.b32.xlu1 %v4200_v53, 256  ;;  %4529 = vbcast.lane.b32.xlu0 %v4527_v5, 256  ;;  %v5010_v53 = vrot.slane %v7808_v3, %v6542_v4  ;;  %v3299_v5 = vadd.f32 1.0, %v3298_v34  ;;  %v4612_v34 = vrot.slane %v7815_v49, %v8874_v61 }
 0x6a9   : > { %v3965_v0 = vrot.slane %v3936_v20, %v6542_v4 }
 0x6ac   : > { %4216 = vbcast.lane.b32.xlu1 %v4214_v62, 256  ;;  %4536 = vbcast.lane.b32.xlu0 %v4534_v10, 256  ;;  %v3308_v62 = vadd.f32 1.0, %v3307_v58  ;;  %v3830_v10 = vrot.slane %v7806_v19, %v8881_v48  ;;  %v3508_v58 = vcombine.high %v3313_v27, %v3313_v27 }
 0x6ae   : > { %v3309_v24 = vmul.f32 %v7860_v59, %v3308_v62  ;;  %v3958_v62 = vcombine.high %v3936_v20, %v3936_v20 }
 0x6b0   : > { %4223 = vbcast.lane.b32.xlu1 %v4221_v9, 256  ;;  %4209 = vbcast.lane.b32.xlu0 %v4207_v38, 256  ;;  %v3927_v9 = vrot.slane %v3913_v57, %v8885_v55  ;;  %v3928_v38 = vcombine.high %v3920_v32, %v3920_v32  ;;  %v7955_v57 = vmul.f32 %v3314_v63, %v7749_v21  ;;  %v5238_v21 = vld [vmem:[%s8782_s3 + $0x138] sm:$0xff] }
 0x6b2   : > { %v3929_v59 = vcombine.high %v3927_v9, %v3927_v9  ;;  %v3950_v32 = vrot.slane %v3928_v38, %v8885_v55 }
 0x6b4   : > { %4230 = vbcast.lane.b32.xlu1 %v4228_v7, 256  ;;  %4237 = vbcast.lane.b32.xlu0 %v4235_v36, 256  ;;  %v3300_v36 = vmul.f32 %v7856_v25, %v3299_v5  ;;  %v7984_v38 = vrot.slane %v3929_v59, %v8885_v55 }
 0x6b6   : > { %v3303_v25 = vsel %vm7941_vm6, %v3300_v36, %v3297_v44  ;;  %v3969_v36 = vrot.slane %v3950_v32, %v6542_v4 }
 0x6b7   : > { %v7971_v63 = vsel %vm3263_vm9, %v7830_v26, %v3303_v25  ;;  %v4002_v26 = vmul.f32 %v3965_v0, %v7873_v40  ;;  %v3960_v0 = vcombine.high %v3950_v32, %v3950_v32 }
 0x6b8   : > { %3797 = vbcast.lane.b32.xlu1 %v3795_v46, 256  ;;  %4244 = vbcast.lane.b32.xlu0 %v4242_v16, 256  ;;  %v3306_v46 = vmul.f32 0.6931472, %v6294_v2  ;;  %v7977_v2 = vrot.slane %v3508_v58, %v8885_v55  ;;  %v3973_v58 = vrot.slane %v3958_v62, %v6542_v4  ;;  %v4325_v59 = vrot.slane %v7971_v63, %v8885_v55 }
 0x6b9   : > { %v4003_v5 = vmul.f32 %v3969_v36, %v7873_v40  ;;  %v8036_v36 = vrot.slane %v3960_v0, %v6542_v4 }
 0x6ba   : > { %v3312_v20 = vsel %vm7933_vm5, %v3309_v24, %v3306_v46  ;;  %v4318_v24 = vcombine.high %v7971_v63, %v7971_v63  ;;  %v8016_v62 = vrot.slane %v7977_v2, %v8885_v55  ;;  %v4333_v46 = vcombine.high %v4325_v59, %v4325_v59 }
 0x6bb   : > { %v3316_v25 = vsel %vm3264_vm10, %v7833_v14, %v3312_v20  ;;  %v3961_v14 = vcombine.high %v7984_v38, %v7984_v38  ;;  %v4010_v20 = vmul.f32 1.442695, %v4002_v26 }
 0x6bc   : > { %3839 = vbcast.lane.b32.xlu1 %v3837_v43, 256  ;;  %4251 = vbcast.lane.b32.xlu0 %v4249_v33, 256  ;;  %v3943_v33 = vrot.slane %v3927_v9, %v8885_v55  ;;  %v4723_v32 = vcombine.high %v3316_v25, %v3316_v25  ;;  %v4332_v44 = vrot.slane %v4318_v24, %v8885_v55 }
 0x6bd   : > { %v4004_v43 = vmul.f32 %v3973_v58, %v7873_v40  ;;  %v4730_v26 = vrot.slane %v3316_v25, %v8885_v55  ;;  %v4341_v24 = vrot.slane %v4325_v59, %v8885_v55  ;;  %v8046_v1 = vrot.slane %v3961_v14, %v6542_v4 }
 0x6be   : > { %v3981_v28 = vrot.slane %v3943_v33, %v6542_v4  ;;  %v3959_v27 = vcombine.high %v3943_v33, %v3943_v33  ;;  %6295 = vpow2.f32 %v4010_v20  ;;  %v4737_v0 = vrot.slane %v4723_v32, %v8885_v55 }
 0x6bf   : > { %v4334_v16 = vcombine.high %v4332_v44, %v4332_v44  ;;  %v8059_v59 = vmul.f32 1.442695, %v4004_v43  ;;  %v4355_v14 = vrot.slane %v4333_v46, %v8885_v55  ;;  %v4348_v20 = vrot.slane %v4332_v44, %v8885_v55 }
 0x6c0   : > { %3846 = vbcast.lane.b32.xlu1 %v3844_v17, 256  ;;  %v4035_v17 = vrot.slane %v7955_v57, %v8885_v55  ;;  %3804 = vbcast.lane.b32.xlu0 %v3802_v37, 256  ;;  %v8043_v58 = vrot.slane %v3959_v27, %v6542_v4  ;;  %v4028_v27 = vcombine.high %v7955_v57, %v7955_v57 }
 0x6c1   : > { %v8074_v43 = vrot.slane %v4730_v26, %v8885_v55  ;;  %v8077_v46 = vmul.f32 %v3316_v25, %v7774_v13  ;;  %v4739_v32 = vcombine.high %v4737_v0, %v4737_v0  ;;  %v8086_v44 = vrot.slane %v4334_v16, %v8885_v55 }
 0x6c2   : > { %v4043_v9 = vcombine.high %v4035_v17, %v4035_v17  ;;  %v4042_v25 = vrot.slane %v4028_v27, %v8885_v55  ;;  %v4364_v7 = vcombine.high %v4348_v20, %v4348_v20 }
 0x6c3   : > { %v8116_v37 = vrot.slane %v4739_v32, %v8885_v55  ;;  %v3630_v32 = vrot.slane %v7966_v22, %v8885_v55 }
 0x6c4   : > { %5012 = vbcast.lane.b32.xlu1 %v5010_v53, 256  ;;  %v8022_v53 = vrot.slane %v3523_v45, %v8885_v55  ;;  %3811 = vbcast.lane.b32.xlu0 %v3809_v8, 256  ;;  %v4006_v8 = vmul.f32 %v3981_v28, %v7873_v40  ;;  %v8049_v52 = vrot.slane %v4043_v9, %v8885_v55 }
 0x6c5   : > { %v4738_v28 = vcombine.high %v4730_v26, %v4730_v26  ;;  %v8104_v45 = vrot.slane %v4737_v0, %v8885_v55  ;;  %v4366_v0 = vcombine.high %v8086_v44, %v8086_v44  ;;  %v4044_v19 = vcombine.high %v4042_v25, %v4042_v25 }
 0x6c6   : > { %v8068_v9 = vmul.f32 1.442695, %v4006_v8  ;;  %v3564_v57 = vrot.slane %v8022_v53, %v6542_v4  ;;  %v4370_v8 = vrot.slane %v4341_v24, %v6542_v4  ;;  %v3555_v16 = vcombine.high %v8022_v53, %v8022_v53 }
 0x6c7   : > { %v8094_v26 = vrot.slane %v4738_v28, %v8885_v55  ;;  %v4386_v28 = vrot.slane %v4348_v20, %v6542_v4  ;;  %v3560_v53 = vrot.slane %v7993_v15, %v6542_v4 }
 0x6c8   : > { %5026 = vbcast.lane.b32.xlu1 %v5024_v6, 256  ;;  %v8051_v6 = vmul.f32 1.442695, %v4003_v5  ;;  %3818 = vbcast.lane.b32.xlu0 %v3816_v60, 256  ;;  %v8066_v5 = vrot.slane %v4035_v17, %v8885_v55  ;;  %v4363_v60 = vcombine.high %v4341_v24, %v4341_v24  ;;  %v8127_v17 = vpop.eup %6295  ;;  %v3598_v33 = vmul.f32 %v3564_v57, %v7873_v40 }
 0x6ca   : > { %v4073_v24 = vcombine.high %v8066_v5, %v8066_v5  ;;  %v4378_v27 = vrot.slane %v4363_v60, %v6542_v4  ;;  %v8125_v60 = vrot.slane %v4042_v25, %v8885_v55  ;;  %v8152_v25 = vrot.slane %v4366_v0, %v6542_v4 }
 0x6cb   : > { %v8891_v0 = vcombine.high %v7977_v2, %v7977_v2  ;;  %v8892_v2 = vrot.slane %v7815_v49, %v6542_v4 }
 0x6cc   : > { %5033 = vbcast.lane.b32.xlu1 %v5031_v50, 256  ;;  %v8081_v50 = vmul.f32 %v7971_v63, %v7772_v29  ;;  %3825 = vbcast.lane.b32.xlu0 %v3823_v31, 256  ;;  %v4365_v63 = vcombine.high %v4355_v14, %v4355_v14  ;;  %v4374_v31 = vrot.slane %v4355_v14, %v6542_v4 }
 0x6cd   : > { %v4407_v14 = vmul.f32 %v4370_v8, %v7873_v40  ;;  %v4409_v8 = vmul.f32 %v4378_v27, %v7873_v40  ;;  %v4075_v27 = vcombine.high %v8049_v52, %v8049_v52  ;;  %v4144_v57 = vrot.slane %v4073_v24, %v6542_v4 }
 0x6ce   : > { %v8132_v20 = vrot.slane %v4365_v63, %v6542_v4  ;;  %v8145_v63 = vrot.slane %v4364_v7, %v6542_v4  ;;  %v4074_v7 = vcombine.high %v8125_v60, %v8125_v60  ;;  %v3607_v24 = vmul.f32 1.442695, %v3598_v33 }
 0x6cf   : > { %v8178_v29 = vmul.f32 1.442695, %v4409_v8  ;;  %v8893_v33 = vrot.slane %v7815_v49, %v8873_v39  ;;  %v3554_v39 = vcombine.high %v8016_v62, %v8016_v62 }
 0x6d0   : > { %5040 = vbcast.lane.b32.xlu1 %v5038_v41, 256  ;;  %3832 = vbcast.lane.b32.xlu0 %v3830_v10, 256  ;;  %v4408_v10 = vmul.f32 %v4374_v31, %v7873_v40  ;;  %v4411_v41 = vmul.f32 %v4386_v28, %v7873_v40  ;;  %v4415_v31 = vmul.f32 1.442695, %v4407_v14  ;;  %v8890_v28 = vcombine.high %v7993_v15, %v7993_v15 }
 0x6d1   : > { %v3552_v14 = vrot.slane %v8891_v0, %v8885_v55  ;;  %v4005_v15 = vmul.f32 %v8036_v36, %v7873_v40 }
 0x6d2   : > { %v8176_v13 = vmul.f32 1.442695, %v4408_v10  ;;  %v8180_v61 = vmul.f32 1.442695, %v4411_v41  ;;  %6297 = vpow2.f32 %v4415_v31  ;;  %v4152_v10 = vrot.slane %v8125_v60, %v6542_v4 }
 0x6d3   : > { %v8192_v41 = vrot.slane %v4075_v27, %v6542_v4  ;;  %6299 = vpow2.f32 %v8051_v6  ;;  %v8206_v31 = vrot.slane %v3630_v32, %v8885_v55  ;;  %v3576_v27 = vrot.slane %v8016_v62, %v6542_v4 }
 0x6d4   : > { %5047 = vbcast.lane.b32.xlu1 %v5045_v42, 256  ;;  %v3572_v42 = vrot.slane %v3555_v16, %v6542_v4  ;;  %5019 = vbcast.lane.b32.xlu0 %v5017_v54, 256  ;;  %v8166_v16 = vrot.slane %v4044_v19, %v8885_v55  ;;  %v3568_v54 = vrot.slane %v8890_v28, %v6542_v4  ;;  %6301 = vpow2.f32 %v3607_v24 }
 0x6d5   : > { %v3638_v19 = vcombine.high %v3630_v32, %v3630_v32  ;;  %v5237_v32 = vld [vmem:[%s8782_s3 + $0x130] sm:$0xff]  ;;  %v8895_v62 = vrot.slane %v8049_v52, %v6542_v4  ;;  %v8897_v52 = vrot.slane %v7815_v49, %v8872_v56 }
 0x6d6   : > { %v3600_v47 = vmul.f32 %v3572_v42, %v7873_v40  ;;  %v4076_v36 = vcombine.high %v8166_v16, %v8166_v16  ;;  %v3599_v8 = vmul.f32 %v3568_v54, %v7873_v40  ;;  %v3580_v42 = vrot.slane %v3552_v14, %v6542_v4 }
 0x6d7   : > { %v8213_v0 = vrot.slane %v3638_v19, %v8885_v55  ;;  %v4016_v54 = vmul.f32 1.442695, %v4005_v15  ;;  %v3556_v15 = vcombine.high %v3552_v14, %v3552_v14 }
 0x6d8   : > { %4614 = vbcast.lane.b32.xlu1 %v4612_v34, 256  ;;  %v3597_v34 = vmul.f32 %v3560_v53, %v7873_v40  ;;  %4607 = vbcast.lane.b32.xlu0 %v8892_v2, 256  ;;  %v8195_v53 = vrot.slane %v4074_v7, %v6542_v4  ;;  %v3611_v6 = vmul.f32 1.442695, %v3600_v47  ;;  %v8894_v2 = vrot.slane %v7815_v49, %v8881_v48  ;;  %v5239_v48 = vld [vmem:[%s8782_s3 + $0x140] sm:$0xff] }
 0x6d9   : > { %v8896_v47 = vrot.slane %v8066_v5, %v6542_v4  ;;  %v8898_v5 = vcombine.high %v7966_v22, %v7966_v22 }
 0x6da   : > { %v3605_v60 = vmul.f32 1.442695, %v3597_v34  ;;  %v5236_v34 = vld [vmem:[%s8782_s3 + $0x128] sm:$0xff] }
 0x6db   : > { %v3637_v14 = vrot.slane %v8898_v5, %v8885_v55 }
 0x6dc   : > { %4621 = vbcast.lane.b32.xlu1 %v8893_v33, 256  ;;  %4642 = vbcast.lane.b32.xlu0 %v8894_v2, 256  ;;  %v6111_v33 = vpack.c.bf16 %v5237_v32, %v5236_v34  ;;  %v3602_v2 = vmul.f32 %v3580_v42, %v7873_v40  ;;  %v4156_v34 = vrot.slane %v8166_v16, %v6542_v4  ;;  %6303 = vpow2.f32 %v3605_v60 }
 0x6dd   : > { %v3601_v32 = vmul.f32 %v3576_v27, %v7873_v40  ;;  %v3670_v42 = vcombine.high %v8213_v0, %v8213_v0  ;;  %6305 = vpow2.f32 %v4016_v54  ;;  %v8900_v60 = vrot.slane %v7815_v49, %v8880_v18 }
 0x6de   : > { %v4090_v7 = vpop.permute.xlu0 %4089  ;;  %v4083_v28 = vpop.permute.xlu1 %4082  ;;  %6112 = vmatprep.subr.bf16.mxu0 %v6111_v33  ;;  %6307 = vpow2.f32 %v3611_v6  ;;  %v8901_v54 = vrot.slane %v7815_v49, %v8879_v11  ;;  %v8281_v11 = vrot.slane %v3637_v14, %v8885_v55 }
 0x6df   : > { %v8227_v24 = vmul.f32 %v8895_v62, %v4090_v7  ;;  %v8232_v19 = vmul.f32 %v8896_v47, %v4083_v28  ;;  %v3609_v7 = vmul.f32 1.442695, %v3599_v8  ;;  %v6115_v28 = vpack.c.bf16 %v5239_v48, %v5238_v21  ;;  %6114 = vmatpush3.bf16.msra.mxu0 %v6111_v33  ;;  %v8278_v6 = vpop.eup %6297 }
 0x6e0   : > { %4628 = vbcast.lane.b32.xlu1 %v8897_v52, 256  ;;  %v3584_v62 = vrot.slane %v3554_v39, %v6542_v4  ;;  %v4164_v8 = vrot.slane %v4076_v36, %v6542_v4  ;;  %v8899_v21 = vrot.slane %v7984_v38, %v6542_v4  ;;  %4649 = vbcast.lane.b32.xlu0 %v8900_v60, 256  ;;  %v3615_v33 = vmul.f32 1.442695, %v3602_v2  ;;  %v8284_v5 = vpop.eup %6299 }
 0x6e1   : > { %v3588_v36 = vrot.slane %v3556_v15, %v6542_v4  ;;  %6116 = vmatprep.subr.bf16.mxu0 %v6115_v28  ;;  %6309 = vpow2.f32 %v3609_v7  ;;  %v3668_v38 = vcombine.high %v8206_v31, %v8206_v31  ;;  %v3639_v48 = vcombine.high %v3637_v14, %v3637_v14 }
 0x6e2   : > { %v4097_v56 = vpop.permute.xlu0 %4096  ;;  %v4111_v47 = vpop.permute.xlu1 %4110  ;;  %v4007_v22 = vmul.f32 %v8899_v21, %v7873_v40  ;;  %v3613_v15 = vmul.f32 1.442695, %v3601_v32  ;;  %v3603_v52 = vmul.f32 %v3584_v62, %v7873_v40  ;;  %v3731_v21 = vrot.slane %v8206_v31, %v6542_v4 }
 0x6e3   : > { %v8262_v27 = vmul.f32 %v4144_v57, %v4097_v56  ;;  %v8264_v39 = vmul.f32 %v4152_v10, %v4111_v47  ;;  %v5240_v57 = vld [vmem:[%s8782_s3 + $0x148] sm:$0xff]  ;;  %v5241_v10 = vld [vmem:[%s8782_s3 + $0x150] sm:$0xff]  ;;  %v3735_v47 = vrot.slane %v8213_v0, %v6542_v4  ;;  %6311 = vpow2.f32 %v8059_v59  ;;  %6118 = vmatpush3.bf16.msra.mxu0 %v6115_v28  ;;  %v6302_v31 = vpop.eup %6301 }
 0x6e4   : > { %4635 = vbcast.lane.b32.xlu1 %v8901_v54, 256  ;;  %v6119_v7 = vpack.c.bf16 %v5241_v10, %v5240_v57  ;;  %v4020_v60 = vmul.f32 1.442695, %v4007_v22  ;;  %v8902_v14 = vrot.slane %v7815_v49, %v8882_v51  ;;  %6313 = vpow2.f32 %v8068_v9 }
 0x6e5   : > { %v3604_v0 = vmul.f32 %v3588_v36, %v7873_v40  ;;  %v8903_v59 = vrot.slane %v7808_v3, %v8880_v18  ;;  %v8306_v28 = vrot.slane %v3670_v42, %v6542_v4  ;;  %v8309_v49 = vrot.slane %v3668_v38, %v6542_v4 }
 0x6e6   : > { %v4104_v2 = vpop.permute.xlu0 %4103  ;;  %v4125_v56 = vpop.permute.xlu1 %4124  ;;  %4656 = vbcast.lane.b32.xlu0 %v8902_v14, 256  ;;  %6120 = vmatprep.subr.bf16.mxu0 %v6119_v7  ;;  %6315 = vpow2.f32 %v3615_v33  ;;  %v3617_v9 = vmul.f32 1.442695, %v3603_v52  ;;  %v4410_v22 = vmul.f32 %v8132_v20, %v7873_v40  ;;  %v3747_v42 = vrot.slane %v8281_v11, %v6542_v4  ;;  %v5242_v20 = vld [vmem:[%s8782_s3 + $0x158] sm:$0xff] }
 0x6e7   : > { %v8295_v32 = vmul.f32 %v8192_v41, %v4104_v2  ;;  %v8298_v62 = vmul.f32 %v8195_v53, %v4125_v56  ;;  %v8312_v41 = vrot.slane %v3639_v48, %v8885_v55  ;;  %6317 = vpow2.f32 %v3613_v15  ;;  %6122 = vmatpush3.bf16.msra.mxu0 %v6119_v7  ;;  %v5243_v48 = vld [vmem:[%s8782_s3 + $0x160] sm:$0xff]  ;;  %v6304_v57 = vpop.eup %6303 }
 0x6e8   : > { %5054 = vbcast.lane.b32.xlu1 %v8903_v59, 256  ;;  %v3669_v53 = vcombine.high %v8281_v11, %v8281_v11  ;;  %6319 = vpow2.f32 %v4020_v60  ;;  %v8322_v54 = vrot.slane %v8077_v46, %v8885_v55  ;;  %v8904_v38 = vrot.slane %v8086_v44, %v6542_v4  ;;  %v6306_v2 = vpop.eup %6305 }
 0x6e9   : > { %v8905_v10 = vrot.slane %v7808_v3, %v8882_v51  ;;  %v3619_v52 = vmul.f32 1.442695, %v3604_v0  ;;  %v6123_v7 = vpack.c.bf16 %v5243_v48, %v5242_v20  ;;  %v3777_v56 = vmul.f32 0.0, %v6302_v31  ;;  %v6308_v3 = vpop.eup %6307 }
 0x6ea   : > { %v4118_v18 = vpop.permute.xlu0 %4117  ;;  %v4132_v36 = vpop.permute.xlu1 %4131  ;;  %v4412_v33 = vmul.f32 %v8904_v38, %v7873_v40  ;;  %v3751_v60 = vrot.slane %v8312_v41, %v6542_v4  ;;  %6321 = vpow2.f32 %v8176_v13  ;;  %v4008_v51 = vmul.f32 %v8043_v58, %v7873_v40 }
 0x6eb   : > { %5061 = vbcast.lane.b32.xlu0 %v8905_v10, 256  ;;  %v8340_v15 = vmul.f32 %v4156_v34, %v4118_v18  ;;  %v8342_v44 = vmul.f32 %v4164_v8, %v4132_v36  ;;  %6323 = vpow2.f32 %v3617_v9  ;;  %v8350_v16 = vrot.slane %v3669_v53, %v6542_v4  ;;  %6124 = vmatprep.subr.bf16.mxu0 %v6123_v7  ;;  %v6310_v14 = vpop.eup %6309 }
 0x6ec   : > { %v3671_v34 = vcombine.high %v8312_v41, %v8312_v41  ;;  %v4421_v8 = vmul.f32 1.442695, %v4410_v22  ;;  %v8356_v59 = vrot.slane %v8322_v54, %v8885_v55  ;;  %6325 = vpow2.f32 %v8178_v29  ;;  %6126 = vmatpush3.bf16.msra.mxu0 %v6123_v7 }
 0x6ed   : > { %v4425_v13 = vmul.f32 1.442695, %v4412_v33  ;;  %v4009_v58 = vmul.f32 %v8046_v1, %v7873_v40  ;;  %v3776_v53 = vmul.f32 0.0, %v6304_v57  ;;  %6327 = vpow2.f32 %v3619_v52  ;;  %v6312_v22 = vpop.eup %6311 }
 0x6ee   : > { %v3685_v0 = vpop.permute.xlu0 %3684  ;;  %v3678_v31 = vpop.permute.xlu1 %3677  ;;  %v4838_v36 = vcombine.high %v8077_v46, %v8077_v46  ;;  %6329 = vpow2.f32 %v8180_v61  ;;  %v4022_v38 = vmul.f32 1.442695, %v4008_v51  ;;  %v4413_v20 = vmul.f32 %v8145_v63, %v7873_v40 }
 0x6ef   : > { %v3769_v9 = vmul.f32 %v3735_v47, %v3685_v0  ;;  %v3768_v18 = vmul.f32 %v3731_v21, %v3678_v31  ;;  %v6314_v29 = vpop.eup %6313  ;;  %v4853_v1 = vcombine.high %v8322_v54, %v8322_v54  ;;  %6331 = vpow2.f32 %v4421_v8 }
 0x6f0   : > { %v6316_v47 = vpop.eup %6315  ;;  %v3779_v21 = vmul.f32 0.0, %v6308_v3  ;;  %v3778_v10 = vmul.f32 0.0, %v6310_v14  ;;  %6333 = vpow2.f32 %v4425_v13  ;;  %v4024_v61 = vmul.f32 1.442695, %v4009_v58 }
 0x6f1   : > { %v8366_v33 = vadd.f32 %v3777_v56, %v3769_v9  ;;  %v8368_v48 = vadd.f32 %v3776_v53, %v3768_v18  ;;  %v6318_v52 = vpop.eup %6317  ;;  %v4946_v3 = vrot.slane %v8356_v59, %v6542_v4  ;;  %6335 = vpow2.f32 %v4022_v38 }
 0x6f2   : > { %v3699_v57 = vpop.permute.xlu0 %3698  ;;  %v3692_v46 = vpop.permute.xlu1 %3691  ;;  %v4427_v8 = vmul.f32 1.442695, %v4413_v20  ;;  %v4414_v14 = vmul.f32 %v8152_v25, %v7873_v40  ;;  %v3780_v9 = vmul.f32 0.0, %v6318_v52  ;;  %v4852_v18 = vrot.slane %v4838_v36, %v8885_v55 }
 0x6f3   : > { %v4182_v63 = vmul.f32 %v8284_v5, %v8366_v33  ;;  %v4181_v7 = vmul.f32 %v8127_v17, %v8368_v48  ;;  %v3771_v56 = vmul.f32 %v8306_v28, %v3699_v57  ;;  %v3770_v51 = vmul.f32 %v8309_v49, %v3692_v46  ;;  %v6320_v0 = vpop.eup %6319 }
 0x6f4   : > { %v6322_v28 = vpop.eup %6321  ;;  %v3781_v49 = vmul.f32 0.0, %v6316_v47  ;;  %6337 = vpow2.f32 %v4024_v61  ;;  %v4429_v36 = vmul.f32 1.442695, %v4414_v14 }
 0x6f5   : > { %v8382_v31 = vadd.f32 %v3779_v21, %v3771_v56  ;;  %v8384_v13 = vadd.f32 %v3778_v10, %v3770_v51  ;;  %v8387_v5 = vadd.f32 %v4182_v63, %v8227_v24  ;;  %v8390_v17 = vadd.f32 %v4181_v7, %v8232_v19  ;;  %v6324_v38 = vpop.eup %6323 }
 0x6f6   : > { %v3713_v58 = vpop.permute.xlu0 %3712  ;;  %v3706_v53 = vpop.permute.xlu1 %3705  ;;  %6339 = vpow2.f32 %v4427_v8  ;;  %v3782_v61 = vmul.f32 0.0, %v6324_v38  ;;  %v4868_v63 = vrot.slane %v4852_v18, %v8885_v55  ;;  %v4854_v7 = vcombine.high %v4852_v18, %v4852_v18 }
 0x6f7   : > { %v4184_v25 = vmul.f32 %v6306_v2, %v8382_v31  ;;  %v4183_v20 = vmul.f32 %v6312_v22, %v8384_v13  ;;  %v3773_v21 = vmul.f32 %v3751_v60, %v3713_v58  ;;  %v3772_v24 = vmul.f32 %v3747_v42, %v3706_v53  ;;  %v6326_v19 = vpop.eup %6325 }
 0x6f8   : > { %v8399_v57 = vmul.f32 %v6322_v28, %v8387_v5  ;;  %v8403_v47 = vmul.f32 %v8278_v6, %v8390_v17  ;;  %v6328_v10 = vpop.eup %6327  ;;  %v4779_v22 = vrot.slane %v8094_v26, %v6542_v4  ;;  %v3759_v28 = vrot.slane %v3671_v34, %v6542_v4 }
 0x6f9   : > { %v8405_v46 = vadd.f32 %v3781_v49, %v3773_v21  ;;  %v8407_v2 = vadd.f32 %v3780_v9, %v3772_v24  ;;  %v8410_v60 = vadd.f32 %v4183_v20, %v8262_v27  ;;  %v8413_v11 = vadd.f32 %v4184_v25, %v8295_v32  ;;  %v6330_v42 = vpop.eup %6329 }
 0x6fa   : > { %v3720_v6 = vpop.permute.xlu1 %3719  ;;  %v4893_v52 = vpop.permute.xlu0 %4892  ;;  %6341 = vpow2.f32 %v4429_v36  ;;  %v3783_v53 = vmul.f32 0.0, %v6328_v10  ;;  %v4962_v38 = vrot.slane %v4868_v63, %v6542_v4  ;;  %v4882_v25 = vrot.slane %v4854_v7, %v8885_v55 }
 0x6fb   : > { %v6332_v56 = vpop.eup %6331  ;;  %v4186_v51 = vmul.f32 %v6320_v0, %v8405_v46  ;;  %v4185_v8 = vmul.f32 %v6314_v29, %v8407_v2  ;;  %v3774_v27 = vmul.f32 %v8350_v16, %v3720_v6  ;;  %v8421_v14 = vmul.f32 %v4946_v3, %v4893_v52 }
 0x6fc   : > { %v6334_v32 = vpop.eup %6333  ;;  %v8428_v49 = vmul.f32 %v6326_v19, %v8410_v60  ;;  %v8431_v58 = vmul.f32 %v6332_v56, %v8413_v11  ;;  %v4875_v16 = vrot.slane %v4853_v1, %v8885_v55  ;;  %v8906_v3 = vrot.slane %v8074_v43, %v6542_v4 }
 0x6fd   : > { %v8433_v0 = vadd.f32 %v3782_v61, %v3774_v27  ;;  %v8440_v29 = vadd.f32 %v4185_v8, %v8264_v39  ;;  %v8443_v41 = vadd.f32 %v4186_v51, %v8340_v15  ;;  %v6336_v34 = vpop.eup %6335  ;;  %v8907_v24 = vcombine.high %v8074_v43, %v8074_v43 }
 0x6fe   : > { %v4812_v9 = vmul.f32 %v8906_v3, %v7873_v40  ;;  %v3727_v18 = vpop.permute.xlu1 %3726  ;;  %v4921_v1 = vpop.permute.xlu0 %4920  ;;  %v4791_v36 = vrot.slane %v8104_v45, %v6542_v4  ;;  %v4813_v10 = vmul.f32 %v4779_v22, %v7873_v40  ;;  %v4950_v6 = vrot.slane %v4875_v16, %v6542_v4 }
 0x6ff   : > { %v3775_v54 = vmul.f32 %v3759_v28, %v3727_v18  ;;  %v8452_v39 = vmul.f32 %v6330_v42, %v8440_v29  ;;  %v8455_v15 = vmul.f32 %v6334_v32, %v8443_v41  ;;  %v4187_v20 = vmul.f32 %v6336_v34, %v8433_v0  ;;  %v6338_v21 = vpop.eup %6337 }
 0x700   : > { %v4783_v19 = vrot.slane %v8907_v24, %v6542_v4  ;;  %v8465_v61 = vmul.f32 %v4962_v38, %v4921_v1  ;;  %v4883_v52 = vcombine.high %v8356_v59, %v8356_v59  ;;  %v6340_v56 = vpop.eup %6339  ;;  %v4795_v43 = vrot.slane %v8116_v37, %v6542_v4 }
 0x701   : > { %v8467_v42 = vadd.f32 %v3783_v53, %v3775_v54  ;;  %v8473_v7 = vadd.f32 %v4187_v20, %v8298_v62  ;;  %v4966_v8 = vrot.slane %v4882_v25, %v6542_v4  ;;  %v4884_v22 = vcombine.high %v4868_v63, %v4868_v63 }
 0x702   : > { %v4900_v51 = vpop.permute.xlu1 %4899  ;;  %v4440_v27 = vrot.slane %v8081_v50, %v8885_v55  ;;  %v4820_v32 = vmul.f32 1.442695, %v4812_v9  ;;  %v4928_v34 = vpop.permute.xlu0 %4927  ;;  %v4814_v3 = vmul.f32 %v4783_v19, %v7873_v40  ;;  %v4816_v53 = vmul.f32 %v4791_v36, %v7873_v40 }
 0x703   : > { %v8480_v28 = vmul.f32 %v4950_v6, %v4900_v51  ;;  %v4188_v59 = vmul.f32 %v6338_v21, %v8467_v42  ;;  %v8484_v62 = vmul.f32 %v6340_v56, %v8473_v7  ;;  %v4822_v18 = vmul.f32 1.442695, %v4813_v10 }
 0x704   : > { %v8488_v38 = vmul.f32 %v4966_v8, %v4928_v34  ;;  %v4954_v63 = vrot.slane %v4883_v52, %v6542_v4  ;;  %v4885_v54 = vcombine.high %v4875_v16, %v4875_v16  ;;  %v4433_v9 = vcombine.high %v8081_v50, %v8081_v50  ;;  %v6342_v20 = vpop.eup %6341 }
 0x705   : > { %v8494_v1 = vadd.f32 %v4188_v59, %v8342_v44  ;;  %v8908_v21 = vcombine.high %v8094_v26, %v8094_v26  ;;  %v4970_v36 = vrot.slane %v4884_v22, %v6542_v4  ;;  %v4886_v10 = vcombine.high %v4882_v25, %v4882_v25 }
 0x706   : > { %v4907_v19 = vpop.permute.xlu1 %4906  ;;  %v4448_v6 = vcombine.high %v4440_v27, %v4440_v27  ;;  %v4769_v16 = vcombine.high %v8104_v45, %v8104_v45  ;;  %6343 = vpow2.f32 %v4820_v32  ;;  %v4935_v50 = vpop.permute.xlu0 %4934  ;;  %v4824_v56 = vmul.f32 1.442695, %v4814_v3 }
 0x707   : > { %v4787_v24 = vrot.slane %v8908_v21, %v6542_v4  ;;  %v8503_v52 = vmul.f32 %v4954_v63, %v4907_v19  ;;  %v8506_v44 = vmul.f32 %v6342_v20, %v8494_v1  ;;  %v4828_v51 = vmul.f32 1.442695, %v4816_v53 }
 0x708   : > { %v8508_v8 = vmul.f32 %v4970_v36, %v4935_v50  ;;  %v4817_v26 = vmul.f32 %v4795_v43, %v7873_v40  ;;  %v4958_v22 = vrot.slane %v4885_v54, %v6542_v4  ;;  %v4456_v25 = vrot.slane %v4440_v27, %v8885_v55 }
 0x709   : > { %v4447_v34 = vrot.slane %v4433_v9, %v8885_v55  ;;  %6345 = vpow2.f32 %v4822_v18  ;;  %v5563_v45 = vmul.f32 -1.442695, %v7728_v35  ;;  %v4974_v59 = vrot.slane %v4886_v10, %v6542_v4 }
 0x70a   : > { %v4914_v32 = vpop.permute.xlu1 %4913  ;;  %v4470_v63 = vrot.slane %v4448_v6, %v8885_v55  ;;  %v4815_v3 = vmul.f32 %v4787_v24, %v7873_v40  ;;  %v5562_v53 = vmul.f32 -1.442695, %v7733_v12  ;;  %v4799_v43 = vrot.slane %v4769_v16, %v6542_v4  ;;  %v4942_v54 = vpop.permute.xlu0 %4941 }
 0x70b   : > { %v8520_v20 = vmul.f32 %v4958_v22, %v4914_v32  ;;  %v4771_v27 = vcombine.high %v8116_v37, %v8116_v37  ;;  %v8524_v18 = vmul.f32 %v4974_v59, %v4942_v54  ;;  %6347 = vpow2.f32 %v4828_v51 }
 0x70c   : > { %v4830_v9 = vmul.f32 1.442695, %v4817_v26  ;;  %v4541_v21 = vrot.slane %v4456_v25, %v6542_v4  ;;  %v8528_v19 = vrot.slane %v4447_v34, %v8885_v55  ;;  %v4449_v24 = vcombine.high %v4447_v34, %v4447_v34 }
 0x70d   : > { %6349 = vpow2.f32 %v4824_v56  ;;  %v4545_v36 = vrot.slane %v4470_v63, %v6542_v4  ;;  %v4478_v6 = vcombine.high %v4456_v25, %v4456_v25  ;;  %v4826_v16 = vmul.f32 1.442695, %v4815_v3 }
 0x70e   : > { %6351 = vpow2.f32 %v5563_v45  ;;  %v4488_v10 = vpop.permute.xlu1 %4487  ;;  %v4495_v50 = vpop.permute.xlu0 %4494  ;;  %v4818_v22 = vmul.f32 %v4799_v43, %v7873_v40  ;;  %v4803_v51 = vrot.slane %v4771_v27, %v6542_v4  ;;  %v4557_v56 = vrot.slane %v8528_v19, %v6542_v4 }
 0x70f   : > { %6353 = vpow2.f32 %v5562_v53  ;;  %v4578_v37 = vmul.f32 %v4541_v21, %v4488_v10  ;;  %v4579_v26 = vmul.f32 %v4545_v36, %v4495_v50  ;;  %v8539_v34 = vrot.slane %v4449_v24, %v8885_v55 }
 0x710   : > { %6355 = vpow2.f32 %v4830_v9  ;;  %v6344_v32 = vpop.eup %6343  ;;  %v4549_v45 = vrot.slane %v4478_v6, %v6542_v4  ;;  %v4480_v27 = vcombine.high %v4470_v63, %v4470_v63  ;;  %v4832_v9 = vmul.f32 1.442695, %v4818_v22 }
 0x711   : > { %v8534_v59 = vadd.f32 %v8403_v47, %v4578_v37  ;;  %v8542_v25 = vadd.f32 %v8399_v57, %v4579_v26  ;;  %6357 = vpow2.f32 %v4826_v16  ;;  %v4819_v55 = vmul.f32 %v4803_v51, %v7873_v40 }
 0x712   : > { %v4516_v3 = vpop.permute.xlu1 %4515  ;;  %v4502_v43 = vpop.permute.xlu0 %4501  ;;  %v5565_v24 = vmul.f32 -1.442695, %v7736_v30  ;;  %v4561_v10 = vrot.slane %v8539_v34, %v6542_v4  ;;  %v5564_v16 = vmul.f32 -1.442695, %v7739_v23  ;;  %6359 = vpow2.f32 %v4832_v9 }
 0x713   : > { %v6346_v53 = vpop.eup %6345  ;;  %v4582_v54 = vmul.f32 %v4557_v56, %v4516_v3  ;;  %v4991_v47 = vmul.f32 %v6344_v32, %v8534_v59  ;;  %v4580_v21 = vmul.f32 %v4549_v45, %v4502_v43  ;;  %v4479_v56 = vcombine.high %v8528_v19, %v8528_v19 }
 0x714   : > { %v4992_v36 = vmul.f32 %v6346_v53, %v8542_v25  ;;  %6361 = vpow2.f32 %v5565_v24 }
 0x715   : > { %v8550_v57 = vadd.f32 %v8452_v39, %v4582_v54  ;;  %v8555_v6 = vadd.f32 %v4991_v47, %v8421_v14  ;;  %v6348_v63 = vpop.eup %6347  ;;  %v8559_v50 = vadd.f32 %v8428_v49, %v4580_v21  ;;  %v4553_v39 = vrot.slane %v4480_v27, %v6542_v4 }
 0x716   : > { %v4523_v37 = vpop.permute.xlu1 %4522  ;;  %v8562_v40 = vadd.f32 %v4992_v36, %v8480_v28  ;;  %v4509_v14 = vpop.permute.xlu0 %4508  ;;  %v4834_v49 = vmul.f32 1.442695, %v4819_v55  ;;  %6363 = vpow2.f32 %v5564_v16  ;;  %v4565_v24 = vrot.slane %v4479_v56, %v6542_v4 }
 0x717   : > { %v6350_v22 = vpop.eup %6349  ;;  %v4583_v51 = vmul.f32 %v4561_v10, %v4523_v37  ;;  %v4995_v26 = vmul.f32 %v6348_v63, %v8550_v57  ;;  %v4581_v53 = vmul.f32 %v4553_v39, %v4509_v14 }
 0x718   : > { %v6352_v32 = vpop.eup %6351  ;;  %v4993_v45 = vmul.f32 %v6350_v22, %v8559_v50  ;;  %6365 = vpow2.f32 %v4834_v49 }
 0x719   : > { %v6354_v3 = vpop.eup %6353  ;;  %v8570_v28 = vadd.f32 %v8455_v15, %v4583_v51  ;;  %v8573_v43 = vadd.f32 %v4995_v26, %v8465_v61  ;;  %v5217_v9 = vadd.f32 1.0, %v6352_v32  ;;  %v8579_v19 = vadd.f32 %v8431_v58, %v4581_v53 }
 0x71a   : > { %v6356_v54 = vpop.eup %6355  ;;  %v4203_v27 = vpop.permute.xlu1 %4202  ;;  %v8576_v47 = vadd.f32 %v4993_v45, %v8503_v52  ;;  %v5216_v15 = vadd.f32 1.0, %v6354_v3  ;;  %v4481_v61 = vcombine.high %v8539_v34, %v8539_v34 }
 0x71b   : > { %v4253_v21 = vmul.f32 %v4203_v27, %v8390_v17  ;;  %v4996_v36 = vmul.f32 %v6356_v54, %v8570_v28  ;;  %v6358_v55 = vpop.eup %6357  ;;  %v4530_v10 = vpop.permute.xlu0 %4529  ;;  %6367 = vrcp.f32 %v5217_v9 }
 0x71c   : > { %v4994_v63 = vmul.f32 %v6358_v55, %v8579_v19  ;;  %v4584_v16 = vmul.f32 %v4565_v24, %v4530_v10  ;;  %6369 = vrcp.f32 %v5216_v15  ;;  %v4569_v51 = vrot.slane %v4481_v61, %v6542_v4  ;;  %v6360_v32 = vpop.eup %6359 }
 0x71d   : > { %v4261_v52 = vsel %vm649_vm2, %v4253_v21, 0.0  ;;  %v8589_v58 = vadd.f32 %v4996_v36, %v8488_v38 }
 0x71e   : > { %v4262_v17 = vrot.slane %v4261_v52, 4  ;;  %v4217_v37 = vpop.permute.xlu1 %4216  ;;  %v8593_v39 = vadd.f32 %v4994_v63, %v8520_v20  ;;  %v8597_v26 = vadd.f32 %v8484_v62, %v4584_v16  ;;  %v6362_v53 = vpop.eup %6361 }
 0x71f   : > { %v4255_v22 = vmul.f32 %v4217_v37, %v8410_v60  ;;  %v4537_v14 = vpop.permute.xlu0 %4536 }
 0x720   : > { %v4263_v34 = vadd.f32 %v4262_v17, %v4261_v52  ;;  %v4585_v45 = vmul.f32 %v4569_v51, %v4537_v14  ;;  %v4997_v60 = vmul.f32 %v6360_v32, %v8597_v26  ;;  %v6364_v54 = vpop.eup %6363  ;;  %v8613_v17 = vadd.f32 1.0, %v6362_v53 }
 0x721   : > { %v4275_v38 = vsel %vm649_vm2, %v4255_v22, 0.0  ;;  %v5218_v10 = vadd.f32 1.0, %v6364_v54 }
 0x722   : > { %v4264_v56 = vrot.slane %v4263_v34, 2  ;;  %v4276_v49 = vrot.slane %v4275_v38, 4  ;;  %v4224_v3 = vpop.permute.xlu1 %4223  ;;  %v8603_v4 = vadd.f32 %v8506_v44, %v4585_v45  ;;  %v8606_v62 = vadd.f32 %v4997_v60, %v8508_v8  ;;  %v6366_v36 = vpop.eup %6365 }
 0x723   : > { %v4256_v20 = vmul.f32 %v4224_v3, %v8413_v11  ;;  %v4210_v9 = vpop.permute.xlu0 %4209  ;;  %6371 = vrcp.f32 %v5218_v10 }
 0x724   : > { %v4277_v27 = vadd.f32 %v4276_v49, %v4275_v38  ;;  %v4265_v55 = vadd.f32 %v4264_v56, %v4263_v34  ;;  %v4254_v15 = vmul.f32 %v4210_v9, %v8387_v5  ;;  %v4998_v63 = vmul.f32 %v6366_v36, %v8603_v4 }
 0x725   : > { %v4282_v21 = vsel %vm649_vm2, %v4256_v20, 0.0  ;;  %v6368_v8 = vpop.eup %6367  ;;  %6373 = vrcp.f32 %v8613_v17 }
 0x726   : > { %v4283_v24 = vrot.slane %v4282_v21, 4  ;;  %v4231_v61 = vpop.permute.xlu1 %4230  ;;  %v4278_v52 = vrot.slane %v4277_v27, 2  ;;  %v4268_v44 = vsel %vm649_vm2, %v4254_v15, 0.0  ;;  %v8617_v5 = vadd.f32 %v4998_v63, %v8524_v18  ;;  %v6370_v51 = vpop.eup %6369 }
 0x727   : > { %v4257_v11 = vmul.f32 %v4231_v61, %v8440_v29  ;;  %v4269_v37 = vrot.slane %v4268_v44, 4  ;;  %v4238_v22 = vpop.permute.xlu0 %4237  ;;  %v4266_v32 = vrot.slane %v4265_v55, 1  ;;  %v8622_v60 = vmul.f32 %v6368_v8, %v7728_v35 }
 0x728   : > { %v4284_v16 = vadd.f32 %v4283_v24, %v4282_v21  ;;  %v4258_v29 = vmul.f32 %v4238_v22, %v8443_v41  ;;  %v4279_v45 = vadd.f32 %v4278_v52, %v4277_v27  ;;  %v8626_v54 = vmul.f32 %v6370_v51, %v7733_v12 }
 0x729   : > { %v4289_v34 = vsel %vm649_vm2, %v4257_v11, 0.0  ;;  %v4270_v49 = vadd.f32 %v4269_v37, %v4268_v44  ;;  %v4267_v15 = vadd.f32 %v4266_v32, %v4265_v55 }
 0x72a   : > { %v4285_v14 = vrot.slane %v4284_v16, 2  ;;  %v4290_v38 = vrot.slane %v4289_v34, 4  ;;  %v3798_v56 = vpop.permute.xlu1 %3797  ;;  %v4296_v20 = vsel %vm649_vm2, %v4258_v29, 0.0  ;;  %v4280_v35 = vrot.slane %v4279_v45, 1 }
 0x72b   : > { %v3848_v3 = vmul.f32 %v3798_v56, %v8368_v48  ;;  %v4271_v9 = vrot.slane %v4270_v49, 2  ;;  %v4297_v21 = vrot.slane %v4296_v20, 4  ;;  %v4245_v41 = vpop.permute.xlu0 %4244 }
 0x72c   : > { %v4286_v53 = vadd.f32 %v4285_v14, %v4284_v16  ;;  %v4291_v18 = vadd.f32 %v4290_v38, %v4289_v34  ;;  %v4259_v24 = vmul.f32 %v4245_v41, %v8473_v7  ;;  %v4281_v38 = vadd.f32 %v4280_v35, %v4279_v45 }
 0x72d   : > { %v3856_v36 = vsel %vm649_vm2, %v3848_v3, 0.0  ;;  %v4272_v10 = vadd.f32 %v4271_v9, %v4270_v49  ;;  %v4298_v52 = vadd.f32 %v4297_v21, %v4296_v20  ;;  %v8635_v21 = vpop.eup %6371 }
 0x72e   : > { %v4292_v27 = vrot.slane %v4291_v18, 2  ;;  %v3857_v48 = vrot.slane %v3856_v36, 4  ;;  %v3840_v61 = vpop.permute.xlu1 %3839  ;;  %v4287_v63 = vrot.slane %v4286_v53, 1  ;;  %v4303_v12 = vsel %vm649_vm2, %v4259_v24, 0.0 }
 0x72f   : > { %v3854_v11 = vmul.f32 %v3840_v61, %v8433_v0  ;;  %v4273_v8 = vrot.slane %v4272_v10, 1  ;;  %v4299_v37 = vrot.slane %v4298_v52, 2  ;;  %v4304_v22 = vrot.slane %v4303_v12, 4  ;;  %v4252_v34 = vpop.permute.xlu0 %4251 }
 0x730   : > { %v4293_v44 = vadd.f32 %v4292_v27, %v4291_v18  ;;  %v3858_v16 = vadd.f32 %v3857_v48, %v3856_v36  ;;  %v4260_v32 = vmul.f32 %v4252_v34, %v8494_v1  ;;  %v4288_v3 = vadd.f32 %v4287_v63, %v4286_v53 }
 0x731   : > { %v3898_v55 = vsel %vm649_vm2, %v3854_v11, 0.0  ;;  %v4274_v56 = vadd.f32 %v4273_v8, %v4272_v10  ;;  %v4300_v0 = vadd.f32 %v4299_v37, %v4298_v52  ;;  %v4305_v49 = vadd.f32 %v4304_v22, %v4303_v12 }
 0x732   : > { %v4294_v51 = vrot.slane %v4293_v44, 1  ;;  %v3859_v7 = vrot.slane %v3858_v16, 2  ;;  %v3899_v14 = vrot.slane %v3898_v55, 4  ;;  %v3847_v29 = vpop.permute.xlu1 %3846  ;;  %v4310_v9 = vsel %vm649_vm2, %v4260_v32, 0.0 }
 0x733   : > { %v5151_v41 = vsel %vm2621_vm11, %v4274_v56, %v4267_v15  ;;  %v4301_v36 = vrot.slane %v4300_v0, 1  ;;  %v4306_v27 = vrot.slane %v4305_v49, 2  ;;  %v4311_v24 = vrot.slane %v4310_v9, 4  ;;  %v3805_v48 = vpop.permute.xlu0 %3804  ;;  %v8645_v15 = vld [vmem:[%s8782_s3 + $0x120] ss:$0 sm:$0xff] }
 0x734   : > { %v4295_v20 = vadd.f32 %v4294_v51, %v4293_v44  ;;  %v3860_v18 = vadd.f32 %v3859_v7, %v3858_v16  ;;  %v5152_v1 = vsel %vm2623_vm12, %v4281_v38, %v5151_v41  ;;  %v3900_v61 = vadd.f32 %v3899_v14, %v3898_v55  ;;  %v8909_v16 = vld [vmem:[#allocation20_spill] sm:$0xff] }
 0x735   : > { %v3849_v45 = vmul.f32 %v3805_v48, %v8366_v33  ;;  %v3855_v35 = vmul.f32 %v3847_v29, %v8467_v42  ;;  %v5153_v10 = vsel %vm2625_vm13, %v4288_v3, %v5152_v1  ;;  %v4302_v52 = vadd.f32 %v4301_v36, %v4300_v0 }
 0x736   : > { %v5013_v53 = vpop.permute.xlu1 %5012  ;;  %v4307_v11 = vadd.f32 %v4306_v27, %v4305_v49  ;;  %v4312_v63 = vadd.f32 %v4311_v24, %v4310_v9  ;;  %v5154_v44 = vsel %vm2627_vm14, %v4295_v20, %v5153_v10  ;;  %v3861_v12 = vrot.slane %v3860_v18, 1 }
 0x737   : > { %v5197_v8 = vmul.f32 %v8645_v15, %v8909_v16  ;;  %v3863_v33 = vsel %vm649_vm2, %v3849_v45, 0.0  ;;  %v5155_v37 = vsel %vm2629_vm15, %v4302_v52, %v5154_v44  ;;  %v3812_v55 = vpop.permute.xlu0 %3811  ;;  %v3901_v51 = vrot.slane %v3900_v61, 2 }
 0x738   : > { %v4308_v42 = vrot.slane %v4307_v11, 1  ;;  %v4313_v22 = vrot.slane %v4312_v63, 2  ;;  %v3864_v34 = vrot.slane %v3863_v33, 4  ;;  %v3905_v7 = vsel %vm649_vm2, %v3855_v35, 0.0 }
 0x739   : > { %v3850_v32 = vmul.f32 %v3812_v55, %v8384_v13  ;;  %v5063_v14 = vmul.f32 %v5013_v53, %v8555_v6  ;;  %v3906_v49 = vrot.slane %v3905_v7, 4  ;;  %v3862_v3 = vadd.f32 %v3861_v12, %v3860_v18 }
 0x73a   : > { %v5027_v29 = vpop.permute.xlu1 %5026  ;;  %v4309_v38 = vadd.f32 %v4308_v42, %v4307_v11  ;;  %v4314_v56 = vadd.f32 %v4313_v22, %v4312_v63  ;;  %v3865_v0 = vadd.f32 %v3864_v34, %v3863_v33  ;;  %v8661_v63 = vadd.f32 %v3901_v51, %v3900_v61 }
 0x73b   : > { %v3870_v20 = vsel %vm649_vm2, %v3850_v32, 0.0  ;;  %v5071_v9 = vsel %vm649_vm2, %v5063_v14, 0.0  ;;  %v5065_v41 = vmul.f32 %v5027_v29, %v8576_v47  ;;  %v3907_v48 = vadd.f32 %v3906_v49, %v3905_v7  ;;  %v3819_v13 = vpop.permute.xlu0 %3818 }
 0x73c   : > { %v5156_v36 = vsel %vm2631_vm3, %v4309_v38, %v5155_v37  ;;  %v4315_v27 = vrot.slane %v4314_v56, 1  ;;  %v3866_v24 = vrot.slane %v3865_v0, 2  ;;  %v3871_v1 = vrot.slane %v3870_v20, 4 }
 0x73d   : > { %v5072_v6 = vrot.slane %v5071_v9, 4  ;;  %v3851_v45 = vmul.f32 %v3819_v13, %v8382_v31  ;;  %v5085_v35 = vsel %vm649_vm2, %v5065_v41, 0.0  ;;  %v3908_v52 = vrot.slane %v3907_v48, 2 }
 0x73e   : > { %v5034_v53 = vpop.permute.xlu1 %5033  ;;  %v4316_v18 = vadd.f32 %v4315_v27, %v4314_v56  ;;  %v3867_v10 = vadd.f32 %v3866_v24, %v3865_v0  ;;  %v5086_v11 = vrot.slane %v5085_v35, 4  ;;  %v3872_v47 = vadd.f32 %v3871_v1, %v3870_v20 }
 0x73f   : > { %v5073_v44 = vadd.f32 %v5072_v6, %v5071_v9  ;;  %v3877_v12 = vsel %vm649_vm2, %v3851_v45, 0.0  ;;  %v3826_v37 = vpop.permute.xlu0 %3825  ;;  %v5066_v31 = vmul.f32 %v5034_v53, %v8593_v39  ;;  %v8666_v29 = vadd.f32 %v3908_v52, %v3907_v48 }
 0x740   : > { %v5157_v16 = vsel %vm2633_vm4, %v4316_v18, %v5156_v36  ;;  %v3868_v33 = vrot.slane %v3867_v10, 1  ;;  %v3878_v42 = vrot.slane %v3877_v12, 4  ;;  %v3873_v34 = vrot.slane %v3872_v47, 2 }
 0x741   : > { %v5201_v22 = vadd.f32 %v5197_v8, %v5157_v16  ;;  %v5074_v55 = vrot.slane %v5073_v44, 2  ;;  %v5087_v7 = vadd.f32 %v5086_v11, %v5085_v35  ;;  %v3852_v51 = vmul.f32 %v3826_v37, %v8407_v2 }
 0x742   : > { %v5041_v32 = vpop.permute.xlu1 %5040  ;;  %v3869_v14 = vadd.f32 %v3868_v33, %v3867_v10  ;;  %v3879_v61 = vadd.f32 %v3878_v42, %v3877_v12  ;;  %v3874_v56 = vadd.f32 %v3873_v34, %v3872_v47  ;;  %v3903_v20 = vrot.slane %v8661_v63, 1 }
 0x743   : > { %v8670_v38 = vmul.f32 %v8622_v60, %v5201_v22  ;;  %v5075_v0 = vadd.f32 %v5074_v55, %v5073_v44  ;;  %v5088_v49 = vrot.slane %v5087_v7, 2  ;;  %v3884_v9 = vsel %vm649_vm2, %v3852_v51, 0.0  ;;  %v3833_v41 = vpop.permute.xlu0 %3832 }
 0x744   : > { %v5135_v39 = vsel %vm2621_vm11, %v3869_v14, %v3862_v3  ;;  %v3880_v8 = vrot.slane %v3879_v61, 2  ;;  %v3875_v36 = vrot.slane %v3874_v56, 1  ;;  %v3885_v48 = vrot.slane %v3884_v9, 4 }
 0x745   : > { %v5076_v27 = vrot.slane %v5075_v0, 1  ;;  %v5089_v24 = vadd.f32 %v5088_v49, %v5087_v7  ;;  %v5092_v60 = vsel %vm649_vm2, %v5066_v31, 0.0  ;;  %v3853_v1 = vmul.f32 %v3833_v41, %v8405_v46 }
 0x746   : > { %v5048_v13 = vpop.permute.xlu1 %5047  ;;  %v3881_v2 = vadd.f32 %v3880_v8, %v3879_v61  ;;  %v5067_v6 = vmul.f32 %v5041_v32, %v8573_v43  ;;  %v3910_v45 = vrot.slane %v8666_v29, 1  ;;  %v3876_v35 = vadd.f32 %v3875_v36, %v3874_v56 }
 0x747   : > { %v8679_v3 = vadd.f32 %v5076_v27, %v5075_v0  ;;  %v3886_v53 = vadd.f32 %v3885_v48, %v3884_v9  ;;  %v5093_v10 = vrot.slane %v5092_v60, 4  ;;  %v3891_v52 = vsel %vm649_vm2, %v3853_v1, 0.0  ;;  %v5020_v47 = vpop.permute.xlu0 %5019 }
 0x748   : > { %v3882_v18 = vrot.slane %v3881_v2, 1  ;;  %v5099_v11 = vsel %vm649_vm2, %v5067_v6, 0.0  ;;  %v5136_v44 = vsel %vm2623_vm12, %v3876_v35, %v5135_v39  ;;  %v5090_v12 = vrot.slane %v5089_v24, 1 }
 0x749   : > { %v3887_v16 = vrot.slane %v3886_v53, 2  ;;  %v3892_v46 = vrot.slane %v3891_v52, 4  ;;  %v5094_v42 = vadd.f32 %v5093_v10, %v5092_v60  ;;  %v5100_v37 = vrot.slane %v5099_v11, 4 }
 0x74a   : > { %v4615_v33 = vpop.permute.xlu1 %4614  ;;  %v3883_v43 = vadd.f32 %v3882_v18, %v3881_v2  ;;  %v5064_v31 = vmul.f32 %v5020_v47, %v8562_v40  ;;  %v5068_v55 = vmul.f32 %v5048_v13, %v8589_v58 }
 0x74b   : > { %v3888_v22 = vadd.f32 %v3887_v16, %v3886_v53  ;;  %v3893_v34 = vadd.f32 %v3892_v46, %v3891_v52  ;;  %v4659_v7 = vmul.f32 %v4615_v33, %v8542_v25  ;;  %v5095_v14 = vrot.slane %v5094_v42, 2  ;;  %v4608_v56 = vpop.permute.xlu0 %4607 }
 0x74c   : > { %v5137_v32 = vsel %vm2625_vm13, %v3883_v43, %v5136_v44  ;;  %v5101_v61 = vadd.f32 %v5100_v37, %v5099_v11  ;;  %v5078_v51 = vsel %vm649_vm2, %v5064_v31, 0.0  ;;  %v5106_v8 = vsel %vm649_vm2, %v5068_v55, 0.0 }
 0x74d   : > { %v3889_v0 = vrot.slane %v3888_v22, 1  ;;  %v3894_v49 = vrot.slane %v3893_v34, 2  ;;  %v5079_v39 = vrot.slane %v5078_v51, 4  ;;  %v5096_v9 = vadd.f32 %v5095_v14, %v5094_v42 }
 0x74e   : > { %v5102_v40 = vrot.slane %v5101_v61, 2  ;;  %v5107_v41 = vrot.slane %v5106_v8, 4  ;;  %v4658_v36 = vmul.f32 %v4608_v56, %v8534_v59  ;;  %v4622_v58 = vpop.permute.xlu1 %4621  ;;  %v4673_v13 = vsel %vm649_vm2, %v4659_v7, 0.0 }
 0x74f   : > { %v3890_v27 = vadd.f32 %v3889_v0, %v3888_v22  ;;  %v3895_v25 = vadd.f32 %v3894_v49, %v3893_v34  ;;  %v5080_v48 = vadd.f32 %v5079_v39, %v5078_v51  ;;  %v5097_v2 = vrot.slane %v5096_v9, 1  ;;  %v4643_v35 = vpop.permute.xlu0 %4642 }
 0x750   : > { %v5103_v60 = vadd.f32 %v5102_v40, %v5101_v61  ;;  %v5108_v1 = vadd.f32 %v5107_v41, %v5106_v8  ;;  %v4666_v6 = vsel %vm649_vm2, %v4658_v36, 0.0  ;;  %v5091_v11 = vadd.f32 %v5090_v12, %v5089_v24 }
 0x751   : > { %v5138_v53 = vsel %vm2627_vm14, %v3890_v27, %v5137_v32  ;;  %v3896_v18 = vrot.slane %v3895_v25, 1  ;;  %v5081_v10 = vrot.slane %v5080_v48, 2  ;;  %v4667_v52 = vrot.slane %v4666_v6, 4 }
 0x752   : > { %v5098_v47 = vadd.f32 %v5097_v2, %v5096_v9  ;;  %v5109_v59 = vrot.slane %v5108_v1, 2  ;;  %v4674_v44 = vrot.slane %v4673_v13, 4  ;;  %v4663_v43 = vmul.f32 %v4643_v35, %v8570_v28  ;;  %v4629_v55 = vpop.permute.xlu1 %4628 }
 0x753   : > { %v3897_v16 = vadd.f32 %v3896_v18, %v3895_v25  ;;  %v5082_v46 = vadd.f32 %v5081_v10, %v5080_v48  ;;  %v4668_v33 = vadd.f32 %v4667_v52, %v4666_v6  ;;  %v5104_v42 = vrot.slane %v5103_v60, 1  ;;  %v4650_v34 = vpop.permute.xlu0 %4649 }
 0x754   : > { %v5110_v37 = vadd.f32 %v5109_v59, %v5108_v1  ;;  %v4675_v31 = vadd.f32 %v4674_v44, %v4673_v13  ;;  %v4660_v22 = vmul.f32 %v4622_v58, %v8559_v50  ;;  %v4701_v24 = vsel %vm649_vm2, %v4663_v43, 0.0 }
 0x755   : > { %v5139_v7 = vsel %vm2629_vm15, %v3897_v16, %v5138_v53  ;;  %v5083_v32 = vrot.slane %v5082_v46, 1  ;;  %v4669_v14 = vrot.slane %v4668_v33, 2  ;;  %v4702_v51 = vrot.slane %v4701_v24, 4 }
 0x756   : > { %v5111_v12 = vrot.slane %v5110_v37, 1  ;;  %v4676_v61 = vrot.slane %v4675_v31, 2  ;;  %v4680_v56 = vsel %vm649_vm2, %v4660_v22, 0.0  ;;  %v4664_v39 = vmul.f32 %v4650_v34, %v8597_v26  ;;  %v4636_v6 = vpop.permute.xlu1 %4635  ;;  %v8910_v34 = vld [vmem:[#allocation18_spill] sm:$0xff] }
 0x757   : > { %v5084_v0 = vadd.f32 %v5083_v32, %v5082_v46  ;;  %v4670_v28 = vadd.f32 %v4669_v14, %v4668_v33  ;;  %v4681_v49 = vrot.slane %v4680_v56, 4  ;;  %v5105_v8 = vadd.f32 %v5104_v42, %v5103_v60 }
 0x758   : > { %v5112_v50 = vadd.f32 %v5111_v12, %v5110_v37  ;;  %v4677_v9 = vadd.f32 %v4676_v61, %v4675_v31  ;;  %v4661_v40 = vmul.f32 %v4629_v55, %v8579_v19  ;;  %v4708_v27 = vsel %vm649_vm2, %v4664_v39, 0.0  ;;  %v4657_v25 = vpop.permute.xlu0 %4656 }
 0x759   : > { %v5183_v41 = vsel %vm2621_vm11, %v5084_v0, %v8679_v3  ;;  %v4671_v36 = vrot.slane %v4670_v28, 1  ;;  %v4682_v58 = vadd.f32 %v4681_v49, %v4680_v56  ;;  %v4703_v2 = vadd.f32 %v4702_v51, %v4701_v24 }
 0x75a   : > { %v5184_v48 = vsel %vm2623_vm12, %v5091_v11, %v5183_v41  ;;  %v4678_v13 = vrot.slane %v4677_v9, 1  ;;  %v4709_v1 = vrot.slane %v4708_v27, 4  ;;  %v4687_v19 = vsel %vm649_vm2, %v4661_v40, 0.0 }
 0x75b   : > { %v5185_v26 = vsel %vm2625_vm13, %v5098_v47, %v5184_v48  ;;  %v4672_v60 = vadd.f32 %v4671_v36, %v4670_v28  ;;  %v4683_v35 = vrot.slane %v4682_v58, 2  ;;  %v3904_v3 = vadd.f32 %v3903_v20, %v8661_v63 }
 0x75c   : > { %v5186_v53 = vsel %vm2627_vm14, %v5105_v8, %v5185_v26  ;;  %v4679_v18 = vadd.f32 %v4678_v13, %v4677_v9  ;;  %v4710_v10 = vadd.f32 %v4709_v1, %v4708_v27  ;;  %v4688_v59 = vrot.slane %v4687_v19, 4 }
 0x75d   : > { %v8712_v52 = vsel %vm2629_vm15, %v5112_v50, %v5186_v53  ;;  %v4684_v11 = vadd.f32 %v4683_v35, %v4682_v58  ;;  %v4665_v44 = vmul.f32 %v4657_v25, %v8603_v4  ;;  %v3911_v47 = vadd.f32 %v3910_v45, %v8666_v29  ;;  %v5062_v37 = vpop.permute.xlu0 %5061  ;;  %v5055_v29 = vpop.permute.xlu1 %5054 }
 0x75e   : > { %v5167_v16 = vsel %vm2621_vm11, %v4679_v18, %v4672_v60  ;;  %v4704_v46 = vrot.slane %v4703_v2, 2  ;;  %v4662_v63 = vmul.f32 %v4636_v6, %v8550_v57  ;;  %v4689_v33 = vadd.f32 %v4688_v59, %v4687_v19 }
 0x75f   : > { %v4685_v20 = vrot.slane %v4684_v11, 1  ;;  %v4715_v43 = vsel %vm649_vm2, %v4665_v44, 0.0  ;;  %v5140_v42 = vsel %vm2631_vm3, %v3904_v3, %v5139_v7  ;;  %v4711_v31 = vrot.slane %v4710_v10, 2 }
 0x760   : > { %v4716_v22 = vrot.slane %v4715_v43, 4  ;;  %v4694_v4 = vsel %vm649_vm2, %v4662_v63, 0.0  ;;  %v5196_v55 = vmul.f32 %v8645_v15, %v8910_v34  ;;  %v4690_v32 = vrot.slane %v4689_v33, 2 }
 0x761   : > { %v4686_v45 = vadd.f32 %v4685_v20, %v4684_v11  ;;  %v4695_v14 = vrot.slane %v4694_v4, 4  ;;  %v5141_v57 = vsel %vm2633_vm4, %v3911_v47, %v5140_v42  ;;  %v4705_v24 = vadd.f32 %v4704_v46, %v4703_v2 }
 0x762   : > { %v4717_v12 = vadd.f32 %v4716_v22, %v4715_v43  ;;  %v5200_v61 = vadd.f32 %v5196_v55, %v5141_v57  ;;  %v5070_v51 = vmul.f32 %v5062_v37, %v8617_v5  ;;  %v4691_v56 = vadd.f32 %v4690_v32, %v4689_v33  ;;  %v6374_v33 = vpop.eup %6373 }
 0x763   : > { %v5168_v7 = vsel %vm2623_vm12, %v4686_v45, %v5167_v16  ;;  %v4696_v0 = vadd.f32 %v4695_v14, %v4694_v4  ;;  %v5069_v28 = vmul.f32 %v5055_v29, %v8606_v62  ;;  %v4712_v49 = vadd.f32 %v4711_v31, %v4710_v10  ;;  %v8911_v16 = vld [vmem:[#allocation19_spill] sm:$0xff]  ;;  %v8912_v31 = vld [vmem:[#allocation5_spill] sm:$0xff] }
 0x764   : > { %v4718_v39 = vrot.slane %v4717_v12, 2  ;;  %v5232_v8 = vmul.f32 %v8626_v54, %v5200_v61  ;;  %v5120_v50 = vsel %vm649_vm2, %v5070_v51, 0.0  ;;  %v4692_v9 = vrot.slane %v4691_v56, 1  ;;  %v5570_v61 = vld [vmem:[%s8780_s1 + $0x70] ss:$0 sm:$0xff] }
 0x765   : > { %v4697_v40 = vrot.slane %v4696_v0, 2  ;;  %v5121_v41 = vrot.slane %v5120_v50, 4  ;;  %v5113_v36 = vsel %vm649_vm2, %v5069_v28, 0.0  ;;  %v4706_v54 = vrot.slane %v4705_v24, 1 }
 0x766   : > { %v4719_v58 = vadd.f32 %v4718_v39, %v4717_v12  ;;  %5950 = vmatprep.mubr.msk.f32.mxu0 %vm649_vm2, %v5232_v8  ;;  %v5114_v5 = vrot.slane %v5113_v36, 4  ;;  %v4693_v27 = vadd.f32 %v4692_v9, %v4691_v56  ;;  %v4713_v13 = vrot.slane %v4712_v49, 1 }
 0x767   : > { %v4698_v25 = vadd.f32 %v4697_v40, %v4696_v0  ;;  %v5122_v62 = vadd.f32 %v5121_v41, %v5120_v50  ;;  %5951 = vmatmul.mubr.msk.f32.vlgmr.msra.gmra.mrb[24].mxu0 %vm649_vm2, %v8670_v38  ;;  %v4707_v3 = vadd.f32 %v4706_v54, %v4705_v24  ;;  %v5198_v46 = vmul.f32 %v8645_v15, %v8911_v16 }
 0x768   : > { %v5115_v48 = vadd.f32 %v5114_v5, %v5113_v36  ;;  %v5169_v2 = vsel %vm2625_vm13, %v4693_v27, %v5168_v7  ;;  %v4720_v26 = vrot.slane %v4719_v58, 1  ;;  %v4714_v17 = vadd.f32 %v4713_v13, %v4712_v49 }
 0x769   : > { %v4699_v1 = vrot.slane %v4698_v25, 1  ;;  %v5123_v6 = vrot.slane %v5122_v62, 2  ;;  %v5230_v43 = vmul.f32 %v8635_v21, %v7739_v23  ;;  %v5199_v22 = vmul.f32 %v8645_v15, %v8912_v31  ;;  %v5339_v23 = vld [vmem:[%s8780_s1 + $0x50] sm:$0xff]  ;;  %v5340_v21 = vld [vmem:[%s8780_s1 + $0x58] sm:$0xff]  ;;  %v5341_v15 = vld [vmem:[%s8780_s1 + $0x60] sm:$0xff] }
 0x76a   : > { %v5116_v60 = vrot.slane %v5115_v48, 2  ;;  %v4721_v11 = vadd.f32 %v4720_v26, %v4719_v58  ;;  %v5231_v55 = vmul.f32 %v6374_v33, %v7736_v30  ;;  %v6127_v30 = vpack.c.bf16 %v5340_v21, %v5339_v23 }
 0x76b   : > { %v4700_v35 = vadd.f32 %v4699_v1, %v4698_v25  ;;  %v5124_v19 = vadd.f32 %v5123_v6, %v5122_v62 }
 0x76c   : > { %v5117_v53 = vadd.f32 %v5116_v60, %v5115_v48  ;;  %6128 = vmatprep.subr.bf16.mxu1 %v6127_v30 }
 0x76d   : > { %v5170_v18 = vsel %vm2627_vm14, %v4700_v35, %v5169_v2  ;;  %v5125_v10 = vrot.slane %v5124_v19, 1  ;;  %6130 = vmatpush3.bf16.msra.mxu1 %v6127_v30 }
 0x76e   : > { %v5171_v38 = vsel %vm2629_vm15, %v4707_v3, %v5170_v18  ;;  %v5118_v59 = vrot.slane %v5117_v53, 1 }
 0x76f   : > { %v5126_v44 = vadd.f32 %v5125_v10, %v5124_v19  ;;  %v5172_v47 = vsel %vm2631_vm3, %v4714_v17, %v5171_v38 }
 0x770   : > { %v5119_v63 = vadd.f32 %v5118_v59, %v5117_v53  ;;  %v5173_v20 = vsel %vm2633_vm4, %v4721_v11, %v5172_v47 }
 0x771   : > { %v5202_v42 = vadd.f32 %v5198_v46, %v5173_v20 }
 0x772   : > { %v5188_v37 = vsel %vm2631_vm3, %v5119_v63, %v8712_v52  ;;  %v5342_v52 = vld [vmem:[%s8780_s1 + $0x68] sm:$0xff] }
 0x773   : > { %v5234_v4 = vmul.f32 %v5230_v43, %v5202_v42  ;;  %v5189_v34 = vsel %vm2633_vm4, %v5126_v44, %v5188_v37  ;;  %v6131_v32 = vpack.c.bf16 %v5342_v52, %v5341_v15 }
 0x774   : > { %v5203_v29 = vadd.f32 %v5199_v22, %v5189_v34 }
 0x775   : > { %5953 = vmatprep.mubr.msk.f32.mxu0 %vm649_vm2, %v5234_v4  ;;  %6132 = vmatprep.subr.bf16.mxu1 %v6131_v32 }
 0x776   : > { %v5235_v45 = vmul.f32 %v5231_v55, %v5203_v29  ;;  %6134 = vmatpush3.bf16.msra.mxu1 %v6131_v32 }
 0x778   : > { %5954 = vmatmul.mubr.msk.f32.gmra.mrb[26].mxu0 %vm649_vm2, %v5235_v45 }
 0x83a   : > { %v5952_v14 = vpop.f32.mrb[24].mxu0 }
 0x83b   : > { %v5322_v57 = vpop.f32.mrb[25].mxu0 }
 0x84b   : > { %v5955_v24 = vpop.f32.mrb[26].mxu0 }
 0x84c   : > { %v5330_v12 = vpop.f32.mrb[27].mxu0 }
 0x84d   : > { %5964 = vmatprep.mubr.msk.f32.mxu1 %vm314_vm1, %v5330_v12 }
 0x84e   : > { %5965 = vmatmul.mubr.msk.f32.vlgmr.msra.gmra.mrb[24].mxu1 %vm314_vm1, %v5955_v24 }
 0x921   : > { %v5966_v51 = vpop.f32.mrb[24].mxu1 }
 0x922   : > { %v5426_v7 = vadd.f32 %v5966_v51, %v5570_v61  ;;  %v5420_v56 = vpop.f32.mrb[25].mxu1 }
 0x923   : > { %v5421_v0 = vadd.f32 %v5570_v61, %v5420_v56 }
 0x924   : > { %5430 = vst.msk [vmem:[%s197_s18 + $0x8] sm:$0xff] %vm208_vm0, %v5426_v7 }
 0x925   : > { %5429 = vst.msk [vmem:[%s197_s18] sm:$0xff] %vm208_vm0, %v5421_v0 }
 0x926 PF: > { %s14_s15 = sadd.s32 1, %s6381_s15  }
 0x927   : > { %p11_p4 = scmp.ge.s32.totalorder %s14_s15, 4  }
 0x929   :  { %13 = sbr.rel (!%p11_p4) target bundleno = 1 (0x1), region = 66 }

</bundles_post_ra>
